<compile_context>
chip_gen: v7x
topology: tpu7x:2x2x1
jax: 0.10.0
libtpu: 0.0.40
codegen_flags: <defaults>
</compile_context>

<pallas_src>
import numpy as np

import jax
import jax.numpy as jnp
from jax.experimental import pallas as pl
from jax.experimental.pallas import tpu as pltpu

# ----------------------------- hyper-parameters ------------------------------
N_MEL = 8          # n_mel_channels
R = 2              # n_frames_per_step_decoder
MELR = N_MEL * R   # projected mel frame size per decoder step
H = 32             # encoder_embedding_dim (= hidden_cat_dim)
AR = 32            # attention_rnn_dim
DR = 32            # decoder_rnn_dim
P1, P2 = 32, 32    # prenet_dim
A = 16             # attention_dim
NF = 4             # attention_location_n_filters
K = 5              # attention_location_kernel_size (odd)
PRENET_IN = MELR   # feed_back_last == False
NEG = -1e20        # score_mask_value / log_alpha fill

# persistent state-vector lane layout: [ x | ctx | att_h | dec_h ] -> 128 lanes
X_OFF = 0
CTX_OFF = P2                # 32
AH_OFF = P2 + H             # 64
DH_OFF = P2 + H + AR        # 96
STATE_W = P2 + H + AR + DR  # 128

SB = 8             # batch sublane group per grid shard


# ------------------------------ small kernels --------------------------------
def _linear_kernel(x_ref, w_ref, o_ref):
    o_ref[...] = jnp.dot(x_ref[...], w_ref[...], preferred_element_type=jnp.float32)


def linear(x, w_t):
    m = x.shape[0]
    n = w_t.shape[1]
    return pl.pallas_call(
        _linear_kernel,
        out_shape=jax.ShapeDtypeStruct((m, n), jnp.float32),
    )(x, w_t)


def _prenet_kernel(x_ref, w1_ref, w2_ref, o_ref):
    h = jnp.maximum(
        jnp.dot(x_ref[...], w1_ref[...], preferred_element_type=jnp.float32), 0.0)
    o_ref[...] = jnp.maximum(
        jnp.dot(h, w2_ref[...], preferred_element_type=jnp.float32), 0.0)


def prenet(x, w1_t, w2_t):
    # TODO(synk): Prenet dropout (p=0.5, training=True) is omitted for determinism.
    m = x.shape[0]
    return pl.pallas_call(
        _prenet_kernel,
        out_shape=jax.ShapeDtypeStruct((m, w2_t.shape[1]), jnp.float32),
    )(x, w1_t, w2_t)


# --------------------------- main decoder-loop kernel -------------------------
def decoder_loop_kernel(
    x_ref, mem_ref, pmemf_ref, pad_ref,
    w_attf_ref, b_att_ref, w_decf_ref, b_dec_ref,
    w_qbig_ref, w_locbig_ref, v_big_ref, w_ps_ref, b_ps_ref, e_attn_ref,
    out_ref,
    state, att_c, dec_c, att_w2, log_alpha):

    S = x_ref.shape[0]
    T = log_alpha.shape[1]

    # ---- per-sequence state init (inner time axis restarts at 0 per batch shard)
    @pl.when(pl.program_id(1) == 0)
    def _init():
        state[...] = jnp.zeros_like(state)
        att_c[...] = jnp.zeros_like(att_c)
        dec_c[...] = jnp.zeros_like(dec_c)
        att_w2[...] = jnp.zeros_like(att_w2)
        col = jax.lax.broadcasted_iota(jnp.int32, (SB, T), 1)
        log_alpha[...] = jnp.where(col == 0, jnp.float32(0.0), jnp.float32(NEG))

    # ---- loop-invariant values, hoisted out of the unrolled step loop ----
    mem = mem_ref[...]            # [SB, T, H]
    pmemf = pmemf_ref[...]        # [SB, T*A]   lane-dense processed memory
    pad = pad_ref[...]            # [SB, T]     1.0 at padded encoder positions
    w_attf = w_attf_ref[...]      # [128, 128]  fused attention-LSTM weight
    b_att = b_att_ref[...]        # [1, 128]
    w_decf = w_decf_ref[...]      # [128, 128]  fused decoder-LSTM weight
    b_dec = b_dec_ref[...]        # [1, 128]
    w_qbig = w_qbig_ref[...]      # [AR, T*A]   query weight tiled across T
    w_locbig = w_locbig_ref[...]  # [2T, T*A]   location conv+dense as a matmul
    v_big = v_big_ref[...]        # [T*A, T]    energy reduction matrix
    w_ps = w_ps_ref[...]          # [128, OUT_W] fused mel+stop projection
    b_ps = b_ps_ref[...]          # [1, OUT_W]
    e_attn = e_attn_ref[...]      # [T, OUT_W]  places attn into the output slab

    gate_lane = jax.lax.broadcasted_iota(jnp.int32, (SB, 4 * AR), 1)
    g_mask = (gate_lane >= 2 * AR) & (gate_lane < 3 * AR)   # tanh gate lanes

    def lstm(inp, w, b, c_prev):
        gates = jnp.dot(inp, w, preferred_element_type=jnp.float32) + b
        act = jnp.where(g_mask, jnp.tanh(gates), jax.nn.sigmoid(gates))
        i_g = act[:, 0:AR]
        f_g = act[:, AR:2 * AR]
        g_g = act[:, 2 * AR:3 * AR]
        o_g = act[:, 3 * AR:4 * AR]
        c_new = f_g * c_prev + i_g * g_g
        h_new = o_g * jnp.tanh(c_new)
        return h_new, c_new

    def step(s, carry):
        # prenet output for this step -> state lanes [0:P2]
        state[:, X_OFF:X_OFF + P2] = x_ref[s]

        # ---- attention LSTM cell (fused ih+hh, PyTorch gate order i,f,g,o) ----
        ah_new, ac_new = lstm(state[...], w_attf, b_att, att_c[...])
        att_c[...] = ac_new
        state[:, AH_OFF:AH_OFF + AR] = ah_new

        # ---- location features + alignment energies (lane-dense matmuls) ----
        aw2 = att_w2[...]                                            # [SB, 2T]
        ploc = jnp.dot(aw2, w_locbig, preferred_element_type=jnp.float32)   # [SB, T*A]
        pq = jnp.dot(ah_new, w_qbig, preferred_element_type=jnp.float32)    # [SB, T*A]
        e = jnp.tanh(pq + ploc + pmemf)                                      # [SB, T*A]
        energies = jnp.dot(e, v_big, preferred_element_type=jnp.float32)    # [SB, T]
        log_energy = jnp.where(pad > 0.5, NEG, energies)

        # ---- forward attention (ForwardAttentionV2) ----
        la = log_alpha[...]
        shift1 = jnp.concatenate(
            [jnp.full((SB, 1), NEG, jnp.float32), la[:, :T - 1]], axis=1)
        mx = jnp.maximum(la, shift1)
        biased = mx + jnp.log(jnp.exp(la - mx) + jnp.exp(shift1 - mx))
        la_new = biased + log_energy
        log_alpha[...] = la_new

        smax = jnp.max(la_new, axis=1, keepdims=True)
        ex = jnp.exp(la_new - smax)
        attn = ex * pl.reciprocal(jnp.sum(ex, axis=1, keepdims=True), approx=True)

        ctx = jnp.sum(attn[:, :, None] * mem, axis=1)                # [SB, H]
        att_w2[...] = jnp.concatenate([attn, aw2[:, T:2 * T] + attn], axis=1)
        state[:, CTX_OFF:CTX_OFF + H] = ctx

        # ---- decoder LSTM cell (fused ih+hh) ----
        dh_new, dc_new = lstm(state[...], w_decf, b_dec, dec_c[...])
        dec_c[...] = dc_new
        state[:, DH_OFF:DH_OFF + DR] = dh_new

        # ---- fused mel + stop projection, packed with attn into one 128-lane slab
        pslab = jnp.dot(state[...], w_ps, preferred_element_type=jnp.float32) + b_ps
        out_ref[s] = pslab + jnp.dot(attn, e_attn, preferred_element_type=jnp.float32)
        return carry

    jax.lax.fori_loop(0, S, step, 0, unroll=True)


# ------------------------------- driver / glue --------------------------------
def init_params(key):
    ks = iter(jax.random.split(key, 32))

    def w(shape, scale=0.1):
        return jax.random.normal(next(ks), shape, jnp.float32) * scale

    p = {}
    # Prenet (LinearNorm, bias=False), stored pre-transposed [in, out]
    p['w_pre1_t'] = w((PRENET_IN, P1))
    p['w_pre2_t'] = w((P1, P2))
    # attention memory layer (bias=False)
    p['w_mem_t'] = w((H, A))
    # attention LSTM cell
    p['w_att_ih_t'] = w((P2 + H, 4 * AR))
    p['w_att_hh_t'] = w((AR, 4 * AR))
    p['b_att'] = w((1, 4 * AR))          # b_ih + b_hh combined
    # attention query / v layers (bias=False)
    p['w_q_t'] = w((AR, A))
    p['w_v'] = w((1, A))
    # location layer: conv1d [NF, 2, K] (no bias) folded with dense [A, NF]
    w_loc_conv = w((NF, 2, K))
    w_loc_dense = w((A, NF))
    p['w_loc_eff'] = jnp.dot(w_loc_conv.reshape(NF, 2 * K).T, w_loc_dense.T)  # [2K, A]
    # decoder LSTM cell
    p['w_dec_ih_t'] = w((AR + H, 4 * DR))
    p['w_dec_hh_t'] = w((DR, 4 * DR))
    p['b_dec'] = w((1, 4 * DR))
    # linear projection + stop layer (bias=True)
    p['w_proj_t'] = w((DR + H, MELR))
    p['b_proj'] = w((1, MELR))
    p['w_stop_t'] = w((DR + H, 1))
    p['b_stop'] = w((1, 1))
    return p


@jax.jit
def run_decoder(params, memory, decoder_inputs, memory_lengths):
    B, T_enc, _ = memory.shape
    _, _, T_mel = decoder_inputs.shape
    T_dec = T_mel // R
    LA = T_enc * A
    OUT_W = ((MELR + 1 + T_enc + 127) // 128) * 128
    ATT_OFF = MELR + 1

    # steps per grid invocation / batch padding
    S = min(8, T_dec)
    T_pad = -(-T_dec // S) * S
    T_chunks = T_pad // S
    B_pad = -(-B // SB) * SB
    NB = B_pad // SB

    # --- parse_decoder_inputs + go frame (glue, plain JAX) ---
    di = jnp.transpose(decoder_inputs, (0, 2, 1)).reshape(B, T_dec, MELR)
    di = jnp.transpose(di, (1, 0, 2))                       # [T_dec, B, MELR]
    go = jnp.zeros((1, B, MELR), jnp.float32)
    di = jnp.concatenate([go, di], axis=0)[:T_dec]          # only first T_dec frames used
    di = jnp.pad(di, ((0, T_pad - T_dec), (0, B_pad - B), (0, 0)))

    # --- prenet (Pallas) ---
    pre = prenet(di.reshape(T_pad * B_pad, MELR),
                 params['w_pre1_t'], params['w_pre2_t'])
    pre = pre.reshape(T_pad, B_pad, P2)

    # --- processed memory (Pallas), lane-dense flat [B, T*A], padding mask ---
    mem_p = jnp.pad(memory, ((0, B_pad - B), (0, 0), (0, 0)))
    ml_p = jnp.concatenate(
        [memory_lengths.astype(jnp.int32),
         jnp.full((B_pad - B,), T_enc, jnp.int32)], axis=0)
    pmem_flat = linear(mem_p.reshape(B_pad * T_enc, H),
                       params['w_mem_t']).reshape(B_pad, LA)
    pad_mask = (jnp.arange(T_enc)[None, :] >= ml_p[:, None]).astype(jnp.float32)

    # --- fused / lane-dense weights (one-time glue under jit) ---
    w_attf = jnp.zeros((STATE_W, 4 * AR), jnp.float32)
    w_attf = w_attf.at[X_OFF:X_OFF + P2, :].set(params['w_att_ih_t'][0:P2])
    w_attf = w_attf.at[CTX_OFF:CTX_OFF + H, :].set(params['w_att_ih_t'][P2:P2 + H])
    w_attf = w_attf.at[AH_OFF:AH_OFF + AR, :].set(params['w_att_hh_t'])

    w_decf = jnp.zeros((STATE_W, 4 * DR), jnp.float32)
    w_decf = w_decf.at[AH_OFF:AH_OFF + AR, :].set(params['w_dec_ih_t'][0:AR])
    w_decf = w_decf.at[CTX_OFF:CTX_OFF + H, :].set(params['w_dec_ih_t'][AR:AR + H])
    w_decf = w_decf.at[DH_OFF:DH_OFF + DR, :].set(params['w_dec_hh_t'])

    w_qbig = jnp.tile(params['w_q_t'], (1, T_enc))          # [AR, T*A]

    pad_k = (K - 1) // 2
    sel = np.zeros((2, T_enc, T_enc, 2 * K), np.float32)
    for c in range(2):
        for s in range(T_enc):
            for t in range(T_enc):
                k = s - t + pad_k
                if 0 <= k < K:
                    sel[c, s, t, c * K + k] = 1.0
    w_locbig = jnp.einsum('cstq,qa->csta', jnp.asarray(sel), params['w_loc_eff'])
    w_locbig = w_locbig.reshape(2 * T_enc, LA)               # [2T, T*A]

    eyeT = jnp.eye(T_enc, dtype=jnp.float32)
    v_big = (eyeT[:, None, :] * params['w_v'].reshape(1, A, 1)).reshape(LA, T_enc)

    w_ps = jnp.zeros((STATE_W, OUT_W), jnp.float32)
    w_ps = w_ps.at[DH_OFF:DH_OFF + DR, 0:MELR].set(params['w_proj_t'][0:DR])
    w_ps = w_ps.at[CTX_OFF:CTX_OFF + H, 0:MELR].set(params['w_proj_t'][DR:DR + H])
    w_ps = w_ps.at[DH_OFF:DH_OFF + DR, MELR:MELR + 1].set(params['w_stop_t'][0:DR])
    w_ps = w_ps.at[CTX_OFF:CTX_OFF + H, MELR:MELR + 1].set(params['w_stop_t'][DR:DR + H])
    b_ps = jnp.zeros((1, OUT_W), jnp.float32)
    b_ps = b_ps.at[:, 0:MELR].set(params['b_proj'])
    b_ps = b_ps.at[:, MELR:MELR + 1].set(params['b_stop'])

    e_np = np.zeros((T_enc, OUT_W), np.float32)
    for t in range(T_enc):
        e_np[t, ATT_OFF + t] = 1.0
    e_attn = jnp.asarray(e_np)

    weight_list = [w_attf, params['b_att'], w_decf, params['b_dec'],
                   w_qbig, w_locbig, v_big, w_ps, b_ps, e_attn]

    slab = pl.pallas_call(
        decoder_loop_kernel,
        out_shape=jax.ShapeDtypeStruct((T_pad, B_pad, OUT_W), jnp.float32),
        grid=(NB, T_chunks),
        in_specs=[
            pl.BlockSpec((S, SB, P2), lambda nb, tc: (tc, nb, 0)),
            pl.BlockSpec((SB, T_enc, H), lambda nb, tc: (nb, 0, 0)),
            pl.BlockSpec((SB, LA), lambda nb, tc: (nb, 0)),
            pl.BlockSpec((SB, T_enc), lambda nb, tc: (nb, 0)),
        ] + [pl.BlockSpec(wt.shape, lambda nb, tc: (0, 0)) for wt in weight_list],
        out_specs=pl.BlockSpec((S, SB, OUT_W), lambda nb, tc: (tc, nb, 0)),
        scratch_shapes=[
            pltpu.VMEM((SB, STATE_W), jnp.float32),      # state: x|ctx|ah|dh
            pltpu.VMEM((SB, AR), jnp.float32),           # attention LSTM cell
            pltpu.VMEM((SB, DR), jnp.float32),           # decoder LSTM cell
            pltpu.VMEM((SB, 2 * T_enc), jnp.float32),    # attn weights | cumulative
            pltpu.VMEM((SB, T_enc), jnp.float32),        # log_alpha
        ],
        compiler_params=pltpu.CompilerParams(
            dimension_semantics=("parallel", "arbitrary")),
    )(pre, mem_p, pmem_flat, pad_mask, *weight_list)

    # --- unpack the lane-dense slab + parse_decoder_outputs (glue) ---
    slab = slab[:T_dec, :B]
    mel_raw = slab[..., 0:MELR]                              # [T_dec, B, MELR]
    stop_raw = slab[..., MELR]                               # [T_dec, B]
    align_raw = slab[..., ATT_OFF:ATT_OFF + T_enc]           # [T_dec, B, T_enc]

    mel_outputs = jnp.transpose(mel_raw, (1, 0, 2)).reshape(B, T_dec * R, N_MEL)
    mel_outputs = jnp.transpose(mel_outputs, (0, 2, 1))      # [B, n_mel, T_mel]
    stop_outputs = jnp.transpose(stop_raw, (1, 0))           # [B, T_dec]
    alignments = jnp.transpose(align_raw, (1, 0, 2))         # [B, T_dec, T_enc]
    return mel_outputs, stop_outputs, alignments


if __name__ == "__main__":
    key = jax.random.PRNGKey(0)
    k_mem, k_mel, k_par = jax.random.split(key, 3)

    B, T_enc, T_mel = 2, 8, 8
    memory = jax.random.normal(k_mem, (B, T_enc, H), jnp.float32)
    decoder_inputs = jax.random.normal(k_mel, (B, N_MEL, T_mel), jnp.float32)
    memory_lengths = jnp.array([8, 6], jnp.int32)

    params = init_params(k_par)
    mel, stop, align = run_decoder(params, memory, decoder_inputs, memory_lengths)
    jax.block_until_ready((mel, stop, align))

    assert mel.shape == (B, N_MEL, T_mel)
    assert stop.shape == (B, T_mel // R)
    assert align.shape == (B, T_mel // R, T_enc)
    print("KERNEL_OK")
</pallas_src>

<mosaic_0001>
module attributes {stable_mosaic.version = 11 : i64} {
  func.func @_linear_kernel(%arg0: memref<64x32xf32, #tpu.memory_space<vmem>>, %arg1: memref<32x16xf32, #tpu.memory_space<vmem>>, %arg2: memref<64x16xf32, #tpu.memory_space<vmem>>) attributes {dimension_semantics = [], scalar_prefetch = 0 : i64, scratch_operands = 0 : i64, tpu.core_type = #tpu.core_type<tc>} {
    %c0 = arith.constant 0 : index
    %c0_0 = arith.constant 0 : index
    %0 = vector.load %arg0[%c0, %c0_0] : memref<64x32xf32, #tpu.memory_space<vmem>>, vector<64x32xf32>
    %c0_1 = arith.constant 0 : index
    %c0_2 = arith.constant 0 : index
    %1 = vector.load %arg1[%c0_1, %c0_2] : memref<32x16xf32, #tpu.memory_space<vmem>>, vector<32x16xf32>
    %cst = arith.constant dense<0.000000e+00> : vector<64x16xf32>
    %2 = tpu.matmul %0, %1, %cst {dimension_numbers = #tpu.dot_dimension_numbers<[1], [0], [0], [1], [0, 0, 1, 1], [], []>} : vector<64x32xf32>, vector<32x16xf32>, vector<64x16xf32> -> vector<64x16xf32>
    %c0_3 = arith.constant 0 : index
    %c0_4 = arith.constant 0 : index
    %3 = vector.load %arg2[%c0_3, %c0_4] : memref<64x16xf32, #tpu.memory_space<vmem>>, vector<64x16xf32>
    tpu.vector_store %arg2[%c0_3, %c0_4], %2 {strides = array<i32>} : memref<64x16xf32, #tpu.memory_space<vmem>>, vector<64x16xf32>,
    return
  }
}

module attributes {stable_mosaic.version = 11 : i64} {
  func.func @decoder_loop_kernel(%arg0: i32, %arg1: i32, %arg2: memref<4x8x32xf32, #tpu.memory_space<vmem>>, %arg3: memref<8x8x32xf32, #tpu.memory_space<vmem>>, %arg4: memref<8x128xf32, #tpu.memory_space<vmem>>, %arg5: memref<8x8xf32, #tpu.memory_space<vmem>>, %arg6: memref<128x128xf32, #tpu.memory_space<vmem>>, %arg7: memref<1x128xf32, #tpu.memory_space<vmem>>, %arg8: memref<128x128xf32, #tpu.memory_space<vmem>>, %arg9: memref<1x128xf32, #tpu.memory_space<vmem>>, %arg10: memref<32x128xf32, #tpu.memory_space<vmem>>, %arg11: memref<16x128xf32, #tpu.memory_space<vmem>>, %arg12: memref<128x8xf32, #tpu.memory_space<vmem>>, %arg13: memref<128x128xf32, #tpu.memory_space<vmem>>, %arg14: memref<1x128xf32, #tpu.memory_space<vmem>>, %arg15: memref<8x128xf32, #tpu.memory_space<vmem>>, %arg16: memref<4x8x128xf32, #tpu.memory_space<vmem>>, %arg17: memref<8x128xf32, #tpu.memory_space<vmem>>, %arg18: memref<8x32xf32, #tpu.memory_space<vmem>>, %arg19: memref<8x32xf32, #tpu.memory_space<vmem>>, %arg20: memref<8x16xf32, #tpu.memory_space<vmem>>, %arg21: memref<8x8xf32, #tpu.memory_space<vmem>>) attributes {dimension_semantics = [#tpu.dimension_semantics<parallel>, #tpu.dimension_semantics<arbitrary>], iteration_bounds = array<i64: 1, 1>, scalar_prefetch = 0 : i64, scratch_operands = 5 : i64, tpu.core_type = #tpu.core_type<tc>, window_params = [{transform_indices = @transform_0, window_bounds = array<i64: 4, 8, 32>}, {transform_indices = @transform_1, window_bounds = array<i64: 8, 8, 32>}, {transform_indices = @transform_2, window_bounds = array<i64: 8, 128>}, {transform_indices = @transform_3, window_bounds = array<i64: 8, 8>}, {pipeline_mode = #tpu.pipeline_mode<synchronous>, transform_indices = @transform_4, window_bounds = array<i64: 128, 128>}, {pipeline_mode = #tpu.pipeline_mode<synchronous>, transform_indices = @transform_5, window_bounds = array<i64: 1, 128>}, {pipeline_mode = #tpu.pipeline_mode<synchronous>, transform_indices = @transform_6, window_bounds = array<i64: 128, 128>}, {pipeline_mode = #tpu.pipeline_mode<synchronous>, transform_indices = @transform_7, window_bounds = array<i64: 1, 128>}, {pipeline_mode = #tpu.pipeline_mode<synchronous>, transform_indices = @transform_8, window_bounds = array<i64: 32, 128>}, {pipeline_mode = #tpu.pipeline_mode<synchronous>, transform_indices = @transform_9, window_bounds = array<i64: 16, 128>}, {pipeline_mode = #tpu.pipeline_mode<synchronous>, transform_indices = @transform_10, window_bounds = array<i64: 128, 8>}, {pipeline_mode = #tpu.pipeline_mode<synchronous>, transform_indices = @transform_11, window_bounds = array<i64: 128, 128>}, {pipeline_mode = #tpu.pipeline_mode<synchronous>, transform_indices = @transform_12, window_bounds = array<i64: 1, 128>}, {pipeline_mode = #tpu.pipeline_mode<synchronous>, transform_indices = @transform_13, window_bounds = array<i64: 8, 128>}, {transform_indices = @transform_14, window_bounds = array<i64: 4, 8, 128>}]} {
    %c0_i32 = arith.constant 0 : i32
    %0 = arith.cmpi eq, %arg1, %c0_i32 : i32
    %1 = arith.extui %0 : i1 to i32
    %c0_i32_0 = arith.constant 0 : i32
    %2 = arith.cmpi ne, %1, %c0_i32_0 : i32
    scf.if %2 {
      %cst_220 = arith.constant 0.000000e+00 : f32
      %438 = vector.broadcast %cst_220 : f32 to vector<8x128xf32>
      %c0_221 = arith.constant 0 : index
      %c0_222 = arith.constant 0 : index
      %439 = vector.load %arg17[%c0_221, %c0_222] : memref<8x128xf32, #tpu.memory_space<vmem>>, vector<8x128xf32>
      tpu.vector_store %arg17[%c0_221, %c0_222], %438 {strides = array<i32>} : memref<8x128xf32, #tpu.memory_space<vmem>>, vector<8x128xf32>,
      %cst_223 = arith.constant 0.000000e+00 : f32
      %440 = vector.broadcast %cst_223 : f32 to vector<8x32xf32>
      %c0_224 = arith.constant 0 : index
      %c0_225 = arith.constant 0 : index
      %441 = vector.load %arg18[%c0_224, %c0_225] : memref<8x32xf32, #tpu.memory_space<vmem>>, vector<8x32xf32>
      tpu.vector_store %arg18[%c0_224, %c0_225], %440 {strides = array<i32>} : memref<8x32xf32, #tpu.memory_space<vmem>>, vector<8x32xf32>,
      %cst_226 = arith.constant 0.000000e+00 : f32
      %442 = vector.broadcast %cst_226 : f32 to vector<8x32xf32>
      %c0_227 = arith.constant 0 : index
      %c0_228 = arith.constant 0 : index
      %443 = vector.load %arg19[%c0_227, %c0_228] : memref<8x32xf32, #tpu.memory_space<vmem>>, vector<8x32xf32>
      tpu.vector_store %arg19[%c0_227, %c0_228], %442 {strides = array<i32>} : memref<8x32xf32, #tpu.memory_space<vmem>>, vector<8x32xf32>,
      %cst_229 = arith.constant 0.000000e+00 : f32
      %444 = vector.broadcast %cst_229 : f32 to vector<8x16xf32>
      %c0_230 = arith.constant 0 : index
      %c0_231 = arith.constant 0 : index
      %445 = vector.load %arg20[%c0_230, %c0_231] : memref<8x16xf32, #tpu.memory_space<vmem>>, vector<8x16xf32>
      tpu.vector_store %arg20[%c0_230, %c0_231], %444 {strides = array<i32>} : memref<8x16xf32, #tpu.memory_space<vmem>>, vector<8x16xf32>,
      %446 = tpu.iota {dimensions = array<i32: 1>} : vector<8x8xi32>
      %c0_i32_232 = arith.constant 0 : i32
      %447 = vector.broadcast %c0_i32_232 : i32 to vector<8x8xi32>
      %448 = arith.cmpi eq, %446, %447 : vector<8x8xi32>
      %cst_233 = arith.constant 0.000000e+00 : f32
      %cst_234 = arith.constant -1.000000e+20 : f32
      %449 = vector.broadcast %cst_233 : f32 to vector<8x8xf32>
      %450 = vector.broadcast %cst_234 : f32 to vector<8x8xf32>
      %451 = arith.select %448, %449, %450 : vector<8x8xi1>, vector<8x8xf32>
      %c0_235 = arith.constant 0 : index
      %c0_236 = arith.constant 0 : index
      %452 = vector.load %arg21[%c0_235, %c0_236] : memref<8x8xf32, #tpu.memory_space<vmem>>, vector<8x8xf32>
      tpu.vector_store %arg21[%c0_235, %c0_236], %451 {strides = array<i32>} : memref<8x8xf32, #tpu.memory_space<vmem>>, vector<8x8xf32>,
    } else {
    }
    %c0 = arith.constant 0 : index
    %c0_1 = arith.constant 0 : index
    %c0_2 = arith.constant 0 : index
    %3 = vector.load %arg3[%c0, %c0_1, %c0_2] : memref<8x8x32xf32, #tpu.memory_space<vmem>>, vector<8x8x32xf32>
    %c0_3 = arith.constant 0 : index
    %c0_4 = arith.constant 0 : index
    %4 = vector.load %arg4[%c0_3, %c0_4] : memref<8x128xf32, #tpu.memory_space<vmem>>, vector<8x128xf32>
    %c0_5 = arith.constant 0 : index
    %c0_6 = arith.constant 0 : index
    %5 = vector.load %arg5[%c0_5, %c0_6] : memref<8x8xf32, #tpu.memory_space<vmem>>, vector<8x8xf32>
    %c0_7 = arith.constant 0 : index
    %c0_8 = arith.constant 0 : index
    %6 = vector.load %arg6[%c0_7, %c0_8] : memref<128x128xf32, #tpu.memory_space<vmem>>, vector<128x128xf32>
    %c0_9 = arith.constant 0 : index
    %c0_10 = arith.constant 0 : index
    %7 = vector.load %arg7[%c0_9, %c0_10] : memref<1x128xf32, #tpu.memory_space<vmem>>, vector<1x128xf32>
    %c0_11 = arith.constant 0 : index
    %c0_12 = arith.constant 0 : index
    %8 = vector.load %arg8[%c0_11, %c0_12] : memref<128x128xf32, #tpu.memory_space<vmem>>, vector<128x128xf32>
    %c0_13 = arith.constant 0 : index
    %c0_14 = arith.constant 0 : index
    %9 = vector.load %arg9[%c0_13, %c0_14] : memref<1x128xf32, #tpu.memory_space<vmem>>, vector<1x128xf32>
    %c0_15 = arith.constant 0 : index
    %c0_16 = arith.constant 0 : index
    %10 = vector.load %arg10[%c0_15, %c0_16] : memref<32x128xf32, #tpu.memory_space<vmem>>, vector<32x128xf32>
    %c0_17 = arith.constant 0 : index
    %c0_18 = arith.constant 0 : index
    %11 = vector.load %arg11[%c0_17, %c0_18] : memref<16x128xf32, #tpu.memory_space<vmem>>, vector<16x128xf32>
    %c0_19 = arith.constant 0 : index
    %c0_20 = arith.constant 0 : index
    %12 = vector.load %arg12[%c0_19, %c0_20] : memref<128x8xf32, #tpu.memory_space<vmem>>, vector<128x8xf32>
    %c0_21 = arith.constant 0 : index
    %c0_22 = arith.constant 0 : index
    %13 = vector.load %arg13[%c0_21, %c0_22] : memref<128x128xf32, #tpu.memory_space<vmem>>, vector<128x128xf32>
    %c0_23 = arith.constant 0 : index
    %c0_24 = arith.constant 0 : index
    %14 = vector.load %arg14[%c0_23, %c0_24] : memref<1x128xf32, #tpu.memory_space<vmem>>, vector<1x128xf32>
    %c0_25 = arith.constant 0 : index
    %c0_26 = arith.constant 0 : index
    %15 = vector.load %arg15[%c0_25, %c0_26] : memref<8x128xf32, #tpu.memory_space<vmem>>, vector<8x128xf32>
    %16 = tpu.iota {dimensions = array<i32: 1>} : vector<8x128xi32>
    %c64_i32 = arith.constant 64 : i32
    %17 = vector.broadcast %c64_i32 : i32 to vector<8x128xi32>
    %18 = arith.cmpi sge, %16, %17 : vector<8x128xi32>
    %c96_i32 = arith.constant 96 : i32
    %19 = vector.broadcast %c96_i32 : i32 to vector<8x128xi32>
    %20 = arith.cmpi slt, %16, %19 : vector<8x128xi32>
    %21 = arith.andi %18, %20 : vector<8x128xi1>
    %c0_i32_27 = arith.constant 0 : i32
    %22 = arith.index_cast %c0_i32_27 : i32 to index
    %c0_28 = arith.constant 0 : index
    %c0_29 = arith.constant 0 : index
    %23 = vector.load %arg2[%22, %c0_28, %c0_29] : memref<4x8x32xf32, #tpu.memory_space<vmem>>, vector<1x8x32xf32>
    %24 = vector.shape_cast %23 : vector<1x8x32xf32> to vector<8x32xf32>
    %c0_30 = arith.constant 0 : index
    %c0_31 = arith.constant 0 : index
    %25 = vector.load %arg17[%c0_30, %c0_31] : memref<8x128xf32, #tpu.memory_space<vmem>>, vector<8x32xf32>
    tpu.vector_store %arg17[%c0_30, %c0_31], %24 {strides = array<i32>} : memref<8x128xf32, #tpu.memory_space<vmem>>, vector<8x32xf32>,
    %c0_32 = arith.constant 0 : index
    %c0_33 = arith.constant 0 : index
    %26 = vector.load %arg17[%c0_32, %c0_33] : memref<8x128xf32, #tpu.memory_space<vmem>>, vector<8x128xf32>
    %c0_34 = arith.constant 0 : index
    %c0_35 = arith.constant 0 : index
    %27 = vector.load %arg18[%c0_34, %c0_35] : memref<8x32xf32, #tpu.memory_space<vmem>>, vector<8x32xf32>
    %cst = arith.constant dense<0.000000e+00> : vector<8x128xf32>
    %28 = tpu.matmul %26, %6, %cst {dimension_numbers = #tpu.dot_dimension_numbers<[1], [0], [0], [1], [0, 0, 1, 1], [], []>} : vector<8x128xf32>, vector<128x128xf32>, vector<8x128xf32> -> vector<8x128xf32>
    %29 = vector.broadcast %7 : vector<1x128xf32> to vector<8x128xf32>
    %30 = arith.addf %28, %29 : vector<8x128xf32>
    %31 = math.tanh %30 : vector<8x128xf32>
    %32 = arith.negf %30 : vector<8x128xf32>
    %33 = math.exp %32 : vector<8x128xf32>
    %cst_36 = arith.constant 1.000000e+00 : f32
    %34 = vector.broadcast %cst_36 : f32 to vector<8x128xf32>
    %35 = arith.addf %34, %33 : vector<8x128xf32>
    %36 = arith.divf %34, %35 : vector<8x128xf32>
    %37 = arith.select %21, %31, %36 : vector<8x128xi1>, vector<8x128xf32>
    %38 = vector.extract_strided_slice %37 {offsets = [0, 0], sizes = [8, 32], strides = [1, 1]} : vector<8x128xf32> to vector<8x32xf32>
    %39 = vector.extract_strided_slice %37 {offsets = [0, 32], sizes = [8, 32], strides = [1, 1]} : vector<8x128xf32> to vector<8x32xf32>
    %40 = vector.extract_strided_slice %37 {offsets = [0, 64], sizes = [8, 32], strides = [1, 1]} : vector<8x128xf32> to vector<8x32xf32>
    %41 = vector.extract_strided_slice %37 {offsets = [0, 96], sizes = [8, 32], strides = [1, 1]} : vector<8x128xf32> to vector<8x32xf32>
    %42 = arith.mulf %39, %27 : vector<8x32xf32>
    %43 = arith.mulf %38, %40 : vector<8x32xf32>
    %44 = arith.addf %42, %43 : vector<8x32xf32>
    %45 = math.tanh %44 : vector<8x32xf32>
    %46 = arith.mulf %41, %45 : vector<8x32xf32>
    %c0_37 = arith.constant 0 : index
    %c0_38 = arith.constant 0 : index
    %47 = vector.load %arg18[%c0_37, %c0_38] : memref<8x32xf32, #tpu.memory_space<vmem>>, vector<8x32xf32>
    tpu.vector_store %arg18[%c0_37, %c0_38], %44 {strides = array<i32>} : memref<8x32xf32, #tpu.memory_space<vmem>>, vector<8x32xf32>,
    %c0_39 = arith.constant 0 : index
    %c64 = arith.constant 64 : index
    %48 = vector.load %arg17[%c0_39, %c64] : memref<8x128xf32, #tpu.memory_space<vmem>>, vector<8x32xf32>
    tpu.vector_store %arg17[%c0_39, %c64], %46 {strides = array<i32>} : memref<8x128xf32, #tpu.memory_space<vmem>>, vector<8x32xf32>,
    %c0_40 = arith.constant 0 : index
    %c0_41 = arith.constant 0 : index
    %49 = vector.load %arg20[%c0_40, %c0_41] : memref<8x16xf32, #tpu.memory_space<vmem>>, vector<8x16xf32>
    %cst_42 = arith.constant dense<0.000000e+00> : vector<8x128xf32>
    %50 = tpu.matmul %49, %11, %cst_42 {dimension_numbers = #tpu.dot_dimension_numbers<[1], [0], [0], [1], [0, 0, 1, 1], [], []>} : vector<8x16xf32>, vector<16x128xf32>, vector<8x128xf32> -> vector<8x128xf32>
    %cst_43 = arith.constant dense<0.000000e+00> : vector<8x128xf32>
    %51 = tpu.matmul %46, %10, %cst_43 {dimension_numbers = #tpu.dot_dimension_numbers<[1], [0], [0], [1], [0, 0, 1, 1], [], []>} : vector<8x32xf32>, vector<32x128xf32>, vector<8x128xf32> -> vector<8x128xf32>
    %52 = arith.addf %51, %50 : vector<8x128xf32>
    %53 = arith.addf %52, %4 : vector<8x128xf32>
    %54 = math.tanh %53 : vector<8x128xf32>
    %cst_44 = arith.constant dense<0.000000e+00> : vector<8x8xf32>
    %55 = tpu.matmul %54, %12, %cst_44 {dimension_numbers = #tpu.dot_dimension_numbers<[1], [0], [0], [1], [0, 0, 1, 1], [], []>} : vector<8x128xf32>, vector<128x8xf32>, vector<8x8xf32> -> vector<8x8xf32>
    %cst_45 = arith.constant 5.000000e-01 : f32
    %56 = vector.broadcast %cst_45 : f32 to vector<8x8xf32>
    %57 = arith.cmpf ogt, %5, %56 : vector<8x8xf32>
    %cst_46 = arith.constant -1.000000e+20 : f32
    %58 = vector.broadcast %cst_46 : f32 to vector<8x8xf32>
    %59 = arith.select %57, %58, %55 : vector<8x8xi1>, vector<8x8xf32>
    %c0_47 = arith.constant 0 : index
    %c0_48 = arith.constant 0 : index
    %60 = vector.load %arg21[%c0_47, %c0_48] : memref<8x8xf32, #tpu.memory_space<vmem>>, vector<8x8xf32>
    %cst_49 = arith.constant -1.000000e+20 : f32
    %61 = vector.broadcast %cst_49 : f32 to vector<8x1xf32>
    %62 = vector.extract_strided_slice %60 {offsets = [0, 0], sizes = [8, 7], strides = [1, 1]} : vector<8x8xf32> to vector<8x7xf32>
    %63 = tpu.concatenate %61, %62 in 1 : vector<8x1xf32>, vector<8x7xf32> -> vector<8x8xf32>
    %64 = arith.maximumf %60, %63 : vector<8x8xf32>
    %65 = arith.subf %60, %64 : vector<8x8xf32>
    %66 = math.exp %65 : vector<8x8xf32>
    %67 = arith.subf %63, %64 : vector<8x8xf32>
    %68 = math.exp %67 : vector<8x8xf32>
    %69 = arith.addf %66, %68 : vector<8x8xf32>
    %70 = math.log %69 : vector<8x8xf32>
    %71 = arith.addf %64, %70 : vector<8x8xf32>
    %72 = arith.addf %71, %59 : vector<8x8xf32>
    %c0_50 = arith.constant 0 : index
    %c0_51 = arith.constant 0 : index
    %73 = vector.load %arg21[%c0_50, %c0_51] : memref<8x8xf32, #tpu.memory_space<vmem>>, vector<8x8xf32>
    tpu.vector_store %arg21[%c0_50, %c0_51], %72 {strides = array<i32>} : memref<8x8xf32, #tpu.memory_space<vmem>>, vector<8x8xf32>,
    %cst_52 = arith.constant dense<0xFF800000> : vector<8xf32>
    %74 = vector.multi_reduction <maximumf>, %72, %cst_52 [1] : vector<8x8xf32> to vector<8xf32>
    %75 = vector.shape_cast %74 : vector<8xf32> to vector<8x1xf32>
    %76 = vector.broadcast %75 : vector<8x1xf32> to vector<8x8xf32>
    %77 = arith.subf %72, %76 : vector<8x8xf32>
    %78 = math.exp %77 : vector<8x8xf32>
    %cst_53 = arith.constant dense<0.000000e+00> : vector<8xf32>
    %79 = vector.multi_reduction <add>, %78, %cst_53 [1] : vector<8x8xf32> to vector<8xf32>
    %80 = vector.shape_cast %79 : vector<8xf32> to vector<8x1xf32>
    %81 = tpu.reciprocal %80 {approx = true} : vector<8x1xf32> -> vector<8x1xf32>
    %82 = vector.broadcast %81 : vector<8x1xf32> to vector<8x8xf32>
    %83 = arith.mulf %78, %82 : vector<8x8xf32>
    %84 = vector.shape_cast %83 : vector<8x8xf32> to vector<8x8x1xf32>
    %85 = vector.broadcast %84 : vector<8x8x1xf32> to vector<8x8x32xf32>
    %86 = arith.mulf %85, %3 : vector<8x8x32xf32>
    %cst_54 = arith.constant dense<0.000000e+00> : vector<8x32xf32>
    %87 = vector.multi_reduction <add>, %86, %cst_54 [1] : vector<8x8x32xf32> to vector<8x32xf32>
    %88 = vector.extract_strided_slice %49 {offsets = [0, 8], sizes = [8, 8], strides = [1, 1]} : vector<8x16xf32> to vector<8x8xf32>
    %89 = arith.addf %88, %83 : vector<8x8xf32>
    %90 = tpu.concatenate %83, %89 in 1 : vector<8x8xf32>, vector<8x8xf32> -> vector<8x16xf32>
    %c0_55 = arith.constant 0 : index
    %c0_56 = arith.constant 0 : index
    %91 = vector.load %arg20[%c0_55, %c0_56] : memref<8x16xf32, #tpu.memory_space<vmem>>, vector<8x16xf32>
    tpu.vector_store %arg20[%c0_55, %c0_56], %90 {strides = array<i32>} : memref<8x16xf32, #tpu.memory_space<vmem>>, vector<8x16xf32>,
    %c0_57 = arith.constant 0 : index
    %c32 = arith.constant 32 : index
    %92 = vector.load %arg17[%c0_57, %c32] : memref<8x128xf32, #tpu.memory_space<vmem>>, vector<8x32xf32>
    tpu.vector_store %arg17[%c0_57, %c32], %87 {strides = array<i32>} : memref<8x128xf32, #tpu.memory_space<vmem>>, vector<8x32xf32>,
    %c0_58 = arith.constant 0 : index
    %c0_59 = arith.constant 0 : index
    %93 = vector.load %arg17[%c0_58, %c0_59] : memref<8x128xf32, #tpu.memory_space<vmem>>, vector<8x128xf32>
    %c0_60 = arith.constant 0 : index
    %c0_61 = arith.constant 0 : index
    %94 = vector.load %arg19[%c0_60, %c0_61] : memref<8x32xf32, #tpu.memory_space<vmem>>, vector<8x32xf32>
    %cst_62 = arith.constant dense<0.000000e+00> : vector<8x128xf32>
    %95 = tpu.matmul %93, %8, %cst_62 {dimension_numbers = #tpu.dot_dimension_numbers<[1], [0], [0], [1], [0, 0, 1, 1], [], []>} : vector<8x128xf32>, vector<128x128xf32>, vector<8x128xf32> -> vector<8x128xf32>
    %96 = vector.broadcast %9 : vector<1x128xf32> to vector<8x128xf32>
    %97 = arith.addf %95, %96 : vector<8x128xf32>
    %98 = math.tanh %97 : vector<8x128xf32>
    %99 = arith.negf %97 : vector<8x128xf32>
    %100 = math.exp %99 : vector<8x128xf32>
    %cst_63 = arith.constant 1.000000e+00 : f32
    %101 = vector.broadcast %cst_63 : f32 to vector<8x128xf32>
    %102 = arith.addf %101, %100 : vector<8x128xf32>
    %103 = arith.divf %101, %102 : vector<8x128xf32>
    %104 = arith.select %21, %98, %103 : vector<8x128xi1>, vector<8x128xf32>
    %105 = vector.extract_strided_slice %104 {offsets = [0, 0], sizes = [8, 32], strides = [1, 1]} : vector<8x128xf32> to vector<8x32xf32>
    %106 = vector.extract_strided_slice %104 {offsets = [0, 32], sizes = [8, 32], strides = [1, 1]} : vector<8x128xf32> to vector<8x32xf32>
    %107 = vector.extract_strided_slice %104 {offsets = [0, 64], sizes = [8, 32], strides = [1, 1]} : vector<8x128xf32> to vector<8x32xf32>
    %108 = vector.extract_strided_slice %104 {offsets = [0, 96], sizes = [8, 32], strides = [1, 1]} : vector<8x128xf32> to vector<8x32xf32>
    %109 = arith.mulf %106, %94 : vector<8x32xf32>
    %110 = arith.mulf %105, %107 : vector<8x32xf32>
    %111 = arith.addf %109, %110 : vector<8x32xf32>
    %112 = math.tanh %111 : vector<8x32xf32>
    %113 = arith.mulf %108, %112 : vector<8x32xf32>
    %c0_64 = arith.constant 0 : index
    %c0_65 = arith.constant 0 : index
    %114 = vector.load %arg19[%c0_64, %c0_65] : memref<8x32xf32, #tpu.memory_space<vmem>>, vector<8x32xf32>
    tpu.vector_store %arg19[%c0_64, %c0_65], %111 {strides = array<i32>} : memref<8x32xf32, #tpu.memory_space<vmem>>, vector<8x32xf32>,
    %c0_66 = arith.constant 0 : index
    %c96 = arith.constant 96 : index
    %115 = vector.load %arg17[%c0_66, %c96] : memref<8x128xf32, #tpu.memory_space<vmem>>, vector<8x32xf32>
    tpu.vector_store %arg17[%c0_66, %c96], %113 {strides = array<i32>} : memref<8x128xf32, #tpu.memory_space<vmem>>, vector<8x32xf32>,
    %c0_67 = arith.constant 0 : index
    %c0_68 = arith.constant 0 : index
    %116 = vector.load %arg17[%c0_67, %c0_68] : memref<8x128xf32, #tpu.memory_space<vmem>>, vector<8x128xf32>
    %cst_69 = arith.constant dense<0.000000e+00> : vector<8x128xf32>
    %117 = tpu.matmul %116, %13, %cst_69 {dimension_numbers = #tpu.dot_dimension_numbers<[1], [0], [0], [1], [0, 0, 1, 1], [], []>} : vector<8x128xf32>, vector<128x128xf32>, vector<8x128xf32> -> vector<8x128xf32>
    %118 = vector.broadcast %14 : vector<1x128xf32> to vector<8x128xf32>
    %119 = arith.addf %117, %118 : vector<8x128xf32>
    %cst_70 = arith.constant dense<0.000000e+00> : vector<8x128xf32>
    %120 = tpu.matmul %83, %15, %cst_70 {dimension_numbers = #tpu.dot_dimension_numbers<[1], [0], [0], [1], [0, 0, 1, 1], [], []>} : vector<8x8xf32>, vector<8x128xf32>, vector<8x128xf32> -> vector<8x128xf32>
    %121 = arith.addf %119, %120 : vector<8x128xf32>
    %122 = arith.index_cast %c0_i32_27 : i32 to index
    %c0_71 = arith.constant 0 : index
    %c0_72 = arith.constant 0 : index
    %123 = vector.load %arg16[%122, %c0_71, %c0_72] : memref<4x8x128xf32, #tpu.memory_space<vmem>>, vector<1x8x128xf32>
    %124 = vector.shape_cast %123 : vector<1x8x128xf32> to vector<8x128xf32>
    %125 = vector.shape_cast %121 : vector<8x128xf32> to vector<1x8x128xf32>
    tpu.vector_store %arg16[%122, %c0_71, %c0_72], %125 {strides = array<i32>} : memref<4x8x128xf32, #tpu.memory_space<vmem>>, vector<1x8x128xf32>,
    %c1_i32 = arith.constant 1 : i32
    %126 = arith.index_cast %c1_i32 : i32 to index
    %c0_73 = arith.constant 0 : index
    %c0_74 = arith.constant 0 : index
    %127 = vector.load %arg2[%126, %c0_73, %c0_74] : memref<4x8x32xf32, #tpu.memory_space<vmem>>, vector<1x8x32xf32>
    %128 = vector.shape_cast %127 : vector<1x8x32xf32> to vector<8x32xf32>
    %c0_75 = arith.constant 0 : index
    %c0_76 = arith.constant 0 : index
    %129 = vector.load %arg17[%c0_75, %c0_76] : memref<8x128xf32, #tpu.memory_space<vmem>>, vector<8x32xf32>
    tpu.vector_store %arg17[%c0_75, %c0_76], %128 {strides = array<i32>} : memref<8x128xf32, #tpu.memory_space<vmem>>, vector<8x32xf32>,
    %c0_77 = arith.constant 0 : index
    %c0_78 = arith.constant 0 : index
    %130 = vector.load %arg17[%c0_77, %c0_78] : memref<8x128xf32, #tpu.memory_space<vmem>>, vector<8x128xf32>
    %c0_79 = arith.constant 0 : index
    %c0_80 = arith.constant 0 : index
    %131 = vector.load %arg18[%c0_79, %c0_80] : memref<8x32xf32, #tpu.memory_space<vmem>>, vector<8x32xf32>
    %cst_81 = arith.constant dense<0.000000e+00> : vector<8x128xf32>
    %132 = tpu.matmul %130, %6, %cst_81 {dimension_numbers = #tpu.dot_dimension_numbers<[1], [0], [0], [1], [0, 0, 1, 1], [], []>} : vector<8x128xf32>, vector<128x128xf32>, vector<8x128xf32> -> vector<8x128xf32>
    %133 = vector.broadcast %7 : vector<1x128xf32> to vector<8x128xf32>
    %134 = arith.addf %132, %133 : vector<8x128xf32>
    %135 = math.tanh %134 : vector<8x128xf32>
    %136 = arith.negf %134 : vector<8x128xf32>
    %137 = math.exp %136 : vector<8x128xf32>
    %cst_82 = arith.constant 1.000000e+00 : f32
    %138 = vector.broadcast %cst_82 : f32 to vector<8x128xf32>
    %139 = arith.addf %138, %137 : vector<8x128xf32>
    %140 = arith.divf %138, %139 : vector<8x128xf32>
    %141 = arith.select %21, %135, %140 : vector<8x128xi1>, vector<8x128xf32>
    %142 = vector.extract_strided_slice %141 {offsets = [0, 0], sizes = [8, 32], strides = [1, 1]} : vector<8x128xf32> to vector<8x32xf32>
    %143 = vector.extract_strided_slice %141 {offsets = [0, 32], sizes = [8, 32], strides = [1, 1]} : vector<8x128xf32> to vector<8x32xf32>
    %144 = vector.extract_strided_slice %141 {offsets = [0, 64], sizes = [8, 32], strides = [1, 1]} : vector<8x128xf32> to vector<8x32xf32>
    %145 = vector.extract_strided_slice %141 {offsets = [0, 96], sizes = [8, 32], strides = [1, 1]} : vector<8x128xf32> to vector<8x32xf32>
    %146 = arith.mulf %143, %131 : vector<8x32xf32>
    %147 = arith.mulf %142, %144 : vector<8x32xf32>
    %148 = arith.addf %146, %147 : vector<8x32xf32>
    %149 = math.tanh %148 : vector<8x32xf32>
    %150 = arith.mulf %145, %149 : vector<8x32xf32>
    %c0_83 = arith.constant 0 : index
    %c0_84 = arith.constant 0 : index
    %151 = vector.load %arg18[%c0_83, %c0_84] : memref<8x32xf32, #tpu.memory_space<vmem>>, vector<8x32xf32>
    tpu.vector_store %arg18[%c0_83, %c0_84], %148 {strides = array<i32>} : memref<8x32xf32, #tpu.memory_space<vmem>>, vector<8x32xf32>,
    %c0_85 = arith.constant 0 : index
    %c64_86 = arith.constant 64 : index
    %152 = vector.load %arg17[%c0_85, %c64_86] : memref<8x128xf32, #tpu.memory_space<vmem>>, vector<8x32xf32>
    tpu.vector_store %arg17[%c0_85, %c64_86], %150 {strides = array<i32>} : memref<8x128xf32, #tpu.memory_space<vmem>>, vector<8x32xf32>,
    %c0_87 = arith.constant 0 : index
    %c0_88 = arith.constant 0 : index
    %153 = vector.load %arg20[%c0_87, %c0_88] : memref<8x16xf32, #tpu.memory_space<vmem>>, vector<8x16xf32>
    %cst_89 = arith.constant dense<0.000000e+00> : vector<8x128xf32>
    %154 = tpu.matmul %153, %11, %cst_89 {dimension_numbers = #tpu.dot_dimension_numbers<[1], [0], [0], [1], [0, 0, 1, 1], [], []>} : vector<8x16xf32>, vector<16x128xf32>, vector<8x128xf32> -> vector<8x128xf32>
    %cst_90 = arith.constant dense<0.000000e+00> : vector<8x128xf32>
    %155 = tpu.matmul %150, %10, %cst_90 {dimension_numbers = #tpu.dot_dimension_numbers<[1], [0], [0], [1], [0, 0, 1, 1], [], []>} : vector<8x32xf32>, vector<32x128xf32>, vector<8x128xf32> -> vector<8x128xf32>
    %156 = arith.addf %155, %154 : vector<8x128xf32>
    %157 = arith.addf %156, %4 : vector<8x128xf32>
    %158 = math.tanh %157 : vector<8x128xf32>
    %cst_91 = arith.constant dense<0.000000e+00> : vector<8x8xf32>
    %159 = tpu.matmul %158, %12, %cst_91 {dimension_numbers = #tpu.dot_dimension_numbers<[1], [0], [0], [1], [0, 0, 1, 1], [], []>} : vector<8x128xf32>, vector<128x8xf32>, vector<8x8xf32> -> vector<8x8xf32>
    %cst_92 = arith.constant 5.000000e-01 : f32
    %160 = vector.broadcast %cst_92 : f32 to vector<8x8xf32>
    %161 = arith.cmpf ogt, %5, %160 : vector<8x8xf32>
    %cst_93 = arith.constant -1.000000e+20 : f32
    %162 = vector.broadcast %cst_93 : f32 to vector<8x8xf32>
    %163 = arith.select %161, %162, %159 : vector<8x8xi1>, vector<8x8xf32>
    %c0_94 = arith.constant 0 : index
    %c0_95 = arith.constant 0 : index
    %164 = vector.load %arg21[%c0_94, %c0_95] : memref<8x8xf32, #tpu.memory_space<vmem>>, vector<8x8xf32>
    %cst_96 = arith.constant -1.000000e+20 : f32
    %165 = vector.broadcast %cst_96 : f32 to vector<8x1xf32>
    %166 = vector.extract_strided_slice %164 {offsets = [0, 0], sizes = [8, 7], strides = [1, 1]} : vector<8x8xf32> to vector<8x7xf32>
    %167 = tpu.concatenate %165, %166 in 1 : vector<8x1xf32>, vector<8x7xf32> -> vector<8x8xf32>
    %168 = arith.maximumf %164, %167 : vector<8x8xf32>
    %169 = arith.subf %164, %168 : vector<8x8xf32>
    %170 = math.exp %169 : vector<8x8xf32>
    %171 = arith.subf %167, %168 : vector<8x8xf32>
    %172 = math.exp %171 : vector<8x8xf32>
    %173 = arith.addf %170, %172 : vector<8x8xf32>
    %174 = math.log %173 : vector<8x8xf32>
    %175 = arith.addf %168, %174 : vector<8x8xf32>
    %176 = arith.addf %175, %163 : vector<8x8xf32>
    %c0_97 = arith.constant 0 : index
    %c0_98 = arith.constant 0 : index
    %177 = vector.load %arg21[%c0_97, %c0_98] : memref<8x8xf32, #tpu.memory_space<vmem>>, vector<8x8xf32>
    tpu.vector_store %arg21[%c0_97, %c0_98], %176 {strides = array<i32>} : memref<8x8xf32, #tpu.memory_space<vmem>>, vector<8x8xf32>,
    %cst_99 = arith.constant dense<0xFF800000> : vector<8xf32>
    %178 = vector.multi_reduction <maximumf>, %176, %cst_99 [1] : vector<8x8xf32> to vector<8xf32>
    %179 = vector.shape_cast %178 : vector<8xf32> to vector<8x1xf32>
    %180 = vector.broadcast %179 : vector<8x1xf32> to vector<8x8xf32>
    %181 = arith.subf %176, %180 : vector<8x8xf32>
    %182 = math.exp %181 : vector<8x8xf32>
    %cst_100 = arith.constant dense<0.000000e+00> : vector<8xf32>
    %183 = vector.multi_reduction <add>, %182, %cst_100 [1] : vector<8x8xf32> to vector<8xf32>
    %184 = vector.shape_cast %183 : vector<8xf32> to vector<8x1xf32>
    %185 = tpu.reciprocal %184 {approx = true} : vector<8x1xf32> -> vector<8x1xf32>
    %186 = vector.broadcast %185 : vector<8x1xf32> to vector<8x8xf32>
    %187 = arith.mulf %182, %186 : vector<8x8xf32>
    %188 = vector.shape_cast %187 : vector<8x8xf32> to vector<8x8x1xf32>
    %189 = vector.broadcast %188 : vector<8x8x1xf32> to vector<8x8x32xf32>
    %190 = arith.mulf %189, %3 : vector<8x8x32xf32>
    %cst_101 = arith.constant dense<0.000000e+00> : vector<8x32xf32>
    %191 = vector.multi_reduction <add>, %190, %cst_101 [1] : vector<8x8x32xf32> to vector<8x32xf32>
    %192 = vector.extract_strided_slice %153 {offsets = [0, 8], sizes = [8, 8], strides = [1, 1]} : vector<8x16xf32> to vector<8x8xf32>
    %193 = arith.addf %192, %187 : vector<8x8xf32>
    %194 = tpu.concatenate %187, %193 in 1 : vector<8x8xf32>, vector<8x8xf32> -> vector<8x16xf32>
    %c0_102 = arith.constant 0 : index
    %c0_103 = arith.constant 0 : index
    %195 = vector.load %arg20[%c0_102, %c0_103] : memref<8x16xf32, #tpu.memory_space<vmem>>, vector<8x16xf32>
    tpu.vector_store %arg20[%c0_102, %c0_103], %194 {strides = array<i32>} : memref<8x16xf32, #tpu.memory_space<vmem>>, vector<8x16xf32>,
    %c0_104 = arith.constant 0 : index
    %c32_105 = arith.constant 32 : index
    %196 = vector.load %arg17[%c0_104, %c32_105] : memref<8x128xf32, #tpu.memory_space<vmem>>, vector<8x32xf32>
    tpu.vector_store %arg17[%c0_104, %c32_105], %191 {strides = array<i32>} : memref<8x128xf32, #tpu.memory_space<vmem>>, vector<8x32xf32>,
    %c0_106 = arith.constant 0 : index
    %c0_107 = arith.constant 0 : index
    %197 = vector.load %arg17[%c0_106, %c0_107] : memref<8x128xf32, #tpu.memory_space<vmem>>, vector<8x128xf32>
    %c0_108 = arith.constant 0 : index
    %c0_109 = arith.constant 0 : index
    %198 = vector.load %arg19[%c0_108, %c0_109] : memref<8x32xf32, #tpu.memory_space<vmem>>, vector<8x32xf32>
    %cst_110 = arith.constant dense<0.000000e+00> : vector<8x128xf32>
    %199 = tpu.matmul %197, %8, %cst_110 {dimension_numbers = #tpu.dot_dimension_numbers<[1], [0], [0], [1], [0, 0, 1, 1], [], []>} : vector<8x128xf32>, vector<128x128xf32>, vector<8x128xf32> -> vector<8x128xf32>
    %200 = vector.broadcast %9 : vector<1x128xf32> to vector<8x128xf32>
    %201 = arith.addf %199, %200 : vector<8x128xf32>
    %202 = math.tanh %201 : vector<8x128xf32>
    %203 = arith.negf %201 : vector<8x128xf32>
    %204 = math.exp %203 : vector<8x128xf32>
    %cst_111 = arith.constant 1.000000e+00 : f32
    %205 = vector.broadcast %cst_111 : f32 to vector<8x128xf32>
    %206 = arith.addf %205, %204 : vector<8x128xf32>
    %207 = arith.divf %205, %206 : vector<8x128xf32>
    %208 = arith.select %21, %202, %207 : vector<8x128xi1>, vector<8x128xf32>
    %209 = vector.extract_strided_slice %208 {offsets = [0, 0], sizes = [8, 32], strides = [1, 1]} : vector<8x128xf32> to vector<8x32xf32>
    %210 = vector.extract_strided_slice %208 {offsets = [0, 32], sizes = [8, 32], strides = [1, 1]} : vector<8x128xf32> to vector<8x32xf32>
    %211 = vector.extract_strided_slice %208 {offsets = [0, 64], sizes = [8, 32], strides = [1, 1]} : vector<8x128xf32> to vector<8x32xf32>
    %212 = vector.extract_strided_slice %208 {offsets = [0, 96], sizes = [8, 32], strides = [1, 1]} : vector<8x128xf32> to vector<8x32xf32>
    %213 = arith.mulf %210, %198 : vector<8x32xf32>
    %214 = arith.mulf %209, %211 : vector<8x32xf32>
    %215 = arith.addf %213, %214 : vector<8x32xf32>
    %216 = math.tanh %215 : vector<8x32xf32>
    %217 = arith.mulf %212, %216 : vector<8x32xf32>
    %c0_112 = arith.constant 0 : index
    %c0_113 = arith.constant 0 : index
    %218 = vector.load %arg19[%c0_112, %c0_113] : memref<8x32xf32, #tpu.memory_space<vmem>>, vector<8x32xf32>
    tpu.vector_store %arg19[%c0_112, %c0_113], %215 {strides = array<i32>} : memref<8x32xf32, #tpu.memory_space<vmem>>, vector<8x32xf32>,
    %c0_114 = arith.constant 0 : index
    %c96_115 = arith.constant 96 : index
    %219 = vector.load %arg17[%c0_114, %c96_115] : memref<8x128xf32, #tpu.memory_space<vmem>>, vector<8x32xf32>
    tpu.vector_store %arg17[%c0_114, %c96_115], %217 {strides = array<i32>} : memref<8x128xf32, #tpu.memory_space<vmem>>, vector<8x32xf32>,
    %c0_116 = arith.constant 0 : index
    %c0_117 = arith.constant 0 : index
    %220 = vector.load %arg17[%c0_116, %c0_117] : memref<8x128xf32, #tpu.memory_space<vmem>>, vector<8x128xf32>
    %cst_118 = arith.constant dense<0.000000e+00> : vector<8x128xf32>
    %221 = tpu.matmul %220, %13, %cst_118 {dimension_numbers = #tpu.dot_dimension_numbers<[1], [0], [0], [1], [0, 0, 1, 1], [], []>} : vector<8x128xf32>, vector<128x128xf32>, vector<8x128xf32> -> vector<8x128xf32>
    %222 = vector.broadcast %14 : vector<1x128xf32> to vector<8x128xf32>
    %223 = arith.addf %221, %222 : vector<8x128xf32>
    %cst_119 = arith.constant dense<0.000000e+00> : vector<8x128xf32>
    %224 = tpu.matmul %187, %15, %cst_119 {dimension_numbers = #tpu.dot_dimension_numbers<[1], [0], [0], [1], [0, 0, 1, 1], [], []>} : vector<8x8xf32>, vector<8x128xf32>, vector<8x128xf32> -> vector<8x128xf32>
    %225 = arith.addf %223, %224 : vector<8x128xf32>
    %226 = arith.index_cast %c1_i32 : i32 to index
    %c0_120 = arith.constant 0 : index
    %c0_121 = arith.constant 0 : index
    %227 = vector.load %arg16[%226, %c0_120, %c0_121] : memref<4x8x128xf32, #tpu.memory_space<vmem>>, vector<1x8x128xf32>
    %228 = vector.shape_cast %227 : vector<1x8x128xf32> to vector<8x128xf32>
    %229 = vector.shape_cast %225 : vector<8x128xf32> to vector<1x8x128xf32>
    tpu.vector_store %arg16[%226, %c0_120, %c0_121], %229 {strides = array<i32>} : memref<4x8x128xf32, #tpu.memory_space<vmem>>, vector<1x8x128xf32>,
    %c2_i32 = arith.constant 2 : i32
    %230 = arith.index_cast %c2_i32 : i32 to index
    %c0_122 = arith.constant 0 : index
    %c0_123 = arith.constant 0 : index
    %231 = vector.load %arg2[%230, %c0_122, %c0_123] : memref<4x8x32xf32, #tpu.memory_space<vmem>>, vector<1x8x32xf32>
    %232 = vector.shape_cast %231 : vector<1x8x32xf32> to vector<8x32xf32>
    %c0_124 = arith.constant 0 : index
    %c0_125 = arith.constant 0 : index
    %233 = vector.load %arg17[%c0_124, %c0_125] : memref<8x128xf32, #tpu.memory_space<vmem>>, vector<8x32xf32>
    tpu.vector_store %arg17[%c0_124, %c0_125], %232 {strides = array<i32>} : memref<8x128xf32, #tpu.memory_space<vmem>>, vector<8x32xf32>,
    %c0_126 = arith.constant 0 : index
    %c0_127 = arith.constant 0 : index
    %234 = vector.load %arg17[%c0_126, %c0_127] : memref<8x128xf32, #tpu.memory_space<vmem>>, vector<8x128xf32>
    %c0_128 = arith.constant 0 : index
    %c0_129 = arith.constant 0 : index
    %235 = vector.load %arg18[%c0_128, %c0_129] : memref<8x32xf32, #tpu.memory_space<vmem>>, vector<8x32xf32>
    %cst_130 = arith.constant dense<0.000000e+00> : vector<8x128xf32>
    %236 = tpu.matmul %234, %6, %cst_130 {dimension_numbers = #tpu.dot_dimension_numbers<[1], [0], [0], [1], [0, 0, 1, 1], [], []>} : vector<8x128xf32>, vector<128x128xf32>, vector<8x128xf32> -> vector<8x128xf32>
    %237 = vector.broadcast %7 : vector<1x128xf32> to vector<8x128xf32>
    %238 = arith.addf %236, %237 : vector<8x128xf32>
    %239 = math.tanh %238 : vector<8x128xf32>
    %240 = arith.negf %238 : vector<8x128xf32>
    %241 = math.exp %240 : vector<8x128xf32>
    %cst_131 = arith.constant 1.000000e+00 : f32
    %242 = vector.broadcast %cst_131 : f32 to vector<8x128xf32>
    %243 = arith.addf %242, %241 : vector<8x128xf32>
    %244 = arith.divf %242, %243 : vector<8x128xf32>
    %245 = arith.select %21, %239, %244 : vector<8x128xi1>, vector<8x128xf32>
    %246 = vector.extract_strided_slice %245 {offsets = [0, 0], sizes = [8, 32], strides = [1, 1]} : vector<8x128xf32> to vector<8x32xf32>
    %247 = vector.extract_strided_slice %245 {offsets = [0, 32], sizes = [8, 32], strides = [1, 1]} : vector<8x128xf32> to vector<8x32xf32>
    %248 = vector.extract_strided_slice %245 {offsets = [0, 64], sizes = [8, 32], strides = [1, 1]} : vector<8x128xf32> to vector<8x32xf32>
    %249 = vector.extract_strided_slice %245 {offsets = [0, 96], sizes = [8, 32], strides = [1, 1]} : vector<8x128xf32> to vector<8x32xf32>
    %250 = arith.mulf %247, %235 : vector<8x32xf32>
    %251 = arith.mulf %246, %248 : vector<8x32xf32>
    %252 = arith.addf %250, %251 : vector<8x32xf32>
    %253 = math.tanh %252 : vector<8x32xf32>
    %254 = arith.mulf %249, %253 : vector<8x32xf32>
    %c0_132 = arith.constant 0 : index
    %c0_133 = arith.constant 0 : index
    %255 = vector.load %arg18[%c0_132, %c0_133] : memref<8x32xf32, #tpu.memory_space<vmem>>, vector<8x32xf32>
    tpu.vector_store %arg18[%c0_132, %c0_133], %252 {strides = array<i32>} : memref<8x32xf32, #tpu.memory_space<vmem>>, vector<8x32xf32>,
    %c0_134 = arith.constant 0 : index
    %c64_135 = arith.constant 64 : index
    %256 = vector.load %arg17[%c0_134, %c64_135] : memref<8x128xf32, #tpu.memory_space<vmem>>, vector<8x32xf32>
    tpu.vector_store %arg17[%c0_134, %c64_135], %254 {strides = array<i32>} : memref<8x128xf32, #tpu.memory_space<vmem>>, vector<8x32xf32>,
    %c0_136 = arith.constant 0 : index
    %c0_137 = arith.constant 0 : index
    %257 = vector.load %arg20[%c0_136, %c0_137] : memref<8x16xf32, #tpu.memory_space<vmem>>, vector<8x16xf32>
    %cst_138 = arith.constant dense<0.000000e+00> : vector<8x128xf32>
    %258 = tpu.matmul %257, %11, %cst_138 {dimension_numbers = #tpu.dot_dimension_numbers<[1], [0], [0], [1], [0, 0, 1, 1], [], []>} : vector<8x16xf32>, vector<16x128xf32>, vector<8x128xf32> -> vector<8x128xf32>
    %cst_139 = arith.constant dense<0.000000e+00> : vector<8x128xf32>
    %259 = tpu.matmul %254, %10, %cst_139 {dimension_numbers = #tpu.dot_dimension_numbers<[1], [0], [0], [1], [0, 0, 1, 1], [], []>} : vector<8x32xf32>, vector<32x128xf32>, vector<8x128xf32> -> vector<8x128xf32>
    %260 = arith.addf %259, %258 : vector<8x128xf32>
    %261 = arith.addf %260, %4 : vector<8x128xf32>
    %262 = math.tanh %261 : vector<8x128xf32>
    %cst_140 = arith.constant dense<0.000000e+00> : vector<8x8xf32>
    %263 = tpu.matmul %262, %12, %cst_140 {dimension_numbers = #tpu.dot_dimension_numbers<[1], [0], [0], [1], [0, 0, 1, 1], [], []>} : vector<8x128xf32>, vector<128x8xf32>, vector<8x8xf32> -> vector<8x8xf32>
    %cst_141 = arith.constant 5.000000e-01 : f32
    %264 = vector.broadcast %cst_141 : f32 to vector<8x8xf32>
    %265 = arith.cmpf ogt, %5, %264 : vector<8x8xf32>
    %cst_142 = arith.constant -1.000000e+20 : f32
    %266 = vector.broadcast %cst_142 : f32 to vector<8x8xf32>
    %267 = arith.select %265, %266, %263 : vector<8x8xi1>, vector<8x8xf32>
    %c0_143 = arith.constant 0 : index
    %c0_144 = arith.constant 0 : index
    %268 = vector.load %arg21[%c0_143, %c0_144] : memref<8x8xf32, #tpu.memory_space<vmem>>, vector<8x8xf32>
    %cst_145 = arith.constant -1.000000e+20 : f32
    %269 = vector.broadcast %cst_145 : f32 to vector<8x1xf32>
    %270 = vector.extract_strided_slice %268 {offsets = [0, 0], sizes = [8, 7], strides = [1, 1]} : vector<8x8xf32> to vector<8x7xf32>
    %271 = tpu.concatenate %269, %270 in 1 : vector<8x1xf32>, vector<8x7xf32> -> vector<8x8xf32>
    %272 = arith.maximumf %268, %271 : vector<8x8xf32>
    %273 = arith.subf %268, %272 : vector<8x8xf32>
    %274 = math.exp %273 : vector<8x8xf32>
    %275 = arith.subf %271, %272 : vector<8x8xf32>
    %276 = math.exp %275 : vector<8x8xf32>
    %277 = arith.addf %274, %276 : vector<8x8xf32>
    %278 = math.log %277 : vector<8x8xf32>
    %279 = arith.addf %272, %278 : vector<8x8xf32>
    %280 = arith.addf %279, %267 : vector<8x8xf32>
    %c0_146 = arith.constant 0 : index
    %c0_147 = arith.constant 0 : index
    %281 = vector.load %arg21[%c0_146, %c0_147] : memref<8x8xf32, #tpu.memory_space<vmem>>, vector<8x8xf32>
    tpu.vector_store %arg21[%c0_146, %c0_147], %280 {strides = array<i32>} : memref<8x8xf32, #tpu.memory_space<vmem>>, vector<8x8xf32>,
    %cst_148 = arith.constant dense<0xFF800000> : vector<8xf32>
    %282 = vector.multi_reduction <maximumf>, %280, %cst_148 [1] : vector<8x8xf32> to vector<8xf32>
    %283 = vector.shape_cast %282 : vector<8xf32> to vector<8x1xf32>
    %284 = vector.broadcast %283 : vector<8x1xf32> to vector<8x8xf32>
    %285 = arith.subf %280, %284 : vector<8x8xf32>
    %286 = math.exp %285 : vector<8x8xf32>
    %cst_149 = arith.constant dense<0.000000e+00> : vector<8xf32>
    %287 = vector.multi_reduction <add>, %286, %cst_149 [1] : vector<8x8xf32> to vector<8xf32>
    %288 = vector.shape_cast %287 : vector<8xf32> to vector<8x1xf32>
    %289 = tpu.reciprocal %288 {approx = true} : vector<8x1xf32> -> vector<8x1xf32>
    %290 = vector.broadcast %289 : vector<8x1xf32> to vector<8x8xf32>
    %291 = arith.mulf %286, %290 : vector<8x8xf32>
    %292 = vector.shape_cast %291 : vector<8x8xf32> to vector<8x8x1xf32>
    %293 = vector.broadcast %292 : vector<8x8x1xf32> to vector<8x8x32xf32>
    %294 = arith.mulf %293, %3 : vector<8x8x32xf32>
    %cst_150 = arith.constant dense<0.000000e+00> : vector<8x32xf32>
    %295 = vector.multi_reduction <add>, %294, %cst_150 [1] : vector<8x8x32xf32> to vector<8x32xf32>
    %296 = vector.extract_strided_slice %257 {offsets = [0, 8], sizes = [8, 8], strides = [1, 1]} : vector<8x16xf32> to vector<8x8xf32>
    %297 = arith.addf %296, %291 : vector<8x8xf32>
    %298 = tpu.concatenate %291, %297 in 1 : vector<8x8xf32>, vector<8x8xf32> -> vector<8x16xf32>
    %c0_151 = arith.constant 0 : index
    %c0_152 = arith.constant 0 : index
    %299 = vector.load %arg20[%c0_151, %c0_152] : memref<8x16xf32, #tpu.memory_space<vmem>>, vector<8x16xf32>
    tpu.vector_store %arg20[%c0_151, %c0_152], %298 {strides = array<i32>} : memref<8x16xf32, #tpu.memory_space<vmem>>, vector<8x16xf32>,
    %c0_153 = arith.constant 0 : index
    %c32_154 = arith.constant 32 : index
    %300 = vector.load %arg17[%c0_153, %c32_154] : memref<8x128xf32, #tpu.memory_space<vmem>>, vector<8x32xf32>
    tpu.vector_store %arg17[%c0_153, %c32_154], %295 {strides = array<i32>} : memref<8x128xf32, #tpu.memory_space<vmem>>, vector<8x32xf32>,
    %c0_155 = arith.constant 0 : index
    %c0_156 = arith.constant 0 : index
    %301 = vector.load %arg17[%c0_155, %c0_156] : memref<8x128xf32, #tpu.memory_space<vmem>>, vector<8x128xf32>
    %c0_157 = arith.constant 0 : index
    %c0_158 = arith.constant 0 : index
    %302 = vector.load %arg19[%c0_157, %c0_158] : memref<8x32xf32, #tpu.memory_space<vmem>>, vector<8x32xf32>
    %cst_159 = arith.constant dense<0.000000e+00> : vector<8x128xf32>
    %303 = tpu.matmul %301, %8, %cst_159 {dimension_numbers = #tpu.dot_dimension_numbers<[1], [0], [0], [1], [0, 0, 1, 1], [], []>} : vector<8x128xf32>, vector<128x128xf32>, vector<8x128xf32> -> vector<8x128xf32>
    %304 = vector.broadcast %9 : vector<1x128xf32> to vector<8x128xf32>
    %305 = arith.addf %303, %304 : vector<8x128xf32>
    %306 = math.tanh %305 : vector<8x128xf32>
    %307 = arith.negf %305 : vector<8x128xf32>
    %308 = math.exp %307 : vector<8x128xf32>
    %cst_160 = arith.constant 1.000000e+00 : f32
    %309 = vector.broadcast %cst_160 : f32 to vector<8x128xf32>
    %310 = arith.addf %309, %308 : vector<8x128xf32>
    %311 = arith.divf %309, %310 : vector<8x128xf32>
    %312 = arith.select %21, %306, %311 : vector<8x128xi1>, vector<8x128xf32>
    %313 = vector.extract_strided_slice %312 {offsets = [0, 0], sizes = [8, 32], strides = [1, 1]} : vector<8x128xf32> to vector<8x32xf32>
    %314 = vector.extract_strided_slice %312 {offsets = [0, 32], sizes = [8, 32], strides = [1, 1]} : vector<8x128xf32> to vector<8x32xf32>
    %315 = vector.extract_strided_slice %312 {offsets = [0, 64], sizes = [8, 32], strides = [1, 1]} : vector<8x128xf32> to vector<8x32xf32>
    %316 = vector.extract_strided_slice %312 {offsets = [0, 96], sizes = [8, 32], strides = [1, 1]} : vector<8x128xf32> to vector<8x32xf32>
    %317 = arith.mulf %314, %302 : vector<8x32xf32>
    %318 = arith.mulf %313, %315 : vector<8x32xf32>
    %319 = arith.addf %317, %318 : vector<8x32xf32>
    %320 = math.tanh %319 : vector<8x32xf32>
    %321 = arith.mulf %316, %320 : vector<8x32xf32>
    %c0_161 = arith.constant 0 : index
    %c0_162 = arith.constant 0 : index
    %322 = vector.load %arg19[%c0_161, %c0_162] : memref<8x32xf32, #tpu.memory_space<vmem>>, vector<8x32xf32>
    tpu.vector_store %arg19[%c0_161, %c0_162], %319 {strides = array<i32>} : memref<8x32xf32, #tpu.memory_space<vmem>>, vector<8x32xf32>,
    %c0_163 = arith.constant 0 : index
    %c96_164 = arith.constant 96 : index
    %323 = vector.load %arg17[%c0_163, %c96_164] : memref<8x128xf32, #tpu.memory_space<vmem>>, vector<8x32xf32>
    tpu.vector_store %arg17[%c0_163, %c96_164], %321 {strides = array<i32>} : memref<8x128xf32, #tpu.memory_space<vmem>>, vector<8x32xf32>,
    %c0_165 = arith.constant 0 : index
    %c0_166 = arith.constant 0 : index
    %324 = vector.load %arg17[%c0_165, %c0_166] : memref<8x128xf32, #tpu.memory_space<vmem>>, vector<8x128xf32>
    %cst_167 = arith.constant dense<0.000000e+00> : vector<8x128xf32>
    %325 = tpu.matmul %324, %13, %cst_167 {dimension_numbers = #tpu.dot_dimension_numbers<[1], [0], [0], [1], [0, 0, 1, 1], [], []>} : vector<8x128xf32>, vector<128x128xf32>, vector<8x128xf32> -> vector<8x128xf32>
    %326 = vector.broadcast %14 : vector<1x128xf32> to vector<8x128xf32>
    %327 = arith.addf %325, %326 : vector<8x128xf32>
    %cst_168 = arith.constant dense<0.000000e+00> : vector<8x128xf32>
    %328 = tpu.matmul %291, %15, %cst_168 {dimension_numbers = #tpu.dot_dimension_numbers<[1], [0], [0], [1], [0, 0, 1, 1], [], []>} : vector<8x8xf32>, vector<8x128xf32>, vector<8x128xf32> -> vector<8x128xf32>
    %329 = arith.addf %327, %328 : vector<8x128xf32>
    %330 = arith.index_cast %c2_i32 : i32 to index
    %c0_169 = arith.constant 0 : index
    %c0_170 = arith.constant 0 : index
    %331 = vector.load %arg16[%330, %c0_169, %c0_170] : memref<4x8x128xf32, #tpu.memory_space<vmem>>, vector<1x8x128xf32>
    %332 = vector.shape_cast %331 : vector<1x8x128xf32> to vector<8x128xf32>
    %333 = vector.shape_cast %329 : vector<8x128xf32> to vector<1x8x128xf32>
    tpu.vector_store %arg16[%330, %c0_169, %c0_170], %333 {strides = array<i32>} : memref<4x8x128xf32, #tpu.memory_space<vmem>>, vector<1x8x128xf32>,
    %c3_i32 = arith.constant 3 : i32
    %334 = arith.index_cast %c3_i32 : i32 to index
    %c0_171 = arith.constant 0 : index
    %c0_172 = arith.constant 0 : index
    %335 = vector.load %arg2[%334, %c0_171, %c0_172] : memref<4x8x32xf32, #tpu.memory_space<vmem>>, vector<1x8x32xf32>
    %336 = vector.shape_cast %335 : vector<1x8x32xf32> to vector<8x32xf32>
    %c0_173 = arith.constant 0 : index
    %c0_174 = arith.constant 0 : index
    %337 = vector.load %arg17[%c0_173, %c0_174] : memref<8x128xf32, #tpu.memory_space<vmem>>, vector<8x32xf32>
    tpu.vector_store %arg17[%c0_173, %c0_174], %336 {strides = array<i32>} : memref<8x128xf32, #tpu.memory_space<vmem>>, vector<8x32xf32>,
    %c0_175 = arith.constant 0 : index
    %c0_176 = arith.constant 0 : index
    %338 = vector.load %arg17[%c0_175, %c0_176] : memref<8x128xf32, #tpu.memory_space<vmem>>, vector<8x128xf32>
    %c0_177 = arith.constant 0 : index
    %c0_178 = arith.constant 0 : index
    %339 = vector.load %arg18[%c0_177, %c0_178] : memref<8x32xf32, #tpu.memory_space<vmem>>, vector<8x32xf32>
    %cst_179 = arith.constant dense<0.000000e+00> : vector<8x128xf32>
    %340 = tpu.matmul %338, %6, %cst_179 {dimension_numbers = #tpu.dot_dimension_numbers<[1], [0], [0], [1], [0, 0, 1, 1], [], []>} : vector<8x128xf32>, vector<128x128xf32>, vector<8x128xf32> -> vector<8x128xf32>
    %341 = vector.broadcast %7 : vector<1x128xf32> to vector<8x128xf32>
    %342 = arith.addf %340, %341 : vector<8x128xf32>
    %343 = math.tanh %342 : vector<8x128xf32>
    %344 = arith.negf %342 : vector<8x128xf32>
    %345 = math.exp %344 : vector<8x128xf32>
    %cst_180 = arith.constant 1.000000e+00 : f32
    %346 = vector.broadcast %cst_180 : f32 to vector<8x128xf32>
    %347 = arith.addf %346, %345 : vector<8x128xf32>
    %348 = arith.divf %346, %347 : vector<8x128xf32>
    %349 = arith.select %21, %343, %348 : vector<8x128xi1>, vector<8x128xf32>
    %350 = vector.extract_strided_slice %349 {offsets = [0, 0], sizes = [8, 32], strides = [1, 1]} : vector<8x128xf32> to vector<8x32xf32>
    %351 = vector.extract_strided_slice %349 {offsets = [0, 32], sizes = [8, 32], strides = [1, 1]} : vector<8x128xf32> to vector<8x32xf32>
    %352 = vector.extract_strided_slice %349 {offsets = [0, 64], sizes = [8, 32], strides = [1, 1]} : vector<8x128xf32> to vector<8x32xf32>
    %353 = vector.extract_strided_slice %349 {offsets = [0, 96], sizes = [8, 32], strides = [1, 1]} : vector<8x128xf32> to vector<8x32xf32>
    %354 = arith.mulf %351, %339 : vector<8x32xf32>
    %355 = arith.mulf %350, %352 : vector<8x32xf32>
    %356 = arith.addf %354, %355 : vector<8x32xf32>
    %357 = math.tanh %356 : vector<8x32xf32>
    %358 = arith.mulf %353, %357 : vector<8x32xf32>
    %c0_181 = arith.constant 0 : index
    %c0_182 = arith.constant 0 : index
    %359 = vector.load %arg18[%c0_181, %c0_182] : memref<8x32xf32, #tpu.memory_space<vmem>>, vector<8x32xf32>
    tpu.vector_store %arg18[%c0_181, %c0_182], %356 {strides = array<i32>} : memref<8x32xf32, #tpu.memory_space<vmem>>, vector<8x32xf32>,
    %c0_183 = arith.constant 0 : index
    %c64_184 = arith.constant 64 : index
    %360 = vector.load %arg17[%c0_183, %c64_184] : memref<8x128xf32, #tpu.memory_space<vmem>>, vector<8x32xf32>
    tpu.vector_store %arg17[%c0_183, %c64_184], %358 {strides = array<i32>} : memref<8x128xf32, #tpu.memory_space<vmem>>, vector<8x32xf32>,
    %c0_185 = arith.constant 0 : index
    %c0_186 = arith.constant 0 : index
    %361 = vector.load %arg20[%c0_185, %c0_186] : memref<8x16xf32, #tpu.memory_space<vmem>>, vector<8x16xf32>
    %cst_187 = arith.constant dense<0.000000e+00> : vector<8x128xf32>
    %362 = tpu.matmul %361, %11, %cst_187 {dimension_numbers = #tpu.dot_dimension_numbers<[1], [0], [0], [1], [0, 0, 1, 1], [], []>} : vector<8x16xf32>, vector<16x128xf32>, vector<8x128xf32> -> vector<8x128xf32>
    %cst_188 = arith.constant dense<0.000000e+00> : vector<8x128xf32>
    %363 = tpu.matmul %358, %10, %cst_188 {dimension_numbers = #tpu.dot_dimension_numbers<[1], [0], [0], [1], [0, 0, 1, 1], [], []>} : vector<8x32xf32>, vector<32x128xf32>, vector<8x128xf32> -> vector<8x128xf32>
    %364 = arith.addf %363, %362 : vector<8x128xf32>
    %365 = arith.addf %364, %4 : vector<8x128xf32>
    %366 = math.tanh %365 : vector<8x128xf32>
    %cst_189 = arith.constant dense<0.000000e+00> : vector<8x8xf32>
    %367 = tpu.matmul %366, %12, %cst_189 {dimension_numbers = #tpu.dot_dimension_numbers<[1], [0], [0], [1], [0, 0, 1, 1], [], []>} : vector<8x128xf32>, vector<128x8xf32>, vector<8x8xf32> -> vector<8x8xf32>
    %cst_190 = arith.constant 5.000000e-01 : f32
    %368 = vector.broadcast %cst_190 : f32 to vector<8x8xf32>
    %369 = arith.cmpf ogt, %5, %368 : vector<8x8xf32>
    %cst_191 = arith.constant -1.000000e+20 : f32
    %370 = vector.broadcast %cst_191 : f32 to vector<8x8xf32>
    %371 = arith.select %369, %370, %367 : vector<8x8xi1>, vector<8x8xf32>
    %c0_192 = arith.constant 0 : index
    %c0_193 = arith.constant 0 : index
    %372 = vector.load %arg21[%c0_192, %c0_193] : memref<8x8xf32, #tpu.memory_space<vmem>>, vector<8x8xf32>
    %cst_194 = arith.constant -1.000000e+20 : f32
    %373 = vector.broadcast %cst_194 : f32 to vector<8x1xf32>
    %374 = vector.extract_strided_slice %372 {offsets = [0, 0], sizes = [8, 7], strides = [1, 1]} : vector<8x8xf32> to vector<8x7xf32>
    %375 = tpu.concatenate %373, %374 in 1 : vector<8x1xf32>, vector<8x7xf32> -> vector<8x8xf32>
    %376 = arith.maximumf %372, %375 : vector<8x8xf32>
    %377 = arith.subf %372, %376 : vector<8x8xf32>
    %378 = math.exp %377 : vector<8x8xf32>
    %379 = arith.subf %375, %376 : vector<8x8xf32>
    %380 = math.exp %379 : vector<8x8xf32>
    %381 = arith.addf %378, %380 : vector<8x8xf32>
    %382 = math.log %381 : vector<8x8xf32>
    %383 = arith.addf %376, %382 : vector<8x8xf32>
    %384 = arith.addf %383, %371 : vector<8x8xf32>
    %c0_195 = arith.constant 0 : index
    %c0_196 = arith.constant 0 : index
    %385 = vector.load %arg21[%c0_195, %c0_196] : memref<8x8xf32, #tpu.memory_space<vmem>>, vector<8x8xf32>
    tpu.vector_store %arg21[%c0_195, %c0_196], %384 {strides = array<i32>} : memref<8x8xf32, #tpu.memory_space<vmem>>, vector<8x8xf32>,
    %cst_197 = arith.constant dense<0xFF800000> : vector<8xf32>
    %386 = vector.multi_reduction <maximumf>, %384, %cst_197 [1] : vector<8x8xf32> to vector<8xf32>
    %387 = vector.shape_cast %386 : vector<8xf32> to vector<8x1xf32>
    %388 = vector.broadcast %387 : vector<8x1xf32> to vector<8x8xf32>
    %389 = arith.subf %384, %388 : vector<8x8xf32>
    %390 = math.exp %389 : vector<8x8xf32>
    %cst_198 = arith.constant dense<0.000000e+00> : vector<8xf32>
    %391 = vector.multi_reduction <add>, %390, %cst_198 [1] : vector<8x8xf32> to vector<8xf32>
    %392 = vector.shape_cast %391 : vector<8xf32> to vector<8x1xf32>
    %393 = tpu.reciprocal %392 {approx = true} : vector<8x1xf32> -> vector<8x1xf32>
    %394 = vector.broadcast %393 : vector<8x1xf32> to vector<8x8xf32>
    %395 = arith.mulf %390, %394 : vector<8x8xf32>
    %396 = vector.shape_cast %395 : vector<8x8xf32> to vector<8x8x1xf32>
    %397 = vector.broadcast %396 : vector<8x8x1xf32> to vector<8x8x32xf32>
    %398 = arith.mulf %397, %3 : vector<8x8x32xf32>
    %cst_199 = arith.constant dense<0.000000e+00> : vector<8x32xf32>
    %399 = vector.multi_reduction <add>, %398, %cst_199 [1] : vector<8x8x32xf32> to vector<8x32xf32>
    %400 = vector.extract_strided_slice %361 {offsets = [0, 8], sizes = [8, 8], strides = [1, 1]} : vector<8x16xf32> to vector<8x8xf32>
    %401 = arith.addf %400, %395 : vector<8x8xf32>
    %402 = tpu.concatenate %395, %401 in 1 : vector<8x8xf32>, vector<8x8xf32> -> vector<8x16xf32>
    %c0_200 = arith.constant 0 : index
    %c0_201 = arith.constant 0 : index
    %403 = vector.load %arg20[%c0_200, %c0_201] : memref<8x16xf32, #tpu.memory_space<vmem>>, vector<8x16xf32>
    tpu.vector_store %arg20[%c0_200, %c0_201], %402 {strides = array<i32>} : memref<8x16xf32, #tpu.memory_space<vmem>>, vector<8x16xf32>,
    %c0_202 = arith.constant 0 : index
    %c32_203 = arith.constant 32 : index
    %404 = vector.load %arg17[%c0_202, %c32_203] : memref<8x128xf32, #tpu.memory_space<vmem>>, vector<8x32xf32>
    tpu.vector_store %arg17[%c0_202, %c32_203], %399 {strides = array<i32>} : memref<8x128xf32, #tpu.memory_space<vmem>>, vector<8x32xf32>,
    %c0_204 = arith.constant 0 : index
    %c0_205 = arith.constant 0 : index
    %405 = vector.load %arg17[%c0_204, %c0_205] : memref<8x128xf32, #tpu.memory_space<vmem>>, vector<8x128xf32>
    %c0_206 = arith.constant 0 : index
    %c0_207 = arith.constant 0 : index
    %406 = vector.load %arg19[%c0_206, %c0_207] : memref<8x32xf32, #tpu.memory_space<vmem>>, vector<8x32xf32>
    %cst_208 = arith.constant dense<0.000000e+00> : vector<8x128xf32>
    %407 = tpu.matmul %405, %8, %cst_208 {dimension_numbers = #tpu.dot_dimension_numbers<[1], [0], [0], [1], [0, 0, 1, 1], [], []>} : vector<8x128xf32>, vector<128x128xf32>, vector<8x128xf32> -> vector<8x128xf32>
    %408 = vector.broadcast %9 : vector<1x128xf32> to vector<8x128xf32>
    %409 = arith.addf %407, %408 : vector<8x128xf32>
    %410 = math.tanh %409 : vector<8x128xf32>
    %411 = arith.negf %409 : vector<8x128xf32>
    %412 = math.exp %411 : vector<8x128xf32>
    %cst_209 = arith.constant 1.000000e+00 : f32
    %413 = vector.broadcast %cst_209 : f32 to vector<8x128xf32>
    %414 = arith.addf %413, %412 : vector<8x128xf32>
    %415 = arith.divf %413, %414 : vector<8x128xf32>
    %416 = arith.select %21, %410, %415 : vector<8x128xi1>, vector<8x128xf32>
    %417 = vector.extract_strided_slice %416 {offsets = [0, 0], sizes = [8, 32], strides = [1, 1]} : vector<8x128xf32> to vector<8x32xf32>
    %418 = vector.extract_strided_slice %416 {offsets = [0, 32], sizes = [8, 32], strides = [1, 1]} : vector<8x128xf32> to vector<8x32xf32>
    %419 = vector.extract_strided_slice %416 {offsets = [0, 64], sizes = [8, 32], strides = [1, 1]} : vector<8x128xf32> to vector<8x32xf32>
    %420 = vector.extract_strided_slice %416 {offsets = [0, 96], sizes = [8, 32], strides = [1, 1]} : vector<8x128xf32> to vector<8x32xf32>
    %421 = arith.mulf %418, %406 : vector<8x32xf32>
    %422 = arith.mulf %417, %419 : vector<8x32xf32>
    %423 = arith.addf %421, %422 : vector<8x32xf32>
    %424 = math.tanh %423 : vector<8x32xf32>
    %425 = arith.mulf %420, %424 : vector<8x32xf32>
    %c0_210 = arith.constant 0 : index
    %c0_211 = arith.constant 0 : index
    %426 = vector.load %arg19[%c0_210, %c0_211] : memref<8x32xf32, #tpu.memory_space<vmem>>, vector<8x32xf32>
    tpu.vector_store %arg19[%c0_210, %c0_211], %423 {strides = array<i32>} : memref<8x32xf32, #tpu.memory_space<vmem>>, vector<8x32xf32>,
    %c0_212 = arith.constant 0 : index
    %c96_213 = arith.constant 96 : index
    %427 = vector.load %arg17[%c0_212, %c96_213] : memref<8x128xf32, #tpu.memory_space<vmem>>, vector<8x32xf32>
    tpu.vector_store %arg17[%c0_212, %c96_213], %425 {strides = array<i32>} : memref<8x128xf32, #tpu.memory_space<vmem>>, vector<8x32xf32>,
    %c0_214 = arith.constant 0 : index
    %c0_215 = arith.constant 0 : index
    %428 = vector.load %arg17[%c0_214, %c0_215] : memref<8x128xf32, #tpu.memory_space<vmem>>, vector<8x128xf32>
    %cst_216 = arith.constant dense<0.000000e+00> : vector<8x128xf32>
    %429 = tpu.matmul %428, %13, %cst_216 {dimension_numbers = #tpu.dot_dimension_numbers<[1], [0], [0], [1], [0, 0, 1, 1], [], []>} : vector<8x128xf32>, vector<128x128xf32>, vector<8x128xf32> -> vector<8x128xf32>
    %430 = vector.broadcast %14 : vector<1x128xf32> to vector<8x128xf32>
    %431 = arith.addf %429, %430 : vector<8x128xf32>
    %cst_217 = arith.constant dense<0.000000e+00> : vector<8x128xf32>
    %432 = tpu.matmul %395, %15, %cst_217 {dimension_numbers = #tpu.dot_dimension_numbers<[1], [0], [0], [1], [0, 0, 1, 1], [], []>} : vector<8x8xf32>, vector<8x128xf32>, vector<8x128xf32> -> vector<8x128xf32>
    %433 = arith.addf %431, %432 : vector<8x128xf32>
    %434 = arith.index_cast %c3_i32 : i32 to index
    %c0_218 = arith.constant 0 : index
    %c0_219 = arith.constant 0 : index
    %435 = vector.load %arg16[%434, %c0_218, %c0_219] : memref<4x8x128xf32, #tpu.memory_space<vmem>>, vector<1x8x128xf32>
    %436 = vector.shape_cast %435 : vector<1x8x128xf32> to vector<8x128xf32>
    %437 = vector.shape_cast %433 : vector<8x128xf32> to vector<1x8x128xf32>
    tpu.vector_store %arg16[%434, %c0_218, %c0_219], %437 {strides = array<i32>} : memref<4x8x128xf32, #tpu.memory_space<vmem>>, vector<1x8x128xf32>,
    %c4_i32 = arith.constant 4 : i32
    return
  }
  func.func @transform_0(%arg0: i32, %arg1: i32) -> (i32, i32, i32) {
    %c0_i32 = arith.constant 0 : i32
    %c0_i32_0 = arith.constant 0 : i32
    return %arg1, %arg0, %c0_i32 : i32, i32, i32
  }
  func.func @transform_1(%arg0: i32, %arg1: i32) -> (i32, i32, i32) {
    %c0_i32 = arith.constant 0 : i32
    %c0_i32_0 = arith.constant 0 : i32
    %c0_i32_1 = arith.constant 0 : i32
    return %arg0, %c0_i32, %c0_i32_0 : i32, i32, i32
  }
  func.func @transform_2(%arg0: i32, %arg1: i32) -> (i32, i32) {
    %c0_i32 = arith.constant 0 : i32
    %c0_i32_0 = arith.constant 0 : i32
    return %arg0, %c0_i32 : i32, i32
  }
  func.func @transform_3(%arg0: i32, %arg1: i32) -> (i32, i32) {
    %c0_i32 = arith.constant 0 : i32
    %c0_i32_0 = arith.constant 0 : i32
    return %arg0, %c0_i32 : i32, i32
  }
  func.func @transform_4(%arg0: i32, %arg1: i32) -> (i32, i32) {
    %c0_i32 = arith.constant 0 : i32
    %c0_i32_0 = arith.constant 0 : i32
    %c0_i32_1 = arith.constant 0 : i32
    return %c0_i32, %c0_i32_0 : i32, i32
  }
  func.func @transform_5(%arg0: i32, %arg1: i32) -> (i32, i32) {
    %c0_i32 = arith.constant 0 : i32
    %c0_i32_0 = arith.constant 0 : i32
    %c0_i32_1 = arith.constant 0 : i32
    return %c0_i32, %c0_i32_0 : i32, i32
  }
  func.func @transform_6(%arg0: i32, %arg1: i32) -> (i32, i32) {
    %c0_i32 = arith.constant 0 : i32
    %c0_i32_0 = arith.constant 0 : i32
    %c0_i32_1 = arith.constant 0 : i32
    return %c0_i32, %c0_i32_0 : i32, i32
  }
  func.func @transform_7(%arg0: i32, %arg1: i32) -> (i32, i32) {
    %c0_i32 = arith.constant 0 : i32
    %c0_i32_0 = arith.constant 0 : i32
    %c0_i32_1 = arith.constant 0 : i32
    return %c0_i32, %c0_i32_0 : i32, i32
  }
  func.func @transform_8(%arg0: i32, %arg1: i32) -> (i32, i32) {
    %c0_i32 = arith.constant 0 : i32
    %c0_i32_0 = arith.constant 0 : i32
    %c0_i32_1 = arith.constant 0 : i32
    return %c0_i32, %c0_i32_0 : i32, i32
  }
  func.func @transform_9(%arg0: i32, %arg1: i32) -> (i32, i32) {
    %c0_i32 = arith.constant 0 : i32
    %c0_i32_0 = arith.constant 0 : i32
    %c0_i32_1 = arith.constant 0 : i32
    return %c0_i32, %c0_i32_0 : i32, i32
  }
  func.func @transform_10(%arg0: i32, %arg1: i32) -> (i32, i32) {
    %c0_i32 = arith.constant 0 : i32
    %c0_i32_0 = arith.constant 0 : i32
    %c0_i32_1 = arith.constant 0 : i32
    return %c0_i32, %c0_i32_0 : i32, i32
  }
  func.func @transform_11(%arg0: i32, %arg1: i32) -> (i32, i32) {
    %c0_i32 = arith.constant 0 : i32
    %c0_i32_0 = arith.constant 0 : i32
    %c0_i32_1 = arith.constant 0 : i32
    return %c0_i32, %c0_i32_0 : i32, i32
  }
  func.func @transform_12(%arg0: i32, %arg1: i32) -> (i32, i32) {
    %c0_i32 = arith.constant 0 : i32
    %c0_i32_0 = arith.constant 0 : i32
    %c0_i32_1 = arith.constant 0 : i32
    return %c0_i32, %c0_i32_0 : i32, i32
  }
  func.func @transform_13(%arg0: i32, %arg1: i32) -> (i32, i32) {
    %c0_i32 = arith.constant 0 : i32
    %c0_i32_0 = arith.constant 0 : i32
    %c0_i32_1 = arith.constant 0 : i32
    return %c0_i32, %c0_i32_0 : i32, i32
  }
  func.func @transform_14(%arg0: i32, %arg1: i32) -> (i32, i32, i32) {
    %c0_i32 = arith.constant 0 : i32
    %c0_i32_0 = arith.constant 0 : i32
    return %arg1, %arg0, %c0_i32 : i32, i32, i32
  }
}

module attributes {stable_mosaic.version = 11 : i64} {
  func.func @_prenet_kernel(%arg0: memref<32x16xf32, #tpu.memory_space<vmem>>, %arg1: memref<16x32xf32, #tpu.memory_space<vmem>>, %arg2: memref<32x32xf32, #tpu.memory_space<vmem>>, %arg3: memref<32x32xf32, #tpu.memory_space<vmem>>) attributes {dimension_semantics = [], scalar_prefetch = 0 : i64, scratch_operands = 0 : i64, tpu.core_type = #tpu.core_type<tc>} {
    %c0 = arith.constant 0 : index
    %c0_0 = arith.constant 0 : index
    %0 = vector.load %arg0[%c0, %c0_0] : memref<32x16xf32, #tpu.memory_space<vmem>>, vector<32x16xf32>
    %c0_1 = arith.constant 0 : index
    %c0_2 = arith.constant 0 : index
    %1 = vector.load %arg1[%c0_1, %c0_2] : memref<16x32xf32, #tpu.memory_space<vmem>>, vector<16x32xf32>
    %cst = arith.constant dense<0.000000e+00> : vector<32x32xf32>
    %2 = tpu.matmul %0, %1, %cst {dimension_numbers = #tpu.dot_dimension_numbers<[1], [0], [0], [1], [0, 0, 1, 1], [], []>} : vector<32x16xf32>, vector<16x32xf32>, vector<32x32xf32> -> vector<32x32xf32>
    %cst_3 = arith.constant 0.000000e+00 : f32
    %3 = vector.broadcast %cst_3 : f32 to vector<32x32xf32>
    %4 = arith.maximumf %2, %3 : vector<32x32xf32>
    %c0_4 = arith.constant 0 : index
    %c0_5 = arith.constant 0 : index
    %5 = vector.load %arg2[%c0_4, %c0_5] : memref<32x32xf32, #tpu.memory_space<vmem>>, vector<32x32xf32>
    %cst_6 = arith.constant dense<0.000000e+00> : vector<32x32xf32>
    %6 = tpu.matmul %4, %5, %cst_6 {dimension_numbers = #tpu.dot_dimension_numbers<[1], [0], [0], [1], [0, 0, 1, 1], [], []>} : vector<32x32xf32>, vector<32x32xf32>, vector<32x32xf32> -> vector<32x32xf32>
    %cst_7 = arith.constant 0.000000e+00 : f32
    %7 = vector.broadcast %cst_7 : f32 to vector<32x32xf32>
    %8 = arith.maximumf %6, %7 : vector<32x32xf32>
    %c0_8 = arith.constant 0 : index
    %c0_9 = arith.constant 0 : index
    %9 = vector.load %arg3[%c0_8, %c0_9] : memref<32x32xf32, #tpu.memory_space<vmem>>, vector<32x32xf32>
    tpu.vector_store %arg3[%c0_8, %c0_9], %8 {strides = array<i32>} : memref<32x32xf32, #tpu.memory_space<vmem>>, vector<32x32xf32>,
    return
  }
}

</mosaic_0001>

<bundles_post_ra>
// kernel: run_decoder.4
= control target key start
LH: loop header
LB: loop body
LE: loop exit
PB: predicated region body
PF: predicated region fallthrough
CT: control target
= control target key end

     0   :  { %vm23_vm0 = vcmask 261120   ;;  %vm153_vm1 = vcmask 130048   ;;  %s309_s1 = inlined_call_operand.vmem [shape: f32[32,16], index: 1, kind: input, shape index: {}]   ;;  %s310_s0 = inlined_call_operand.vmem [shape: f32[64,32], index: 0, kind: input, shape index: {}]   ;;  %s311_s2 = inlined_call_operand.vmem [shape: f32[64,16], index: 2, kind: output, shape index: {}]  }
   0x1   :  { %v19_v0 = vld [vmem:[%s309_s1] sm:$0xff]  ;;  %v20_v1 = vld [vmem:[%s309_s1 + $0x8] sm:$0xff]  ;;  %v21_v2 = vld [vmem:[%s309_s1 + $0x10] sm:$0xff] }
   0x2   :  { %v206_v3 = vpack.c.bf16 %v20_v1, %v19_v0  ;;  %v22_v4 = vld [vmem:[%s309_s1 + $0x18] sm:$0xff]  ;;  %v11_v5 = vld [vmem:[%s310_s0] sm:$0xff]  ;;  %v12_v8 = vld [vmem:[%s310_s0 + $0x8] sm:$0xff] }
   0x3   :  { %v15_v6 = vld [vmem:[%s310_s0 + $0x20] sm:$0xff]  ;;  %v210_v7 = vpack.c.bf16 %v22_v4, %v21_v2  ;;  %194 = vmatprep.mubr.msk.f32.mxu0 %vm23_vm0, %v11_v5  ;;  %v16_v9 = vld [vmem:[%s310_s0 + $0x28] sm:$0xff]  ;;  %v13_v10 = vld [vmem:[%s310_s0 + $0x10] sm:$0xff] }
   0x4   :  { %200 = vmatprep.mubr.msk.f32.mxu1 %vm23_vm0, %v15_v6  ;;  %207 = vmatprep.subr.bf16.mxu0 %v206_v3  ;;  %v17_v11 = vld [vmem:[%s310_s0 + $0x30] sm:$0xff]  ;;  %v14_v12 = vld [vmem:[%s310_s0 + $0x18] sm:$0xff] }
   0x5   :  { %214 = vmatprep.subr.bf16.mxu1 %v206_v3  ;;  %209 = vmatpush3.bf16.msra.mxu0 %v206_v3  ;;  %v18_v13 = vld [vmem:[%s310_s0 + $0x38] sm:$0xff] }
   0x6   :  { %216 = vmatpush3.bf16.msra.mxu1 %v206_v3  ;;  %211 = vmatprep.subr.bf16.mxu0 %v210_v7 }
   0x7   :  { %215 = vmatprep.subr.bf16.mxu1 %v210_v7 }
   0x9   :  { %213 = vmatpush3.bf16.msra.mxu0 %v210_v7 }
   0xa   :  { %217 = vmatpush3.bf16.msra.mxu1 %v210_v7 }
   0xc   :  { %195 = vmatmul.mubr.msk.f32.vlgmr.msra.gmra.mrb[0].mxu0 %vm23_vm0, %v12_v8 }
   0xd   :  { %201 = vmatmul.mubr.msk.f32.vlgmr.msra.gmra.mrb[0].mxu1 %vm23_vm0, %v16_v9  ;;  %197 = vmatprep.mubr.msk.f32.mxu0 %vm23_vm0, %v13_v10 }
   0xe   :  { %203 = vmatprep.mubr.msk.f32.mxu1 %vm23_vm0, %v17_v11 }
  0x10   :  { %198 = vmatmul.mubr.msk.f32.gmra.mrb[2].mxu0 %vm23_vm0, %v14_v12 }
  0x11   :  { %204 = vmatmul.mubr.msk.f32.gmra.mrb[2].mxu1 %vm23_vm0, %v18_v13 }
  0xdf   :  { %v196_v14 = vpop.f32.mrb[0].mxu0 }
  0xe0   :  { %v202_v15 = vpop.f32.mrb[0].mxu1  ;;  %155 = vst.msk [vmem:[%s311_s2 + $0x8] sm:$0xff] %vm153_vm1, %v196_v14  ;;  %v114_v16 = vpop.f32.mrb[1].mxu0 }
  0xe1   :  { %159 = vst.msk [vmem:[%s311_s2 + $0x28] sm:$0xff] %vm153_vm1, %v202_v15  ;;  %v134_v17 = vpop.f32.mrb[1].mxu1  ;;  %154 = vst.msk [vmem:[%s311_s2] sm:$0xff] %vm153_vm1, %v114_v16 }
  0xe2   :  { %158 = vst.msk [vmem:[%s311_s2 + $0x20] sm:$0xff] %vm153_vm1, %v134_v17 }
  0xe3   :  { %v199_v18 = vpop.f32.mrb[2].mxu0 }
  0xe4   :  { %v205_v19 = vpop.f32.mrb[2].mxu1  ;;  %157 = vst.msk [vmem:[%s311_s2 + $0x18] sm:$0xff] %vm153_vm1, %v199_v18  ;;  %v124_v20 = vpop.f32.mrb[3].mxu0 }
  0xe5   :  { %161 = vst.msk [vmem:[%s311_s2 + $0x38] sm:$0xff] %vm153_vm1, %v205_v19  ;;  %v144_v21 = vpop.f32.mrb[3].mxu1  ;;  %156 = vst.msk [vmem:[%s311_s2 + $0x10] sm:$0xff] %vm153_vm1, %v124_v20 }
  0xe6   :  { %160 = vst.msk [vmem:[%s311_s2 + $0x30] sm:$0xff] %vm153_vm1, %v144_v21 }

// kernel: run_decoder.3
= control target key start
LH: loop header
LB: loop body
LE: loop exit
PB: predicated region body
PF: predicated region fallthrough
CT: control target
= control target key end

     0   :  { %vm20_vm0 = vcmask 130048   ;;  %vm126_vm1 = vcmask 261120   ;;  %s368_s1 = inlined_call_operand.vmem [shape: f32[16,32], index: 1, kind: input, shape index: {}]   ;;  %s369_s0 = inlined_call_operand.vmem [shape: f32[32,16], index: 0, kind: input, shape index: {}]   ;;  %s370_s2 = inlined_call_operand.vmem [shape: f32[32,32], index: 2, kind: input, shape index: {}]   ;;  %s371_s3 = inlined_call_operand.vmem [shape: f32[32,32], index: 3, kind: output, shape index: {}]  }
   0x1   :  { %v18_v0 = vld [vmem:[%s368_s1] sm:$0xff]  ;;  %v19_v1 = vld [vmem:[%s368_s1 + $0x8] sm:$0xff]  ;;  %v16_v8 = vld [vmem:[%s369_s0 + $0x10] sm:$0xff] }
   0x2   :  { %v14_v2 = vld [vmem:[%s369_s0] sm:$0xff]  ;;  %v282_v3 = vpack.c.bf16 %v19_v1, %v18_v0  ;;  %v123_v5 = vld [vmem:[%s370_s2 + $0x8] sm:$0xff]  ;;  %v17_v9 = vld [vmem:[%s369_s0 + $0x18] sm:$0xff] }
   0x3   :  { %262 = vmatprep.mubr.msk.f32.mxu0 %vm20_vm0, %v14_v2  ;;  %v122_v4 = vld [vmem:[%s370_s2] sm:$0xff]  ;;  %v15_v7 = vld [vmem:[%s369_s0 + $0x8] sm:$0xff]  ;;  %v124_v10 = vld [vmem:[%s370_s2 + $0x10] sm:$0xff] }
   0x4   :  { %283 = vmatprep.subr.bf16.mxu0 %v282_v3  ;;  %v286_v6 = vpack.c.bf16 %v123_v5, %v122_v4  ;;  %v125_v11 = vld [vmem:[%s370_s2 + $0x18] sm:$0xff] }
   0x5   :  { %285 = vmatpush3.bf16.msra.mxu0 %v282_v3  ;;  %v290_v12 = vpack.c.bf16 %v125_v11, %v124_v10 }
   0x6   :  { %287 = vmatprep.subr.bf16.mxu1 %v286_v6 }
   0x7   :  { %289 = vmatpush3.bf16.msra.mxu1 %v286_v6 }
   0x8   :  { %263 = vmatmul.mubr.msk.f32.vlgmr.msra.gmra.mrb[0].mxu0 %vm20_vm0, %v15_v7  ;;  %291 = vmatprep.subr.bf16.mxu1 %v290_v12 }
   0x9   :  { %265 = vmatprep.mubr.msk.f32.mxu0 %vm20_vm0, %v16_v8 }
   0xb   :  { %293 = vmatpush3.bf16.msra.mxu1 %v290_v12 }
   0xc   :  { %266 = vmatmul.mubr.msk.f32.gmra.mrb[2].mxu0 %vm20_vm0, %v17_v9 }
  0xdb   :  { %v264_v13 = vpop.f32.mrb[0].mxu0 }
  0xdc   :  { %v99_v14 = vpop.f32.mrb[1].mxu0  ;;  %v119_v16 = vmax.f32 %v264_v13, 0.0 }
  0xdd   :  { %v118_v15 = vmax.f32 %v99_v14, 0.0 }
  0xdf   :  { %v267_v17 = vpop.f32.mrb[2].mxu0  ;;  %276 = vmatprep.mubr.msk.f32.mxu1 %vm126_vm1, %v118_v15 }
  0xe0   :  { %v109_v18 = vpop.f32.mrb[3].mxu0  ;;  %277 = vmatmul.mubr.msk.f32.vlgmr.msra.gmra.mrb[0].mxu1 %vm126_vm1, %v119_v16  ;;  %v121_v20 = vmax.f32 %v267_v17, 0.0 }
  0xe1   :  { %v120_v19 = vmax.f32 %v109_v18, 0.0 }
  0xe3   :  { %279 = vmatprep.mubr.msk.f32.mxu1 %vm126_vm1, %v120_v19 }
  0xe4   :  { %280 = vmatmul.mubr.msk.f32.gmra.mrb[2].mxu1 %vm126_vm1, %v121_v20 }
 0x1b3   :  { %v278_v21 = vpop.f32.mrb[0].mxu1 }
 0x1b4   :  { %v225_v22 = vmax.f32 %v278_v21, 0.0  ;;  %v205_v23 = vpop.f32.mrb[1].mxu1 }
 0x1b5   :  { %v224_v24 = vmax.f32 %v205_v23, 0.0 }
 0x1b6   :  { %229 = vst.msk [vmem:[%s371_s3 + $0x8] sm:$0xff] %vm126_vm1, %v225_v22 }
 0x1b7   :  { %228 = vst.msk [vmem:[%s371_s3] sm:$0xff] %vm126_vm1, %v224_v24  ;;  %v281_v25 = vpop.f32.mrb[2].mxu1 }
 0x1b8   :  { %v227_v26 = vmax.f32 %v281_v25, 0.0  ;;  %v215_v27 = vpop.f32.mrb[3].mxu1 }
 0x1b9   :  { %v226_v28 = vmax.f32 %v215_v27, 0.0 }
 0x1ba   :  { %231 = vst.msk [vmem:[%s371_s3 + $0x18] sm:$0xff] %vm126_vm1, %v227_v26 }
 0x1bb   :  { %230 = vst.msk [vmem:[%s371_s3 + $0x10] sm:$0xff] %vm126_vm1, %v226_v28 }

// kernel: run_decoder.5
= control target key start
LH: loop header
LB: loop body
LE: loop exit
PB: predicated region body
PF: predicated region fallthrough
CT: control target
= control target key end

     0   :  { %vm52_vm0 = vcmask 261120   ;;  %v6126_v0 = vmov 0.0|0.0   ;;  %vm4801_vm1 = vmmov 0   ;;  %v6124_v4 = vmov 0.0   ;;  %s4804_s16 = smov 64   ;;  %s4805_s17 = smov 32   ;;  %s6109_s4 = inlined_call_operand.vmem [shape: f32[128,128], index: 4, kind: input, shape index: {}]   ;;  %s6110_s0 = inlined_call_operand.vmem [shape: f32[4,8,32], index: 0, kind: input, shape index: {}]   ;;  %s6111_s5 = inlined_call_operand.vmem [shape: f32[1,128], index: 5, kind: input, shape index: {}]   ;;  %s6112_s9 = inlined_call_operand.vmem [shape: f32[16,128], index: 9, kind: input, shape index: {}]   ;;  %s6113_s8 = inlined_call_operand.vmem [shape: f32[32,128], index: 8, kind: input, shape index: {}]   ;;  %s6114_s10 = inlined_call_operand.vmem [shape: f32[128,8], index: 10, kind: input, shape index: {}]   ;;  %s6115_s2 = inlined_call_operand.vmem [shape: f32[8,128], index: 2, kind: input, shape index: {}]   ;;  %s6116_s3 = inlined_call_operand.vmem [shape: f32[8,8], index: 3, kind: input, shape index: {}]   ;;  %s6117_s6 = inlined_call_operand.vmem [shape: f32[128,128], index: 6, kind: input, shape index: {}]   ;;  %s6118_s1 = inlined_call_operand.vmem [shape: f32[8,8,32], index: 1, kind: input, shape index: {}]   ;;  %s6119_s7 = inlined_call_operand.vmem [shape: f32[1,128], index: 7, kind: input, shape index: {}]   ;;  %s6120_s11 = inlined_call_operand.vmem [shape: f32[128,128], index: 11, kind: input, shape index: {}]   ;;  %s6121_s13 = inlined_call_operand.vmem [shape: f32[8,128], index: 13, kind: input, shape index: {}]   ;;  %s6122_s12 = inlined_call_operand.vmem [shape: f32[1,128], index: 12, kind: input, shape index: {}]   ;;  %s6123_s14 = inlined_call_operand.vmem [shape: f32[4,8,128], index: 14, kind: output, shape index: {}]  }
   0x1   :  { %4236 = vmatprep.subr.bf16.mxu0 %v6126_v0  ;;  %v73_v1 = vld [vmem:[%s6109_s4] sm:$0xff]  ;;  %v74_v2 = vld [vmem:[%s6109_s4 + $0x8] sm:$0xff]  ;;  %v75_v3 = vld [vmem:[%s6109_s4 + $0x10] sm:$0xff]  ;;  %3616 = vmatprep.mubr.msk.f32.mxu0 %vm4801_vm1, %v6124_v4  ;;  %51 = vst [vmem:[#allocation2] sm:$0xff] %v6124_v4  ;;  %v57_v28 = vlaneseq  ;;  %vm61_vm2 = vcmask 64512   ;;  %vm55_vm7 = vcmask 130048  }
   0x2   :  { %53 = vst.msk [vmem:[#allocation3] sm:$0xff] %vm52_vm0, %v6124_v4  ;;  %54 = vst.msk [vmem:[#allocation4] sm:$0xff] %vm52_vm0, %v6124_v4  ;;  %v4901_v5 = vpack.c.bf16 %v74_v2, %v73_v1  ;;  %v76_v6 = vld [vmem:[%s6109_s4 + $0x18] sm:$0xff]  ;;  %4260 = vmatprep.subr.bf16.mxu1 %v6126_v0  ;;  %3623 = vmatprep.mubr.msk.f32.mxu1 %vm4801_vm1, %v6124_v4  ;;  %v77_v8 = vld [vmem:[%s6109_s4 + $0x20] sm:$0xff]  ;;  %v4803_v30 = vmov -1e+20  }
   0x3   :  { %v4910_v7 = vpack.c.bf16 %v76_v6, %v75_v3  ;;  %v78_v9 = vld [vmem:[%s6109_s4 + $0x28] sm:$0xff]  ;;  %v152_v10 = vld [vmem:[%s6110_s0] sm:$0xff]  ;;  %v79_v12 = vld [vmem:[%s6109_s4 + $0x30] sm:$0xff]  ;;  %v58_v29 = vand.u32 127, %v57_v28  ;;  %56 = vst.msk [vmem:[#allocation5] sm:$0xff] %vm55_vm7, %v6124_v4  ;;  %s4806_s27 = smov 1  }
   0x4   :  { %4238 = vmatpush3.bf16.msra.mxu0 %v4901_v5  ;;  %154 = vst.msk [vmem:[#allocation2] sm:$0xff] %vm52_vm0, %v152_v10  ;;  %v4924_v11 = vpack.c.bf16 %v78_v9, %v77_v8  ;;  %v80_v13 = vld [vmem:[%s6109_s4 + $0x38] sm:$0xff]  ;;  %v81_v15 = vld [vmem:[%s6109_s4 + $0x40] sm:$0xff]  ;;  %v82_v16 = vld [vmem:[%s6109_s4 + $0x48] sm:$0xff]  ;;  %vm501_vm8 = vcmask 7168   ;;  %vm663_vm10 = vcmask 1041409  }
   0x5   :  { %4239 = vmatprep.subr.bf16.mxu0 %v6126_v0  ;;  %v4934_v14 = vpack.c.bf16 %v80_v13, %v79_v12  ;;  %v4944_v17 = vpack.c.bf16 %v82_v16, %v81_v15  ;;  %v83_v18 = vld [vmem:[%s6109_s4 + $0x50] sm:$0xff]  ;;  %v84_v19 = vld [vmem:[%s6109_s4 + $0x58] sm:$0xff]  ;;  %v85_v21 = vld [vmem:[%s6109_s4 + $0x60] sm:$0xff]  ;;  %vm59_vm3 = vcmp.eq.s32.totalorder %v58_v29, 0  ;;  %vm149_vm4 = vcmp.ge.s32.totalorder %v58_v29, 64 }
   0x6   :  { %v4954_v20 = vpack.c.bf16 %v84_v19, %v83_v18  ;;  %v86_v22 = vld [vmem:[%s6109_s4 + $0x68] sm:$0xff]  ;;  %v87_v24 = vld [vmem:[%s6109_s4 + $0x70] sm:$0xff]  ;;  %v88_v25 = vld [vmem:[%s6109_s4 + $0x78] sm:$0xff]  ;;  %v60_v31 = vsel %vm59_vm3, 0.0, %v4803_v30  ;;  %vm150_vm5 = vcmp.lt.s32.totalorder %v58_v29, 96  ;;  %vm271_vm11 = vcmask 785920  }
   0x7   :  { %v4964_v23 = vpack.c.bf16 %v86_v22, %v85_v21  ;;  %v4974_v26 = vpack.c.bf16 %v88_v25, %v87_v24  ;;  %62 = vst.msk [vmem:[#allocation6] sm:$0xff] %vm61_vm2, %v60_v31  ;;  %v4986_v32 = vld [vmem:[%s6111_s5] ss:$0 sm:$0xff]  ;;  %vm4989_vm6 = vmand %vm149_vm4, %vm150_vm5  ;;  %v112_v51 = vld [vmem:[%s6112_s9 + $0x8] sm:$0xff]  ;;  %vm6179_vm12 = vcmask 1042434   ;;  %vm667_vm13 = vcmask 1043459  }
   0x8   :  { %4241 = vmatpush3.bf16.msra.mxu0 %v4910_v7  ;;  %v111_v50 = vld [vmem:[%s6112_s9] sm:$0xff]  ;;  %v108_v54 = vld [vmem:[%s6113_s8 + $0x8] sm:$0xff]  ;;  %v109_v56 = vld [vmem:[%s6113_s8 + $0x10] sm:$0xff]  ;;  %vm669_vm14 = vcmask 1044484   ;;  %vm671_vm15 = vcmask 1045509   ;;  %vm673_vm3 = vcmask 1046534  }
   0x9   :  { %4242 = vmatprep.subr.bf16.mxu0 %v6126_v0  ;;  %v156_v43 = vld [vmem:[#allocation3] sm:$0xff]  ;;  %v5009_v52 = vpack.c.bf16 %v112_v51, %v111_v50  ;;  %v107_v53 = vld [vmem:[%s6113_s8] sm:$0xff]  ;;  %v110_v57 = vld [vmem:[%s6113_s8 + $0x18] sm:$0xff]  ;;  %vm675_vm4 = vcmask 1047559   ;;  %vm6146_vm5 = vcmask 523520   ;;  %s4808_s4 = smov 8  }
   0xa   :  { %v5019_v55 = vpack.c.bf16 %v108_v54, %v107_v53  ;;  %v5027_v58 = vld [vmem:[#allocation5] sm:$0xff]  ;;  %v5032_v60 = vpack.c.bf16 %v110_v57, %v109_v56  ;;  %v113_v2 = vld [vmem:[%s6114_s10] sm:$0xff]  ;;  %v114_v3 = vld [vmem:[%s6114_s10 + $0x8] sm:$0xff] }
   0xb   :  { %v155_v27 = vld [vmem:[#allocation2] sm:$0xff]  ;;  %4262 = vmatpush3.bf16.msra.mxu1 %v5009_v52  ;;  %v5050_v6 = vpack.c.bf16 %v114_v3, %v113_v2  ;;  %v115_v8 = vld [vmem:[%s6114_s10 + $0x10] sm:$0xff]  ;;  %v116_v9 = vld [vmem:[%s6114_s10 + $0x18] sm:$0xff] }
   0xc   :  { %4244 = vmatpush3.bf16.msra.mxu0 %v4924_v11  ;;  %4263 = vmatprep.subr.bf16.mxu1 %v6126_v0  ;;  %v5060_v12 = vpack.c.bf16 %v116_v9, %v115_v8  ;;  %v117_v13 = vld [vmem:[%s6114_s10 + $0x20] sm:$0xff]  ;;  %v118_v15 = vld [vmem:[%s6114_s10 + $0x28] sm:$0xff]  ;;  %v119_v18 = vld [vmem:[%s6114_s10 + $0x30] sm:$0xff] }
   0xd   :  { %4245 = vmatprep.subr.bf16.mxu0 %v6126_v0  ;;  %v5072_v16 = vpack.c.bf16 %v118_v15, %v117_v13  ;;  %v120_v19 = vld [vmem:[%s6114_s10 + $0x38] sm:$0xff]  ;;  %v121_v22 = vld [vmem:[%s6114_s10 + $0x40] sm:$0xff]  ;;  %v122_v24 = vld [vmem:[%s6114_s10 + $0x48] sm:$0xff] }
   0xe   :  { %3624 = vmatmul.mubr.msk.f32.vlgmr.msra.gmra.mrb[0].mxu1 %vm55_vm7, %v5027_v58  ;;  %v5082_v21 = vpack.c.bf16 %v120_v19, %v119_v18  ;;  %v5093_v25 = vpack.c.bf16 %v122_v24, %v121_v22  ;;  %v124_v29 = vld [vmem:[%s6114_s10 + $0x58] sm:$0xff]  ;;  %v125_v31 = vld [vmem:[%s6114_s10 + $0x60] sm:$0xff] }
   0xf   :  { %4265 = vmatpush3.bf16.msra.mxu1 %v5019_v55  ;;  %3634 = vmatprep.mubr.msk.f32.mxu1 %vm4801_vm1, %v6124_v4 }
  0x10   :  { %4247 = vmatpush3.bf16.msra.mxu0 %v4934_v14  ;;  %4266 = vmatprep.subr.bf16.mxu1 %v6126_v0 }
  0x11   :  { %4248 = vmatprep.subr.bf16.mxu0 %v6126_v0 }
  0x13   :  { %4268 = vmatpush3.bf16.msra.mxu1 %v5032_v60 }
  0x14   :  { %4250 = vmatpush3.bf16.msra.mxu0 %v4944_v17  ;;  %4269 = vmatprep.subr.bf16.mxu1 %v6126_v0 }
  0x15   :  { %4251 = vmatprep.subr.bf16.mxu0 %v6126_v0 }
  0x18   :  { %4253 = vmatpush3.bf16.msra.mxu0 %v4954_v20 }
  0x19   :  { %4254 = vmatprep.subr.bf16.mxu0 %v6126_v0 }
  0x1c   :  { %4256 = vmatpush3.bf16.msra.mxu0 %v4964_v23 }
  0x1d   :  { %4257 = vmatprep.subr.bf16.mxu0 %v6126_v0 }
  0x20   :  { %4259 = vmatpush3.bf16.msra.mxu0 %v4974_v26 }
  0x21   :  { %4293 = vmatprep.subr.bf16.mxu0 %v6126_v0 }
  0x23   :  { %3617 = vmatmul.mubr.f32.vlgmr.msra.gmra.mrb[0].mxu0 %v155_v27  ;;  %v123_v27 = vld [vmem:[%s6114_s10 + $0x50] sm:$0xff] }
  0x24   :  { %3704 = vmatprep.mubr.msk.f32.mxu0 %vm4801_vm1, %v6124_v4  ;;  %v5103_v30 = vpack.c.bf16 %v124_v29, %v123_v27  ;;  %v529_v29 = vshrl.u32 %v57_v28, 7 }
  0xe1   :  { %v344_v63 = vpop.f32.mrb[0].mxu1 }
  0xe2   :  { %v3625_v1 = vpop.f32.mrb[1].mxu1 }
  0xf6   :  { %v229_v33 = vpop.f32.mrb[0].mxu0 }
  0xf7   :  { %v230_v34 = vadd.f32 %v4986_v32, %v229_v33  ;;  %v3618_v35 = vpop.f32.mrb[1].mxu0  ;;  %v126_v33 = vld [vmem:[%s6114_s10 + $0x68] sm:$0xff] }
  0xf8   :  { %v127_v35 = vld [vmem:[%s6114_s10 + $0x70] sm:$0xff] }
  0xf9   :  { %v3244_v36 = vmul.f32 -1.442695, %v230_v34 }
  0xfb   :  { %4675 = vpow2.f32 %v3244_v36  ;;  %v128_v36 = vld [vmem:[%s6114_s10 + $0x78] sm:$0xff] }
  0xfc   :  { %4677 = vtanh.f32 %v230_v34  ;;  %v5113_v34 = vpack.c.bf16 %v126_v33, %v125_v31  ;;  %v5149_v31 = vsub.s32 1, %v529_v29  ;;  %v5151_v33 = vsub.s32 0, %v529_v29 }
  0xfe   :  { %6191 = vst [vmem:[#allocation8_spill] sm:$0xff] %v5149_v31  ;;  %6192 = vst [vmem:[#allocation9_spill] sm:$0xff] %v5151_v33 }
 0x105   :  { %v4676_v37 = vpop.eup %4675 }
 0x106   :  { %v237_v38 = vadd.f32 1.0, %v4676_v37  ;;  %v4678_v40 = vpop.eup %4677  ;;  %v5122_v37 = vpack.c.bf16 %v128_v36, %v127_v35 }
 0x108   :  { %4679 = vrcp.f32 %v237_v38  ;;  %v496_v38 = vld [vmem:[#allocation6] sm:$0xff] }
 0x112   :  { %v4680_v41 = vpop.eup %4679 }
 0x113   :  { %v240_v42 = vsel %vm4989_vm6, %v4678_v40, %v4680_v41  ;;  %v5131_v40 = vld [vmem:[%s6115_s2] sm:$0xff] }
 0x114   :  { %247 = vrot.lane.b32.xlu0 %v240_v42, %s4804_s16 }
 0x118   :  { %242 = vrot.lane.b32.xlu0 %v156_v43, %s4805_s17 }
 0x186   :  { %v248_v44 = vpop.permute.xlu0 %247 }
 0x187   :  { %v250_v45 = vmul.f32 %v248_v44, %v240_v42 }
 0x189   :  { %252 = vrot.lane.b32.xlu1 %v250_v45, %s4805_s17 }
 0x18a   :  { %v243_v46 = vpop.permute.xlu0 %242 }
 0x18b   :  { %v245_v47 = vmul.f32 %v243_v46, %v240_v42 }
 0x1fb   :  { %v253_v48 = vpop.permute.xlu1 %252 }
 0x1fc   :  { %v4998_v49 = vadd.f32 %v253_v48, %v245_v47 }
 0x1fe   :  { %4681 = vtanh.f32 %v4998_v49 }
 0x208   :  { %v4682_v59 = vpop.eup %4681 }
 0x209   :  { %258 = vrot.lane.b32.xlu1 %v4682_v59, %s4804_s16 }
 0x20d   :  { %498 = vrot.lane.b32.xlu1 %v496_v38, %s4806_s27 }
 0x27b   :  { %v259_v61 = vpop.permute.xlu1 %258 }
 0x27c   :  { %v5040_v62 = vmul.f32 %v259_v61, %v240_v42 }
 0x27e   :  { %348 = vrot.lane.b32.xlu0 %v5040_v62, %s4805_s17 }
 0x27f   :  { %v499_v46 = vpop.permute.xlu1 %498 }
 0x280   :  { %v502_v47 = vsel %vm501_vm8, -1e+20, %v499_v46  ;;  %v5169_v46 = vsub.s32 4, %v529_v29 }
 0x281   :  { %v503_v48 = vmax.f32 %v496_v38, %v502_v47 }
 0x282   :  { %6196 = vst [vmem:[#allocation13_spill] sm:$0xff] %v5169_v46 }
 0x283   :  { %v504_v50 = vsub.f32 %v496_v38, %v503_v48  ;;  %v507_v51 = vsub.f32 %v502_v47, %v503_v48 }
 0x285   :  { %v505_v53 = vmul.f32 1.442695, %v504_v50  ;;  %v508_v54 = vmul.f32 1.442695, %v507_v51  ;;  %v5175_v50 = vsub.s32 7, %v529_v29  ;;  %v5177_v51 = vsub.s32 6, %v529_v29 }
 0x287   :  { %6197 = vst [vmem:[#allocation14_spill] sm:$0xff] %v5175_v50  ;;  %6198 = vst [vmem:[#allocation15_spill] sm:$0xff] %v5177_v51 }
 0x2f0   :  { %v349_v10 = vpop.permute.xlu0 %348 }
 0x2f1   :  { %3635 = vmatmul.mubr.msk.f32.vlgmr.msra.gmra.mrb[2].mxu1 %vm52_vm0, %v349_v10 }
 0x2f2   :  { %4271 = vmatpush3.bf16.msra.mxu1 %v5050_v6  ;;  %3669 = vmatprep.mubr.msk.f32.mxu1 %vm4801_vm1, %v6124_v4 }
 0x2f3   :  { %4272 = vmatprep.subr.bf16.mxu1 %v6126_v0 }
 0x2f6   :  { %4274 = vmatpush3.bf16.msra.mxu1 %v5060_v12 }
 0x2f7   :  { %4275 = vmatprep.subr.bf16.mxu1 %v6126_v0 }
 0x2fa   :  { %4277 = vmatpush3.bf16.msra.mxu1 %v5072_v16 }
 0x2fb   :  { %4278 = vmatprep.subr.bf16.mxu1 %v6126_v0 }
 0x2fe   :  { %4280 = vmatpush3.bf16.msra.mxu1 %v5082_v21 }
 0x2ff   :  { %4281 = vmatprep.subr.bf16.mxu1 %v6126_v0 }
 0x302   :  { %4283 = vmatpush3.bf16.msra.mxu1 %v5093_v25 }
 0x303   :  { %4284 = vmatprep.subr.bf16.mxu1 %v6126_v0 }
 0x306   :  { %4286 = vmatpush3.bf16.msra.mxu1 %v5103_v30 }
 0x307   :  { %4287 = vmatprep.subr.bf16.mxu1 %v6126_v0 }
 0x30a   :  { %4289 = vmatpush3.bf16.msra.mxu1 %v5113_v34 }
 0x30b   :  { %4290 = vmatprep.subr.bf16.mxu1 %v6126_v0 }
 0x30e   :  { %4292 = vmatpush3.bf16.msra.mxu1 %v5122_v37 }
 0x30f   :  { %4317 = vmatprep.subr.bf16.mxu1 %v6126_v0 }
 0x3c4   :  { %v418_v41 = vpop.f32.mrb[2].mxu1 }
 0x3c5   :  { %v419_v42 = vadd.f32 %v418_v41, %v344_v63  ;;  %v3636_v43 = vpop.f32.mrb[3].mxu1  ;;  %v5140_v63 = vld [vmem:[%s6116_s3] sm:$0xff]  ;;  %s4807_s3 = smov 96  }
 0x3c6   :  { %6190 = vst [vmem:[#allocation7_spill] sm:$0xff] %v5140_v63  ;;  %vm494_vm9 = vcmp.gt.f32.partialorder %v5140_v63, 0.5  ;;  %v5161_v43 = vsub.s32 2, %v529_v29 }
 0x3c7   :  { %v422_v44 = vadd.f32 %v419_v42, %v5131_v40  ;;  %v5159_v42 = vsub.s32 3, %v529_v29 }
 0x3c8   :  { %6194 = vst [vmem:[#allocation11_spill] sm:$0xff] %v5161_v43 }
 0x3c9   :  { %4683 = vtanh.f32 %v422_v44  ;;  %6193 = vst [vmem:[#allocation10_spill] sm:$0xff] %v5159_v42 }
 0x3ca   :  { %4685 = vpow2.f32 %v505_v53 }
 0x3cb   :  { %4687 = vpow2.f32 %v508_v54 }
 0x3d3   :  { %v4684_v45 = vpop.eup %4683 }
 0x3d4   :  { %3670 = vmatmul.mubr.f32.vlgmr.msra.gmra.mrb[4].mxu1 %v4684_v45  ;;  %v4686_v56 = vpop.eup %4685  ;;  %v5167_v45 = vsub.s32 5, %v529_v29  ;;  %v5248_v29 = vld [vmem:[%s6118_s1 + $0x8] sm:$0xff] }
 0x3d5   :  { %3739 = vmatprep.mubr.msk.f32.mxu1 %vm4801_vm1, %v6124_v4  ;;  %v4688_v57 = vpop.eup %4687  ;;  %6202 = vst [vmem:[#allocation19_spill] sm:$0xff] %v5248_v29 }
 0x3d6   :  { %v510_v59 = vadd.f32 %v4688_v57, %v4686_v56  ;;  %6195 = vst [vmem:[#allocation12_spill] sm:$0xff] %v5167_v45  ;;  %v90_v56 = vld [vmem:[%s6117_s6] sm:$0xff]  ;;  %v91_v57 = vld [vmem:[%s6117_s6 + $0x8] sm:$0xff] }
 0x3d8   :  { %4689 = vlog2.f32 %v510_v59  ;;  %v92_v59 = vld [vmem:[%s6117_s6 + $0x10] sm:$0xff] }
 0x3e2   :  { %v4690_v61 = vpop.eup %4689 }
 0x3e3   :  { %v512_v1 = vmul.f32 0.6931472, %v4690_v61  ;;  %v5194_v61 = vpack.c.bf16 %v91_v57, %v90_v56 }
 0x3e5   :  { %v513_v3 = vadd.f32 %v512_v1, %v503_v48  ;;  %v93_v1 = vld [vmem:[%s6117_s6 + $0x18] sm:$0xff]  ;;  %4295 = vmatpush3.bf16.msra.mxu0 %v5194_v61 }
 0x3e6   :  { %4296 = vmatprep.subr.bf16.mxu0 %v6126_v0 }
 0x4a7   :  { %v490_v2 = vpop.f32.mrb[4].mxu1 }
 0x4a8   :  { %v495_v8 = vsel %vm494_vm9, -1e+20, %v490_v2  ;;  %v3671_v9 = vpop.f32.mrb[5].mxu1  ;;  %v94_v2 = vld [vmem:[%s6117_s6 + $0x20] sm:$0xff] }
 0x4a9   :  { %v514_v10 = vadd.f32 %v513_v3, %v495_v8  ;;  %v95_v3 = vld [vmem:[%s6117_s6 + $0x28] sm:$0xff]  ;;  %v96_v9 = vld [vmem:[%s6117_s6 + $0x30] sm:$0xff] }
 0x4aa   :  { %v5210_v8 = vpack.c.bf16 %v95_v3, %v94_v2 }
 0x4ab   :  { %516 = vst.msk [vmem:[#allocation6] sm:$0xff] %vm61_vm2, %v514_v10  ;;  %v517_v13 = vsel %vm61_vm2, %v514_v10, -inf }
 0x4ac   :  { %518 = vmax.xlane.f32.xlu0 %v517_v13 }
 0x539   :  { %v519_v15 = vpop.xlane.xlu0 %518 }
 0x53a   :  { %v520_v18 = vsub.f32 %v514_v10, %v519_v15  ;;  %v97_v10 = vld [vmem:[%s6117_s6 + $0x38] sm:$0xff]  ;;  %v98_v15 = vld [vmem:[%s6117_s6 + $0x40] sm:$0xff] }
 0x53b   :  { %v5220_v13 = vpack.c.bf16 %v97_v10, %v96_v9 }
 0x53c   :  { %v521_v19 = vmul.f32 1.442695, %v520_v18  ;;  %v99_v18 = vld [vmem:[%s6117_s6 + $0x48] sm:$0xff] }
 0x53d   :  { %6199 = vst [vmem:[#allocation16_spill] sm:$0xff] %v5220_v13 }
 0x53e   :  { %4691 = vpow2.f32 %v521_v19  ;;  %v5230_v19 = vpack.c.bf16 %v99_v18, %v98_v15  ;;  %v5274_v15 = vld [vmem:[%s6118_s1 + $0x28] sm:$0xff]  ;;  %v5279_v18 = vld [vmem:[%s6118_s1 + $0x20] sm:$0xff] }
 0x53f   :  { %6206 = vst [vmem:[#allocation23_spill] sm:$0xff] %v5274_v15  ;;  %6207 = vst [vmem:[#allocation24_spill] sm:$0xff] %v5279_v18 }
 0x540   :  { %6200 = vst [vmem:[#allocation17_spill] sm:$0xff] %v5230_v19 }
 0x546   :  { %v6230_v63 = vld [vmem:[#allocation23_spill] sm:$0xff] }
 0x548   :  { %v4692_v22 = vpop.eup %4691 }
 0x549   :  { %v523_v24 = vsel %vm61_vm2, %v4692_v22, 0.0 }
 0x54a   :  { %524 = vadd.xlane.f32.xlu1 %v523_v24  ;;  %v101_v24 = vld [vmem:[%s6117_s6 + $0x58] sm:$0xff] }
 0x5d7   :  { %v525_v27 = vpop.xlane.xlu1 %524 }
 0x5d8   :  { %4693 = vrcp.f32 %v525_v27 }
 0x5e2   :  { %v4694_v35 = vpop.eup %4693 }
 0x5e3   :  { %v5153_v36 = vmul.f32 %v4694_v35, %v4692_v22  ;;  %v100_v22 = vld [vmem:[%s6117_s6 + $0x50] sm:$0xff]  ;;  %v5253_v35 = vld [vmem:[%s6118_s1] sm:$0xff] }
 0x5e4   :  { %v5240_v27 = vpack.c.bf16 %v101_v24, %v100_v22  ;;  %6203 = vst [vmem:[#allocation20_spill] sm:$0xff] %v5253_v35 }
 0x5e5   :  { %v538_v38 = vrot.slane %v5153_v36, %v5149_v31  ;;  %v531_v41 = vrot.slane %v5153_v36, %v5151_v33  ;;  %v552_v28 = vrot.slane %v5153_v36, %v5159_v42  ;;  %v545_v44 = vrot.slane %v5153_v36, %v5161_v43 }
 0x5e6   :  { %v566_v47 = vrot.slane %v5153_v36, %v5167_v45  ;;  %v559_v48 = vrot.slane %v5153_v36, %v5169_v46  ;;  %v580_v53 = vrot.slane %v5153_v36, %v5175_v50  ;;  %v573_v54 = vrot.slane %v5153_v36, %v5177_v51  ;;  %6201 = vst [vmem:[#allocation18_spill] sm:$0xff] %v5240_v27 }
 0x5e7   :  { %540 = vbcast.lane.b32.xlu1 %v538_v38, 256  ;;  %533 = vbcast.lane.b32.xlu0 %v531_v41, 256 }
 0x5eb   :  { %554 = vbcast.lane.b32.xlu1 %v552_v28, 256  ;;  %547 = vbcast.lane.b32.xlu0 %v545_v44, 256 }
 0x5ef   :  { %568 = vbcast.lane.b32.xlu1 %v566_v47, 256  ;;  %561 = vbcast.lane.b32.xlu0 %v559_v48, 256  ;;  %v5260_v47 = vld [vmem:[%s6118_s1 + $0x18] sm:$0xff]  ;;  %v5265_v48 = vld [vmem:[%s6118_s1 + $0x10] sm:$0xff] }
 0x5f0   :  { %6204 = vst [vmem:[#allocation21_spill] sm:$0xff] %v5260_v47  ;;  %6205 = vst [vmem:[#allocation22_spill] sm:$0xff] %v5265_v48 }
 0x5f3   :  { %582 = vbcast.lane.b32.xlu1 %v580_v53, 256  ;;  %575 = vbcast.lane.b32.xlu0 %v573_v54, 256 }
 0x5f7   :  { %268 = vrot.lane.b32.xlu0 %v5040_v62, %s4807_s3  ;;  %v5200_v62 = vpack.c.bf16 %v93_v1, %v92_v59 }
 0x5f9   :  { %4298 = vmatpush3.bf16.msra.mxu0 %v5200_v62 }
 0x5fa   :  { %4299 = vmatprep.subr.bf16.mxu0 %v6126_v0 }
 0x5fd   :  { %4301 = vmatpush3.bf16.msra.mxu0 %v5210_v8 }
 0x5fe   :  { %4302 = vmatprep.subr.bf16.mxu0 %v6126_v0 }
 0x601   :  { %4304 = vmatpush3.bf16.msra.mxu0 %v5220_v13 }
 0x602   :  { %4305 = vmatprep.subr.bf16.mxu0 %v6126_v0 }
 0x605   :  { %4307 = vmatpush3.bf16.msra.mxu0 %v5230_v19 }
 0x606   :  { %4308 = vmatprep.subr.bf16.mxu0 %v6126_v0 }
 0x609   :  { %4310 = vmatpush3.bf16.msra.mxu0 %v5240_v27 }
 0x60a   :  { %4311 = vmatprep.subr.bf16.mxu0 %v6126_v0 }
 0x659   :  { %v541_v38 = vpop.permute.xlu1 %540  ;;  %v534_v41 = vpop.permute.xlu0 %533 }
 0x65a   :  { %v585_v28 = vmul.f32 %v541_v38, %v5248_v29  ;;  %v584_v44 = vmul.f32 %v534_v41, %v5253_v35 }
 0x65c   :  { %v599_v53 = vsel %vm52_vm0, %v585_v28, 0.0  ;;  %v592_v54 = vsel %vm52_vm0, %v584_v44, 0.0 }
 0x65d   :  { %v600_v56 = vrot.slane %v599_v53, 4  ;;  %v593_v57 = vrot.slane %v592_v54, 4  ;;  %v555_v59 = vpop.permute.xlu1 %554  ;;  %v548_v1 = vpop.permute.xlu0 %547 }
 0x65e   :  { %v587_v2 = vmul.f32 %v555_v59, %v5260_v47  ;;  %v586_v3 = vmul.f32 %v548_v1, %v5265_v48 }
 0x65f   :  { %v601_v9 = vadd.f32 %v600_v56, %v599_v53  ;;  %v594_v10 = vadd.f32 %v593_v57, %v592_v54 }
 0x660   :  { %v613_v22 = vsel %vm52_vm0, %v587_v2, 0.0  ;;  %v606_v24 = vsel %vm52_vm0, %v586_v3, 0.0  ;;  %v5288_v2 = vld [vmem:[%s6118_s1 + $0x38] sm:$0xff]  ;;  %v5293_v3 = vld [vmem:[%s6118_s1 + $0x30] sm:$0xff] }
 0x661   :  { %v602_v38 = vrot.slane %v601_v9, 2  ;;  %v595_v41 = vrot.slane %v594_v10, 2  ;;  %v614_v28 = vrot.slane %v613_v22, 4  ;;  %v607_v44 = vrot.slane %v606_v24, 4  ;;  %v569_v53 = vpop.permute.xlu1 %568  ;;  %v562_v54 = vpop.permute.xlu0 %561 }
 0x662   :  { %v589_v56 = vmul.f32 %v569_v53, %v5274_v15  ;;  %v588_v57 = vmul.f32 %v562_v54, %v5279_v18 }
 0x663   :  { %v603_v59 = vadd.f32 %v602_v38, %v601_v9  ;;  %v596_v1 = vadd.f32 %v595_v41, %v594_v10  ;;  %v615_v4 = vadd.f32 %v614_v28, %v613_v22  ;;  %v608_v0 = vadd.f32 %v607_v44, %v606_v24 }
 0x664   :  { %v627_v48 = vsel %vm52_vm0, %v589_v56, 0.0  ;;  %v620_v53 = vsel %vm52_vm0, %v588_v57, 0.0 }
 0x665   :  { %v604_v54 = vrot.slane %v603_v59, 1  ;;  %v597_v9 = vrot.slane %v596_v1, 1  ;;  %v616_v10 = vrot.slane %v615_v4, 2  ;;  %v609_v22 = vrot.slane %v608_v0, 2  ;;  %v583_v24 = vpop.permute.xlu1 %582  ;;  %v576_v38 = vpop.permute.xlu0 %575 }
 0x666   :  { %v628_v41 = vrot.slane %v627_v48, 4  ;;  %v621_v28 = vrot.slane %v620_v53, 4  ;;  %v591_v44 = vmul.f32 %v583_v24, %v5288_v2  ;;  %v590_v18 = vmul.f32 %v576_v38, %v5293_v3  ;;  %v102_v24 = vld [vmem:[%s6117_s6 + $0x60] sm:$0xff] }
 0x667   :  { %v605_v15 = vadd.f32 %v604_v54, %v603_v59  ;;  %v617_v47 = vadd.f32 %v616_v10, %v615_v4  ;;  %v610_v35 = vadd.f32 %v609_v22, %v608_v0  ;;  %v598_v50 = vadd.f32 %v597_v9, %v596_v1  ;;  %v103_v0 = vld [vmem:[%s6117_s6 + $0x68] sm:$0xff]  ;;  %v104_v54 = vld [vmem:[%s6117_s6 + $0x70] sm:$0xff]  ;;  %v105_v9 = vld [vmem:[%s6117_s6 + $0x78] sm:$0xff] }
 0x668   :  { %v629_v29 = vadd.f32 %v628_v41, %v627_v48  ;;  %v622_v56 = vadd.f32 %v621_v28, %v620_v53  ;;  %v641_v57 = vsel %vm52_vm0, %v591_v44, 0.0  ;;  %v634_v51 = vsel %vm52_vm0, %v590_v18, 0.0 }
 0x669   :  { %v618_v46 = vrot.slane %v617_v47, 1  ;;  %v611_v45 = vrot.slane %v610_v35, 1  ;;  %v642_v43 = vrot.slane %v641_v57, 4  ;;  %v269_v42 = vpop.permute.xlu0 %268  ;;  %v635_v59 = vrot.slane %v634_v51, 4 }
 0x66a   :  { %v630_v4 = vrot.slane %v629_v29, 2  ;;  %v623_v48 = vrot.slane %v622_v56, 2  ;;  %272 = vst.msk [vmem:[#allocation2] sm:$0xff] %vm271_vm11, %v269_v42  ;;  %v5308_v53 = vpack.c.bf16 %v103_v0, %v102_v24  ;;  %v5317_v41 = vpack.c.bf16 %v105_v9, %v104_v54  ;;  %v683_v54 = vld [vmem:[#allocation4] sm:$0xff] }
 0x66b   :  { %v612_v18 = vadd.f32 %v611_v45, %v610_v35  ;;  %v643_v1 = vadd.f32 %v642_v43, %v641_v57  ;;  %v636_v38 = vadd.f32 %v635_v59, %v634_v51  ;;  %v664_v42 = vsel %vm663_vm10, %v605_v15, %v598_v50 }
 0x66c   :  { %6208 = vst [vmem:[#allocation25_spill] sm:$0xff] %v5308_v53  ;;  %v631_v10 = vadd.f32 %v630_v4, %v629_v29  ;;  %v624_v22 = vadd.f32 %v623_v48, %v622_v56  ;;  %4313 = vmatpush3.bf16.msra.mxu0 %v5308_v53  ;;  %6209 = vst [vmem:[#allocation26_spill] sm:$0xff] %v5317_v41  ;;  %v619_v28 = vadd.f32 %v618_v46, %v617_v47  ;;  %v6210_v43 = vmov 0.0|0.0  }
 0x66d   :  { %v644_v45 = vrot.slane %v643_v1, 2  ;;  %4314 = vmatprep.subr.bf16.mxu0 %v6210_v43  ;;  %v666_v35 = vsel %vm6179_vm12, %v612_v18, %v664_v42  ;;  %v637_v24 = vrot.slane %v636_v38, 2 }
 0x66e   :  { %v632_v44 = vrot.slane %v631_v10, 1  ;;  %v625_v57 = vrot.slane %v624_v22, 1  ;;  %v668_v50 = vsel %vm667_vm13, %v619_v28, %v666_v35 }
 0x66f   :  { %v645_v0 = vadd.f32 %v644_v45, %v643_v1  ;;  %v638_v51 = vadd.f32 %v637_v24, %v636_v38  ;;  %v5353_v38 = vld [vmem:[%s6119_s7] ss:$0 sm:$0xff] }
 0x670   :  { %v626_v29 = vadd.f32 %v625_v57, %v624_v22  ;;  %4316 = vmatpush3.bf16.msra.mxu0 %v5317_v41  ;;  %v633_v56 = vadd.f32 %v632_v44, %v631_v10  ;;  %v6211_v22 = vmov 0.0  }
 0x671   :  { %v646_v4 = vrot.slane %v645_v0, 1  ;;  %4341 = vmatprep.subr.bf16.mxu0 %v6210_v43  ;;  %v639_v46 = vrot.slane %v638_v51, 1 }
 0x672   :  { %v670_v47 = vsel %vm669_vm14, %v626_v29, %v668_v50  ;;  %v130_v50 = vld [vmem:[%s6120_s11 + $0x8] sm:$0xff] }
 0x673   :  { %v647_v15 = vadd.f32 %v646_v4, %v645_v0  ;;  %v640_v48 = vadd.f32 %v639_v46, %v638_v51  ;;  %v672_v59 = vsel %vm671_vm15, %v633_v56, %v670_v47  ;;  %v129_v4 = vld [vmem:[%s6120_s11] sm:$0xff]  ;;  %v131_v46 = vld [vmem:[%s6120_s11 + $0x10] sm:$0xff] }
 0x674   :  { %v5369_v47 = vpack.c.bf16 %v130_v50, %v129_v4  ;;  %v142_v4 = vld [vmem:[%s6120_s11 + $0x68] sm:$0xff] }
 0x675   :  { %v674_v18 = vsel %vm673_vm3, %v640_v48, %v672_v59  ;;  %v133_v59 = vld [vmem:[%s6120_s11 + $0x20] sm:$0xff] }
 0x676   :  { %v676_v1 = vsel %vm675_vm4, %v647_v15, %v674_v18  ;;  %6212 = vst [vmem:[#allocation27_spill] sm:$0xff] %v5369_v47  ;;  %v132_v15 = vld [vmem:[%s6120_s11 + $0x18] sm:$0xff]  ;;  %4319 = vmatpush3.bf16.msra.mxu1 %v5369_v47  ;;  %v134_v18 = vld [vmem:[%s6120_s11 + $0x28] sm:$0xff] }
 0x677   :  { %677 = vrot.lane.b32.xlu1 %v676_v1, %s4805_s17  ;;  %v5377_v48 = vpack.c.bf16 %v132_v15, %v131_v46  ;;  %4320 = vmatprep.subr.bf16.mxu1 %v6210_v43  ;;  %v5387_v1 = vpack.c.bf16 %v134_v18, %v133_v59  ;;  %v143_v46 = vld [vmem:[%s6120_s11 + $0x70] sm:$0xff]  ;;  %v144_v15 = vld [vmem:[%s6120_s11 + $0x78] sm:$0xff] }
 0x678   :  { %v5440_v18 = vpack.c.bf16 %v144_v15, %v143_v46 }
 0x679   :  { %6213 = vst [vmem:[#allocation28_spill] sm:$0xff] %v5377_v48  ;;  %6214 = vst [vmem:[#allocation29_spill] sm:$0xff] %v5387_v1 }
 0x67a   :  { %4322 = vmatpush3.bf16.msra.mxu1 %v5377_v48  ;;  %6219 = vst [vmem:[#allocation34_spill] sm:$0xff] %v5440_v18 }
 0x67b   :  { %769 = vrot.lane.b32.xlu1 %v683_v54, %s4805_s17  ;;  %4323 = vmatprep.subr.bf16.mxu1 %v6210_v43  ;;  %v136_v54 = vld [vmem:[%s6120_s11 + $0x38] sm:$0xff] }
 0x67e   :  { %4325 = vmatpush3.bf16.msra.mxu1 %v5387_v1 }
 0x67f   :  { %4326 = vmatprep.subr.bf16.mxu1 %v6210_v43 }
 0x6e9   :  { %v678_v9 = vpop.permute.xlu1 %677 }
 0x6ea   :  { %681 = vst.msk [vmem:[#allocation2] sm:$0xff] %vm6146_vm5, %v678_v9  ;;  %vm794_vm5 = vcmask 1048320  }
 0x6f1   :  { %v682_v10 = vld [vmem:[#allocation2] sm:$0xff] }
 0x6f2   :  { %3705 = vmatmul.mubr.f32.vlgmr.msra.gmra.mrb[2].mxu0 %v682_v10  ;;  %v137_v10 = vld [vmem:[%s6120_s11 + $0x40] sm:$0xff] }
 0x6f3   :  { %4343 = vmatpush3.bf16.msra.mxu0 %v4901_v5  ;;  %3779 = vmatprep.mubr.msk.f32.mxu0 %vm4801_vm1, %v6211_v22 }
 0x6f4   :  { %4344 = vmatprep.subr.bf16.mxu0 %v6210_v43 }
 0x6f7   :  { %4346 = vmatpush3.bf16.msra.mxu0 %v4910_v7 }
 0x6f8   :  { %4347 = vmatprep.subr.bf16.mxu0 %v6210_v43 }
 0x6fb   :  { %4349 = vmatpush3.bf16.msra.mxu0 %v4924_v11 }
 0x6fc   :  { %4350 = vmatprep.subr.bf16.mxu0 %v6210_v43 }
 0x6ff   :  { %4352 = vmatpush3.bf16.msra.mxu0 %v4934_v14 }
 0x700   :  { %4353 = vmatprep.subr.bf16.mxu0 %v6210_v43 }
 0x703   :  { %4355 = vmatpush3.bf16.msra.mxu0 %v4944_v17 }
 0x704   :  { %4356 = vmatprep.subr.bf16.mxu0 %v6210_v43 }
 0x707   :  { %4358 = vmatpush3.bf16.msra.mxu0 %v4954_v20 }
 0x708   :  { %4359 = vmatprep.subr.bf16.mxu0 %v6210_v43 }
 0x70b   :  { %4361 = vmatpush3.bf16.msra.mxu0 %v4964_v23 }
 0x70c   :  { %4362 = vmatprep.subr.bf16.mxu0 %v6210_v43 }
 0x70f   :  { %4364 = vmatpush3.bf16.msra.mxu0 %v4974_v26 }
 0x710   :  { %4398 = vmatprep.subr.bf16.mxu0 %v6210_v43 }
 0x7c5   :  { %v756_v42 = vpop.f32.mrb[2].mxu0 }
 0x7c6   :  { %v757_v28 = vadd.f32 %v5353_v38, %v756_v42  ;;  %v3706_v45 = vpop.f32.mrb[3].mxu0  ;;  %v138_v42 = vld [vmem:[%s6120_s11 + $0x48] sm:$0xff] }
 0x7c7   :  { %v770_v45 = vpop.permute.xlu1 %769 }
 0x7c8   :  { %v3248_v35 = vmul.f32 -1.442695, %v757_v28 }
 0x7ca   :  { %4695 = vpow2.f32 %v3248_v35  ;;  %v139_v35 = vld [vmem:[%s6120_s11 + $0x50] sm:$0xff] }
 0x7cb   :  { %4697 = vtanh.f32 %v757_v28  ;;  %v5407_v28 = vpack.c.bf16 %v138_v42, %v137_v10 }
 0x7cd   :  { %6216 = vst [vmem:[#allocation31_spill] sm:$0xff] %v5407_v28 }
 0x7d4   :  { %v4696_v44 = vpop.eup %4695 }
 0x7d5   :  { %v764_v57 = vadd.f32 1.0, %v4696_v44  ;;  %v4698_v24 = vpop.eup %4697  ;;  %v140_v44 = vld [vmem:[%s6120_s11 + $0x58] sm:$0xff] }
 0x7d7   :  { %4699 = vrcp.f32 %v764_v57  ;;  %v5418_v57 = vpack.c.bf16 %v140_v44, %v139_v35  ;;  %v5455_v35 = vld [vmem:[%s6121_s13] sm:$0xff] }
 0x7d9   :  { %6217 = vst [vmem:[#allocation32_spill] sm:$0xff] %v5418_v57 }
 0x7e1   :  { %v4700_v0 = vpop.eup %4699 }
 0x7e2   :  { %v767_v29 = vsel %vm4989_vm6, %v4698_v24, %v4700_v0 }
 0x7e3   :  { %774 = vrot.lane.b32.xlu0 %v767_v29, %s4804_s16  ;;  %v772_v24 = vmul.f32 %v770_v45, %v767_v29  ;;  %v3251_v45 = vld [vmem:[%s6110_s0 + $0x8] sm:$0xff] }
 0x855   :  { %v775_v51 = vpop.permute.xlu0 %774 }
 0x856   :  { %v777_v56 = vmul.f32 %v775_v51, %v767_v29 }
 0x858   :  { %779 = vrot.lane.b32.xlu0 %v777_v56, %s4805_s17  ;;  %v141_v56 = vld [vmem:[%s6120_s11 + $0x60] sm:$0xff] }
 0x859   :  { %v5430_v50 = vpack.c.bf16 %v142_v4, %v141_v56 }
 0x85b   :  { %6218 = vst [vmem:[#allocation33_spill] sm:$0xff] %v5430_v50 }
 0x85c   :  { %263 = vrot.lane.b32.xlu0 %v4998_v49, %s4807_s3  ;;  %v135_v49 = vld [vmem:[%s6120_s11 + $0x30] sm:$0xff] }
 0x85d   :  { %v5397_v9 = vpack.c.bf16 %v136_v54, %v135_v49 }
 0x85f   :  { %6215 = vst [vmem:[#allocation30_spill] sm:$0xff] %v5397_v9  ;;  %4328 = vmatpush3.bf16.msra.mxu1 %v5397_v9 }
 0x860   :  { %4329 = vmatprep.subr.bf16.mxu1 %v6210_v43 }
 0x863   :  { %4331 = vmatpush3.bf16.msra.mxu1 %v5407_v28 }
 0x864   :  { %4332 = vmatprep.subr.bf16.mxu1 %v6210_v43 }
 0x867   :  { %4334 = vmatpush3.bf16.msra.mxu1 %v5418_v57 }
 0x868   :  { %4335 = vmatprep.subr.bf16.mxu1 %v6210_v43 }
 0x86b   :  { %4337 = vmatpush3.bf16.msra.mxu1 %v5430_v50 }
 0x86c   :  { %4338 = vmatprep.subr.bf16.mxu1 %v6210_v43 }
 0x86f   :  { %4340 = vmatpush3.bf16.msra.mxu1 %v5440_v18 }
 0x870   :  { %3742 = vmatprep.subr.mxu1 %v6211_v22 }
 0x8ca   :  { %v780_v0 = vpop.permute.xlu0 %779 }
 0x8cb   :  { %v5421_v51 = vadd.f32 %v780_v0, %v772_v24  ;;  %v5489_v24 = vld [vmem:[%s6122_s12] ss:$0 sm:$0xff] }
 0x8cd   :  { %4701 = vtanh.f32 %v5421_v51 }
 0x8ce   :  { %v264_v59 = vpop.permute.xlu0 %263 }
 0x8cf   :  { %266 = vst.msk [vmem:[#allocation3] sm:$0xff] %vm52_vm0, %v264_v59 }
 0x8d6   :  { %v951_v49 = vld [vmem:[#allocation3] sm:$0xff] }
 0x8d7   :  { %v4702_v54 = vpop.eup %4701  ;;  %1031 = vrot.lane.b32.xlu0 %v951_v49, %s4805_s17 }
 0x8d8   :  { %785 = vrot.lane.b32.xlu1 %v4702_v54, %s4804_s16 }
 0x94a   :  { %v786_v10 = vpop.permute.xlu1 %785 }
 0x94b   :  { %v788_v42 = vmul.f32 %v786_v10, %v767_v29 }
 0x94d   :  { %795 = vst.msk [vmem:[#allocation2] sm:$0xff] %vm794_vm5, %v788_v42 }
 0x954   :  { %v796_v44 = vld [vmem:[#allocation2] sm:$0xff] }
 0x955   :  { %3740 = vmatmul.mubr.f32.vlgmr.msra.gmra.mrb[6].mxu1 %v796_v44  ;;  %949 = vst.msk [vmem:[#allocation2] sm:$0xff] %vm52_vm0, %v3251_v45 }
 0x956   :  { %3743 = vmatpush3.msra.mxu1 %v5455_v35  ;;  %3744 = vmatprep.mubr.msk.f32.mxu1 %vm4801_vm1, %v6211_v22 }
 0x957   :  { %4365 = vmatprep.subr.bf16.mxu1 %v6210_v43 }
 0x95c   :  { %v950_v29 = vld [vmem:[#allocation2] sm:$0xff] }
 0x95d   :  { %3745 = vmatmul.mubr.msk.f32.vlgmr.msra.gmra.mrb[6].mxu1 %vm61_vm2, %v5153_v36  ;;  %3780 = vmatmul.mubr.f32.vlgmr.msra.gmra.mrb[4].mxu0 %v950_v29 }
 0x95e   :  { %4367 = vmatpush3.bf16.msra.mxu1 %v5009_v52  ;;  %3786 = vmatprep.mubr.msk.f32.mxu1 %vm4801_vm1, %v6211_v22 }
 0x95f   :  { %4368 = vmatprep.subr.bf16.mxu1 %v6210_v43  ;;  %4400 = vmatpush3.bf16.msra.mxu0 %v5194_v61 }
 0x960   :  { %4401 = vmatprep.subr.bf16.mxu0 %v6210_v43  ;;  %3867 = vmatprep.mubr.msk.f32.mxu0 %vm4801_vm1, %v6211_v22 }
 0x963   :  { %4403 = vmatpush3.bf16.msra.mxu0 %v5200_v62 }
 0x964   :  { %4404 = vmatprep.subr.bf16.mxu0 %v6210_v43 }
 0x967   :  { %4406 = vmatpush3.bf16.msra.mxu0 %v5210_v8 }
 0x968   :  { %4407 = vmatprep.subr.bf16.mxu0 %v6210_v43 }
 0x96b   :  { %4409 = vmatpush3.bf16.msra.mxu0 %v5220_v13 }
 0x96c   :  { %4410 = vmatprep.subr.bf16.mxu0 %v6210_v43 }
 0x96f   :  { %4412 = vmatpush3.bf16.msra.mxu0 %v5230_v19 }
 0x970   :  { %4413 = vmatprep.subr.bf16.mxu0 %v6210_v43 }
 0x973   :  { %4415 = vmatpush3.bf16.msra.mxu0 %v5240_v27 }
 0x974   :  { %4416 = vmatprep.subr.bf16.mxu0 %v6210_v43 }
 0x977   :  { %4418 = vmatpush3.bf16.msra.mxu0 %v5308_v53 }
 0x978   :  { %4419 = vmatprep.subr.bf16.mxu0 %v6210_v43 }
 0x97b   :  { %4421 = vmatpush3.bf16.msra.mxu0 %v5317_v41 }
 0x97c   :  { %4446 = vmatprep.subr.bf16.mxu0 %v6210_v43 }
 0xa30   :  { %v941_v0 = vpop.f32.mrb[6].mxu1  ;;  %v1018_v56 = vpop.f32.mrb[4].mxu0 }
 0xa31   :  { %v4656_v4 = vadd.f32 %v5489_v24, %v941_v0  ;;  %v1019_v46 = vadd.f32 %v4986_v32, %v1018_v56  ;;  %v3746_v15 = vpop.f32.mrb[7].mxu1  ;;  %v3781_v59 = vpop.f32.mrb[5].mxu0  ;;  %v5502_v0 = vld [vmem:[#allocation6] sm:$0xff] }
 0xa32   :  { %v1032_v56 = vpop.permute.xlu0 %1031 }
 0xa33   :  { %946 = vst [vmem:[%s6123_s14] sm:$0xff] %v4656_v4  ;;  %v3252_v49 = vmul.f32 -1.442695, %v1019_v46 }
 0xa35   :  { %4703 = vpow2.f32 %v3252_v49 }
 0xa36   :  { %4705 = vtanh.f32 %v1019_v46 }
 0xa3f   :  { %v4704_v54 = vpop.eup %4703 }
 0xa40   :  { %v1026_v10 = vadd.f32 1.0, %v4704_v54  ;;  %v4706_v42 = vpop.eup %4705 }
 0xa42   :  { %4707 = vrcp.f32 %v1026_v10 }
 0xa4c   :  { %v4708_v45 = vpop.eup %4707 }
 0xa4d   :  { %v1029_v44 = vsel %vm4989_vm6, %v4706_v42, %v4708_v45 }
 0xa4e   :  { %1036 = vrot.lane.b32.xlu1 %v1029_v44, %s4804_s16  ;;  %v1034_v4 = vmul.f32 %v1032_v56, %v1029_v44 }
 0xac0   :  { %v1037_v32 = vpop.permute.xlu1 %1036 }
 0xac1   :  { %v1039_v29 = vmul.f32 %v1037_v32, %v1029_v44 }
 0xac3   :  { %1041 = vrot.lane.b32.xlu1 %v1039_v29, %s4805_s17 }
 0xac7   :  { %649 = vrot.lane.b32.xlu1 %v5153_v36, %s4808_s4 }
 0xacb   :  { %1284 = vrot.lane.b32.xlu1 %v5502_v0, %s4806_s27 }
 0xb35   :  { %v1042_v46 = vpop.permute.xlu1 %1041 }
 0xb36   :  { %v5506_v15 = vadd.f32 %v1042_v46, %v1034_v4 }
 0xb38   :  { %4709 = vtanh.f32 %v5506_v15 }
 0xb39   :  { %v650_v59 = vpop.permute.xlu1 %649 }
 0xb3a   :  { %v652_v49 = vadd.f32 %v650_v59, %v5027_v58 }
 0xb3c   :  { %v653_v54 = vsel %vm61_vm2, %v5153_v36, %v652_v49 }
 0xb3d   :  { %654 = vst.msk [vmem:[#allocation5] sm:$0xff] %vm55_vm7, %v653_v54 }
 0xb42   :  { %v4710_v10 = vpop.eup %4709 }
 0xb43   :  { %1047 = vrot.lane.b32.xlu0 %v4710_v10, %s4804_s16 }
 0xb44   :  { %v5514_v42 = vld [vmem:[#allocation5] sm:$0xff] }
 0xb45   :  { %3787 = vmatmul.mubr.msk.f32.vlgmr.msra.gmra.mrb[8].mxu1 %vm55_vm7, %v5514_v42 }
 0xb46   :  { %4370 = vmatpush3.bf16.msra.mxu1 %v5019_v55  ;;  %3797 = vmatprep.mubr.msk.f32.mxu1 %vm4801_vm1, %v6211_v22 }
 0xb47   :  { %4371 = vmatprep.subr.bf16.mxu1 %v6210_v43 }
 0xb4a   :  { %4373 = vmatpush3.bf16.msra.mxu1 %v5032_v60 }
 0xb4b   :  { %4374 = vmatprep.subr.bf16.mxu1 %v6210_v43 }
 0xbb5   :  { %v1048_v58 = vpop.permute.xlu0 %1047 }
 0xbb6   :  { %v5524_v36 = vmul.f32 %v1048_v58, %v1029_v44 }
 0xbb8   :  { %1135 = vrot.lane.b32.xlu0 %v5524_v36, %s4805_s17 }
 0xc18   :  { %v1131_v45 = vpop.f32.mrb[8].mxu1 }
 0xc19   :  { %v3788_v32 = vpop.f32.mrb[9].mxu1 }
 0xc2a   :  { %v1136_v29 = vpop.permute.xlu0 %1135 }
 0xc2b   :  { %3798 = vmatmul.mubr.msk.f32.vlgmr.msra.gmra.mrb[10].mxu1 %vm52_vm0, %v1136_v29 }
 0xc2c   :  { %4376 = vmatpush3.bf16.msra.mxu1 %v5050_v6  ;;  %3832 = vmatprep.mubr.msk.f32.mxu1 %vm4801_vm1, %v6211_v22 }
 0xc2d   :  { %4377 = vmatprep.subr.bf16.mxu1 %v6210_v43 }
 0xc30   :  { %4379 = vmatpush3.bf16.msra.mxu1 %v5060_v12 }
 0xc31   :  { %4380 = vmatprep.subr.bf16.mxu1 %v6210_v43 }
 0xc34   :  { %4382 = vmatpush3.bf16.msra.mxu1 %v5072_v16 }
 0xc35   :  { %4383 = vmatprep.subr.bf16.mxu1 %v6210_v43 }
 0xc38   :  { %4385 = vmatpush3.bf16.msra.mxu1 %v5082_v21 }
 0xc39   :  { %4386 = vmatprep.subr.bf16.mxu1 %v6210_v43 }
 0xc3c   :  { %4388 = vmatpush3.bf16.msra.mxu1 %v5093_v25 }
 0xc3d   :  { %4389 = vmatprep.subr.bf16.mxu1 %v6210_v43 }
 0xc40   :  { %4391 = vmatpush3.bf16.msra.mxu1 %v5103_v30 }
 0xc41   :  { %4392 = vmatprep.subr.bf16.mxu1 %v6210_v43 }
 0xc44   :  { %4394 = vmatpush3.bf16.msra.mxu1 %v5113_v34 }
 0xc45   :  { %4395 = vmatprep.subr.bf16.mxu1 %v6210_v43 }
 0xc48   :  { %4397 = vmatpush3.bf16.msra.mxu1 %v5122_v37 }
 0xc49   :  { %4422 = vmatprep.subr.bf16.mxu1 %v6210_v43 }
 0xcfe   :  { %v1205_v44 = vpop.f32.mrb[10].mxu1 }
 0xcff   :  { %v1206_v56 = vadd.f32 %v1205_v44, %v1131_v45  ;;  %v3799_v4 = vpop.f32.mrb[11].mxu1 }
 0xd01   :  { %v1209_v46 = vadd.f32 %v1206_v56, %v5131_v40  ;;  %v1285_v40 = vpop.permute.xlu1 %1284 }
 0xd02   :  { %v1287_v49 = vsel %vm501_vm8, -1e+20, %v1285_v40 }
 0xd03   :  { %4711 = vtanh.f32 %v1209_v46  ;;  %v1288_v54 = vmax.f32 %v5502_v0, %v1287_v49 }
 0xd05   :  { %v1289_v10 = vsub.f32 %v5502_v0, %v1288_v54  ;;  %v1292_v58 = vsub.f32 %v1287_v49, %v1288_v54 }
 0xd07   :  { %v1290_v45 = vmul.f32 1.442695, %v1289_v10  ;;  %v1293_v32 = vmul.f32 1.442695, %v1292_v58 }
 0xd09   :  { %4713 = vpow2.f32 %v1290_v45 }
 0xd0a   :  { %4715 = vpow2.f32 %v1293_v32 }
 0xd0d   :  { %v4712_v59 = vpop.eup %4711 }
 0xd0e   :  { %3833 = vmatmul.mubr.f32.vlgmr.msra.gmra.mrb[12].mxu1 %v4712_v59 }
 0xd0f   :  { %4424 = vmatpush3.bf16.msra.mxu1 %v5369_v47  ;;  %3902 = vmatprep.mubr.msk.f32.mxu1 %vm4801_vm1, %v6211_v22 }
 0xd10   :  { %4425 = vmatprep.subr.bf16.mxu1 %v6210_v43 }
 0xd13   :  { %4427 = vmatpush3.bf16.msra.mxu1 %v5377_v48  ;;  %v4714_v29 = vpop.eup %4713 }
 0xd14   :  { %4428 = vmatprep.subr.bf16.mxu1 %v6210_v43  ;;  %v4716_v44 = vpop.eup %4715 }
 0xd15   :  { %v1295_v56 = vadd.f32 %v4716_v44, %v4714_v29 }
 0xd17   :  { %4430 = vmatpush3.bf16.msra.mxu1 %v5387_v1  ;;  %4717 = vlog2.f32 %v1295_v56 }
 0xd18   :  { %4431 = vmatprep.subr.bf16.mxu1 %v6210_v43 }
 0xd1b   :  { %4433 = vmatpush3.bf16.msra.mxu1 %v5397_v9  ;;  %v6231_v9 = vld [vmem:[#allocation24_spill] sm:$0xff] }
 0xd1c   :  { %4434 = vmatprep.subr.bf16.mxu1 %v6210_v43 }
 0xd1f   :  { %4436 = vmatpush3.bf16.msra.mxu1 %v5407_v28 }
 0xd20   :  { %4437 = vmatprep.subr.bf16.mxu1 %v6210_v43 }
 0xd21   :  { %v4718_v4 = vpop.eup %4717 }
 0xd22   :  { %v1297_v46 = vmul.f32 0.6931472, %v4718_v4  ;;  %v6221_v4 = vld [vmem:[#allocation11_spill] sm:$0xff] }
 0xd23   :  { %4439 = vmatpush3.bf16.msra.mxu1 %v5418_v57 }
 0xd24   :  { %4440 = vmatprep.subr.bf16.mxu1 %v6210_v43 }
 0xd27   :  { %4442 = vmatpush3.bf16.msra.mxu1 %v5430_v50 }
 0xd28   :  { %4443 = vmatprep.subr.bf16.mxu1 %v6210_v43 }
 0xd2b   :  { %4445 = vmatpush3.bf16.msra.mxu1 %v5440_v18  ;;  %v1298_v18 = vadd.f32 %v1297_v46, %v1288_v54 }
 0xd2c   :  { %3905 = vmatprep.subr.mxu1 %v6211_v22 }
 0xde1   :  { %v1277_v59 = vpop.f32.mrb[12].mxu1 }
 0xde2   :  { %v1281_v40 = vsel %vm494_vm9, -1e+20, %v1277_v59  ;;  %v3834_v50 = vpop.f32.mrb[13].mxu1  ;;  %v6222_v59 = vld [vmem:[#allocation12_spill] sm:$0xff] }
 0xde3   :  { %v1299_v57 = vadd.f32 %v1298_v18, %v1281_v40 }
 0xde5   :  { %1300 = vst.msk [vmem:[#allocation6] sm:$0xff] %vm61_vm2, %v1299_v57  ;;  %v1301_v0 = vsel %vm61_vm2, %v1299_v57, -inf }
 0xde6   :  { %1302 = vmax.xlane.f32.xlu0 %v1301_v0  ;;  %v6223_v0 = vld [vmem:[#allocation13_spill] sm:$0xff] }
 0xe73   :  { %v1303_v49 = vpop.xlane.xlu0 %1302 }
 0xe74   :  { %v1304_v10 = vsub.f32 %v1299_v57, %v1303_v49  ;;  %v6220_v57 = vld [vmem:[#allocation10_spill] sm:$0xff] }
 0xe76   :  { %v1305_v58 = vmul.f32 1.442695, %v1304_v10  ;;  %v6224_v10 = vld [vmem:[#allocation14_spill] sm:$0xff] }
 0xe78   :  { %4719 = vpow2.f32 %v1305_v58 }
 0xe82   :  { %v4720_v45 = vpop.eup %4719 }
 0xe83   :  { %v1307_v32 = vsel %vm61_vm2, %v4720_v45, 0.0 }
 0xe84   :  { %1308 = vadd.xlane.f32.xlu1 %v1307_v32 }
 0xf11   :  { %v1309_v29 = vpop.xlane.xlu1 %1308 }
 0xf12   :  { %4721 = vrcp.f32 %v1309_v29 }
 0xf1c   :  { %v4722_v54 = vpop.eup %4721 }
 0xf1d   :  { %v5574_v44 = vmul.f32 %v4722_v54, %v4720_v45  ;;  %v6225_v45 = vld [vmem:[#allocation15_spill] sm:$0xff] }
 0xf1f   :  { %v1322_v50 = vrot.slane %v5574_v44, %v5149_v31  ;;  %v1315_v18 = vrot.slane %v5574_v44, %v5151_v33  ;;  %v1336_v56 = vrot.slane %v5574_v44, %v6220_v57  ;;  %v1329_v46 = vrot.slane %v5574_v44, %v6221_v4 }
 0xf20   :  { %v1350_v40 = vrot.slane %v5574_v44, %v6222_v59  ;;  %v1343_v49 = vrot.slane %v5574_v44, %v6223_v0  ;;  %v1364_v58 = vrot.slane %v5574_v44, %v6224_v10  ;;  %v1357_v32 = vrot.slane %v5574_v44, %v6225_v45  ;;  %v6228_v59 = vld [vmem:[#allocation21_spill] sm:$0xff] }
 0xf21   :  { %1324 = vbcast.lane.b32.xlu1 %v1322_v50, 256  ;;  %1317 = vbcast.lane.b32.xlu0 %v1315_v18, 256  ;;  %v6226_v50 = vld [vmem:[#allocation19_spill] sm:$0xff] }
 0xf25   :  { %1338 = vbcast.lane.b32.xlu1 %v1336_v56, 256  ;;  %1331 = vbcast.lane.b32.xlu0 %v1329_v46, 256  ;;  %v6227_v56 = vld [vmem:[#allocation20_spill] sm:$0xff] }
 0xf29   :  { %1352 = vbcast.lane.b32.xlu1 %v1350_v40, 256  ;;  %1345 = vbcast.lane.b32.xlu0 %v1343_v49, 256 }
 0xf2d   :  { %1366 = vbcast.lane.b32.xlu1 %v1364_v58, 256  ;;  %1359 = vbcast.lane.b32.xlu0 %v1357_v32, 256 }
 0xf31   :  { %1057 = vrot.lane.b32.xlu0 %v5524_v36, %s4807_s3  ;;  %v6229_v36 = vld [vmem:[#allocation22_spill] sm:$0xff] }
 0xf35   :  { %790 = vrot.lane.b32.xlu0 %v5421_v51, %s4807_s3 }
 0xf93   :  { %v1325_v29 = vpop.permute.xlu1 %1324  ;;  %v1318_v54 = vpop.permute.xlu0 %1317 }
 0xf94   :  { %v1369_v18 = vmul.f32 %v1325_v29, %v6226_v50  ;;  %v1368_v46 = vmul.f32 %v1318_v54, %v6227_v56 }
 0xf96   :  { %v1383_v40 = vsel %vm52_vm0, %v1369_v18, 0.0  ;;  %v1376_v49 = vsel %vm52_vm0, %v1368_v46, 0.0 }
 0xf97   :  { %v1384_v10 = vrot.slane %v1383_v40, 4  ;;  %v1377_v45 = vrot.slane %v1376_v49, 4  ;;  %v1339_v58 = vpop.permute.xlu1 %1338  ;;  %v1332_v32 = vpop.permute.xlu0 %1331 }
 0xf98   :  { %v1371_v0 = vmul.f32 %v1339_v58, %v6228_v59  ;;  %v1370_v57 = vmul.f32 %v1332_v32, %v6229_v36 }
 0xf99   :  { %v1385_v4 = vadd.f32 %v1384_v10, %v1383_v40  ;;  %v1378_v51 = vadd.f32 %v1377_v45, %v1376_v49 }
 0xf9a   :  { %v1397_v33 = vsel %vm52_vm0, %v1371_v0, 0.0  ;;  %v1390_v29 = vsel %vm52_vm0, %v1370_v57, 0.0 }
 0xf9b   :  { %v1386_v50 = vrot.slane %v1385_v4, 2  ;;  %v1379_v54 = vrot.slane %v1378_v51, 2  ;;  %v1398_v56 = vrot.slane %v1397_v33, 4  ;;  %v1391_v18 = vrot.slane %v1390_v29, 4  ;;  %v1353_v31 = vpop.permute.xlu1 %1352  ;;  %v1346_v46 = vpop.permute.xlu0 %1345 }
 0xf9c   :  { %v1373_v28 = vmul.f32 %v1353_v31, %v6230_v63  ;;  %v1372_v1 = vmul.f32 %v1346_v46, %v6231_v9 }
 0xf9d   :  { %v1387_v48 = vadd.f32 %v1386_v50, %v1385_v4  ;;  %v1380_v59 = vadd.f32 %v1379_v54, %v1378_v51  ;;  %v1399_v58 = vadd.f32 %v1398_v56, %v1397_v33  ;;  %v1392_v32 = vadd.f32 %v1391_v18, %v1390_v29 }
 0xf9e   :  { %v1411_v10 = vsel %vm52_vm0, %v1373_v28, 0.0  ;;  %v1404_v0 = vsel %vm52_vm0, %v1372_v1, 0.0 }
 0xf9f   :  { %v1388_v45 = vrot.slane %v1387_v48, 1  ;;  %v1381_v57 = vrot.slane %v1380_v59, 1  ;;  %v1400_v40 = vrot.slane %v1399_v58, 2  ;;  %v1393_v49 = vrot.slane %v1392_v32, 2  ;;  %v1367_v36 = vpop.permute.xlu1 %1366  ;;  %v1360_v47 = vpop.permute.xlu0 %1359 }
 0xfa0   :  { %v1412_v41 = vrot.slane %v1411_v10, 4  ;;  %v1405_v53 = vrot.slane %v1404_v0, 4  ;;  %v1375_v63 = vmul.f32 %v1367_v36, %v5288_v2  ;;  %v1374_v31 = vmul.f32 %v1360_v47, %v5293_v3 }
 0xfa1   :  { %v1389_v9 = vadd.f32 %v1388_v45, %v1387_v48  ;;  %v1401_v4 = vadd.f32 %v1400_v40, %v1399_v58  ;;  %v1394_v33 = vadd.f32 %v1393_v49, %v1392_v32  ;;  %v1382_v50 = vadd.f32 %v1381_v57, %v1380_v59 }
 0xfa2   :  { %v1413_v51 = vadd.f32 %v1412_v41, %v1411_v10  ;;  %v1406_v29 = vadd.f32 %v1405_v53, %v1404_v0  ;;  %v1425_v28 = vsel %vm52_vm0, %v1375_v63, 0.0  ;;  %v1418_v1 = vsel %vm52_vm0, %v1374_v31, 0.0 }
 0xfa3   :  { %v1402_v54 = vrot.slane %v1401_v4, 1  ;;  %v1395_v56 = vrot.slane %v1394_v33, 1  ;;  %v1426_v18 = vrot.slane %v1425_v28, 4  ;;  %v1058_v46 = vpop.permute.xlu0 %1057  ;;  %v1419_v13 = vrot.slane %v1418_v1, 4 }
 0xfa4   :  { %v1414_v27 = vrot.slane %v1413_v51, 2  ;;  %v1407_v19 = vrot.slane %v1406_v29, 2  ;;  %1060 = vst.msk [vmem:[#allocation2] sm:$0xff] %vm271_vm11, %v1058_v46  ;;  %v1447_v53 = vsel %vm663_vm10, %v1389_v9, %v1382_v50 }
 0xfa5   :  { %v1396_v2 = vadd.f32 %v1395_v56, %v1394_v33  ;;  %v1427_v3 = vadd.f32 %v1426_v18, %v1425_v28  ;;  %v1420_v41 = vadd.f32 %v1419_v13, %v1418_v1  ;;  %v1403_v58 = vadd.f32 %v1402_v54, %v1401_v4 }
 0xfa6   :  { %v1415_v47 = vadd.f32 %v1414_v27, %v1413_v51  ;;  %v1408_v48 = vadd.f32 %v1407_v19, %v1406_v29 }
 0xfa7   :  { %v1428_v32 = vrot.slane %v1427_v3, 2  ;;  %v791_v10 = vpop.permute.xlu0 %790  ;;  %v1448_v59 = vsel %vm6179_vm12, %v1396_v2, %v1447_v53  ;;  %v1421_v57 = vrot.slane %v1420_v41, 2  ;;  %vm6232_vm12 = vcmask 523520  }
 0xfa8   :  { %v1416_v0 = vrot.slane %v1415_v47, 1  ;;  %v1409_v45 = vrot.slane %v1408_v48, 1  ;;  %793 = vst.msk [vmem:[#allocation4] sm:$0xff] %vm52_vm0, %v791_v10  ;;  %v1449_v19 = vsel %vm667_vm13, %v1403_v58, %v1448_v59 }
 0xfa9   :  { %v1429_v40 = vadd.f32 %v1428_v32, %v1427_v3  ;;  %v1422_v36 = vadd.f32 %v1421_v57, %v1420_v41 }
 0xfaa   :  { %v1410_v49 = vadd.f32 %v1409_v45, %v1408_v48  ;;  %v1417_v63 = vadd.f32 %v1416_v0, %v1415_v47 }
 0xfab   :  { %v1430_v31 = vrot.slane %v1429_v40, 1  ;;  %v1423_v13 = vrot.slane %v1422_v36, 1 }
 0xfac   :  { %v1450_v27 = vsel %vm669_vm14, %v1410_v49, %v1449_v19 }
 0xfad   :  { %v1431_v9 = vadd.f32 %v1430_v31, %v1429_v40  ;;  %v1424_v4 = vadd.f32 %v1423_v13, %v1422_v36  ;;  %v1451_v51 = vsel %vm671_vm15, %v1417_v63, %v1450_v27  ;;  %v5692_v13 = vld [vmem:[%s6111_s5] ss:$0 sm:$0xff] }
 0xfaf   :  { %v1459_v33 = vld [vmem:[#allocation4] sm:$0xff]  ;;  %v1452_v29 = vsel %vm673_vm3, %v1424_v4, %v1451_v51 }
 0xfb0   :  { %1539 = vrot.lane.b32.xlu0 %v1459_v33, %s4805_s17  ;;  %v1453_v28 = vsel %vm675_vm4, %v1431_v9, %v1452_v29 }
 0xfb1   :  { %1454 = vrot.lane.b32.xlu1 %v1453_v28, %s4805_s17 }
0x1023   :  { %v1455_v1 = vpop.permute.xlu1 %1454 }
0x1024   :  { %1457 = vst.msk [vmem:[#allocation2] sm:$0xff] %vm6232_vm12, %v1455_v1  ;;  %vm6263_vm12 = vcmask 1042434  }
0x102b   :  { %v1458_v50 = vld [vmem:[#allocation2] sm:$0xff] }
0x102c   :  { %3868 = vmatmul.mubr.f32.vlgmr.msra.gmra.mrb[6].mxu0 %v1458_v50 }
0x102d   :  { %4448 = vmatpush3.bf16.msra.mxu0 %v4901_v5  ;;  %3942 = vmatprep.mubr.msk.f32.mxu0 %vm4801_vm1, %v6211_v22 }
0x102e   :  { %4449 = vmatprep.subr.bf16.mxu0 %v6210_v43 }
0x1031   :  { %4451 = vmatpush3.bf16.msra.mxu0 %v4910_v7 }
0x1032   :  { %4452 = vmatprep.subr.bf16.mxu0 %v6210_v43 }
0x1035   :  { %4454 = vmatpush3.bf16.msra.mxu0 %v4924_v11 }
0x1036   :  { %4455 = vmatprep.subr.bf16.mxu0 %v6210_v43 }
0x1039   :  { %4457 = vmatpush3.bf16.msra.mxu0 %v4934_v14 }
0x103a   :  { %4458 = vmatprep.subr.bf16.mxu0 %v6210_v43 }
0x103d   :  { %4460 = vmatpush3.bf16.msra.mxu0 %v4944_v17 }
0x103e   :  { %4461 = vmatprep.subr.bf16.mxu0 %v6210_v43 }
0x1041   :  { %4463 = vmatpush3.bf16.msra.mxu0 %v4954_v20 }
0x1042   :  { %4464 = vmatprep.subr.bf16.mxu0 %v6210_v43 }
0x1045   :  { %4466 = vmatpush3.bf16.msra.mxu0 %v4964_v23 }
0x1046   :  { %4467 = vmatprep.subr.bf16.mxu0 %v6210_v43 }
0x1049   :  { %4469 = vmatpush3.bf16.msra.mxu0 %v4974_v26 }
0x104a   :  { %4479 = vmatprep.subr.bf16.mxu0 %v6210_v43 }
0x10ff   :  { %v1526_v54 = vpop.f32.mrb[6].mxu0 }
0x1100   :  { %v1527_v56 = vadd.f32 %v5353_v38, %v1526_v54  ;;  %v3869_v18 = vpop.f32.mrb[7].mxu0  ;;  %v1540_v38 = vpop.permute.xlu0 %1539 }
0x1102   :  { %v3255_v46 = vmul.f32 -1.442695, %v1527_v56 }
0x1104   :  { %4723 = vpow2.f32 %v3255_v46 }
0x1105   :  { %4725 = vtanh.f32 %v1527_v56  ;;  %v5704_v56 = vld [vmem:[#allocation6] sm:$0xff] }
0x110e   :  { %v4724_v2 = vpop.eup %4723 }
0x110f   :  { %v1534_v3 = vadd.f32 1.0, %v4724_v2  ;;  %v4726_v47 = vpop.eup %4725 }
0x1111   :  { %4727 = vrcp.f32 %v1534_v3 }
0x111b   :  { %v4728_v48 = vpop.eup %4727 }
0x111c   :  { %v1537_v41 = vsel %vm4989_vm6, %v4726_v47, %v4728_v48 }
0x111d   :  { %1544 = vrot.lane.b32.xlu1 %v1537_v41, %s4804_s16  ;;  %v1542_v32 = vmul.f32 %v1540_v38, %v1537_v41 }
0x118f   :  { %v1545_v53 = vpop.permute.xlu1 %1544 }
0x1190   :  { %v1547_v58 = vmul.f32 %v1545_v53, %v1537_v41 }
0x1192   :  { %1549 = vrot.lane.b32.xlu1 %v1547_v58, %s4805_s17 }
0x1196   :  { %1052 = vrot.lane.b32.xlu1 %v5506_v15, %s4807_s3  ;;  %v3258_v15 = vld [vmem:[%s6110_s0 + $0x10] sm:$0xff] }
0x1204   :  { %v1550_v10 = vpop.permute.xlu1 %1549 }
0x1205   :  { %v5649_v59 = vadd.f32 %v1550_v10, %v1542_v32 }
0x1207   :  { %4729 = vtanh.f32 %v5649_v59 }
0x1208   :  { %v1053_v0 = vpop.permute.xlu1 %1052 }
0x1209   :  { %1055 = vst.msk [vmem:[#allocation3] sm:$0xff] %vm52_vm0, %v1053_v0  ;;  %v6233_v0 = vld [vmem:[#allocation16_spill] sm:$0xff] }
0x1210   :  { %v1715_v45 = vld [vmem:[#allocation3] sm:$0xff] }
0x1211   :  { %v4730_v57 = vpop.eup %4729  ;;  %1795 = vrot.lane.b32.xlu1 %v1715_v45, %s4805_s17  ;;  %v6234_v45 = vld [vmem:[#allocation17_spill] sm:$0xff] }
0x1212   :  { %1555 = vrot.lane.b32.xlu0 %v4730_v57, %s4804_s16  ;;  %v6235_v57 = vld [vmem:[#allocation18_spill] sm:$0xff] }
0x1283   :  { %v1796_v18 = vpop.permute.xlu1 %1795 }
0x1284   :  { %v1556_v40 = vpop.permute.xlu0 %1555 }
0x1285   :  { %v1558_v49 = vmul.f32 %v1556_v40, %v1537_v41  ;;  %v6236_v40 = vld [vmem:[#allocation25_spill] sm:$0xff] }
0x1287   :  { %1564 = vst.msk [vmem:[#allocation2] sm:$0xff] %vm794_vm5, %v1558_v49  ;;  %v6237_v49 = vld [vmem:[#allocation26_spill] sm:$0xff] }
0x128e   :  { %v1565_v36 = vld [vmem:[#allocation2] sm:$0xff] }
0x128f   :  { %3903 = vmatmul.mubr.f32.vlgmr.msra.gmra.mrb[14].mxu1 %v1565_v36  ;;  %1713 = vst.msk [vmem:[#allocation2] sm:$0xff] %vm52_vm0, %v3258_v15 }
0x1290   :  { %3906 = vmatpush3.msra.mxu1 %v5455_v35  ;;  %3907 = vmatprep.mubr.msk.f32.mxu1 %vm4801_vm1, %v6211_v22 }
0x1291   :  { %4470 = vmatprep.subr.bf16.mxu1 %v6210_v43 }
0x1296   :  { %v1714_v63 = vld [vmem:[#allocation2] sm:$0xff] }
0x1297   :  { %3908 = vmatmul.mubr.msk.f32.vlgmr.msra.gmra.mrb[14].mxu1 %vm61_vm2, %v5574_v44  ;;  %3943 = vmatmul.mubr.f32.vlgmr.msra.gmra.mrb[8].mxu0 %v1714_v63 }
0x1298   :  { %4472 = vmatpush3.bf16.msra.mxu1 %v5009_v52  ;;  %3949 = vmatprep.mubr.msk.f32.mxu1 %vm4801_vm1, %v6211_v22 }
0x1299   :  { %4473 = vmatprep.subr.bf16.mxu1 %v6210_v43  ;;  %4481 = vmatpush3.bf16.msra.mxu0 %v5050_v6 }
0x129a   :  { %4482 = vmatprep.subr.bf16.mxu0 %v6210_v43  ;;  %3995 = vmatprep.mubr.msk.f32.mxu0 %vm4801_vm1, %v6211_v22 }
0x129d   :  { %4484 = vmatpush3.bf16.msra.mxu0 %v5060_v12 }
0x129e   :  { %4485 = vmatprep.subr.bf16.mxu0 %v6210_v43 }
0x12a1   :  { %4487 = vmatpush3.bf16.msra.mxu0 %v5072_v16 }
0x12a2   :  { %4488 = vmatprep.subr.bf16.mxu0 %v6210_v43 }
0x12a5   :  { %4490 = vmatpush3.bf16.msra.mxu0 %v5082_v21 }
0x12a6   :  { %4491 = vmatprep.subr.bf16.mxu0 %v6210_v43 }
0x12a9   :  { %4493 = vmatpush3.bf16.msra.mxu0 %v5093_v25 }
0x12aa   :  { %4494 = vmatprep.subr.bf16.mxu0 %v6210_v43 }
0x12ad   :  { %4496 = vmatpush3.bf16.msra.mxu0 %v5103_v30 }
0x12ae   :  { %4497 = vmatprep.subr.bf16.mxu0 %v6210_v43 }
0x12b1   :  { %4499 = vmatpush3.bf16.msra.mxu0 %v5113_v34 }
0x12b2   :  { %4500 = vmatprep.subr.bf16.mxu0 %v6210_v43 }
0x12b5   :  { %4502 = vmatpush3.bf16.msra.mxu0 %v5122_v37 }
0x12b6   :  { %4527 = vmatprep.subr.bf16.mxu0 %v6210_v43 }
0x136a   :  { %v1704_v35 = vpop.f32.mrb[14].mxu1  ;;  %v1782_v31 = vpop.f32.mrb[8].mxu0 }
0x136b   :  { %v4657_v19 = vadd.f32 %v5489_v24, %v1704_v35  ;;  %v1783_v27 = vadd.f32 %v5692_v13, %v1782_v31  ;;  %v3909_v9 = vpop.f32.mrb[15].mxu1  ;;  %v3944_v4 = vpop.f32.mrb[9].mxu0  ;;  %v5752_v35 = vld [vmem:[%s6115_s2] sm:$0xff] }
0x136c   :  { %6238 = vst [vmem:[#allocation19_spill] sm:$0xff] %v5752_v35  ;;  %v6240_v9 = vld [vmem:[#allocation28_spill] sm:$0xff]  ;;  %v6241_v4 = vld [vmem:[#allocation29_spill] sm:$0xff] }
0x136d   :  { %3257 = vst [vmem:[%s6123_s14 + $0x8] sm:$0xff] %v4657_v19  ;;  %v3259_v33 = vmul.f32 -1.442695, %v1783_v27 }
0x136f   :  { %4731 = vpow2.f32 %v3259_v33  ;;  %v6242_v33 = vld [vmem:[#allocation30_spill] sm:$0xff] }
0x1370   :  { %4733 = vtanh.f32 %v1783_v27  ;;  %v6239_v27 = vld [vmem:[#allocation27_spill] sm:$0xff] }
0x1379   :  { %v4732_v51 = vpop.eup %4731 }
0x137a   :  { %v1790_v29 = vadd.f32 1.0, %v4732_v51  ;;  %v4734_v24 = vpop.eup %4733  ;;  %v6243_v51 = vld [vmem:[#allocation31_spill] sm:$0xff] }
0x137c   :  { %4735 = vrcp.f32 %v1790_v29  ;;  %v6244_v29 = vld [vmem:[#allocation32_spill] sm:$0xff] }
0x1386   :  { %v4736_v28 = vpop.eup %4735 }
0x1387   :  { %v1793_v1 = vsel %vm4989_vm6, %v4734_v24, %v4736_v28  ;;  %v6245_v24 = vld [vmem:[#allocation33_spill] sm:$0xff]  ;;  %v6246_v28 = vld [vmem:[#allocation34_spill] sm:$0xff] }
0x1388   :  { %1800 = vrot.lane.b32.xlu0 %v1793_v1, %s4804_s16  ;;  %v1798_v46 = vmul.f32 %v1796_v18, %v1793_v1 }
0x13fa   :  { %v1801_v50 = vpop.permute.xlu0 %1800 }
0x13fb   :  { %v1803_v54 = vmul.f32 %v1801_v50, %v1793_v1 }
0x13fd   :  { %1805 = vrot.lane.b32.xlu0 %v1803_v54, %s4805_s17 }
0x1401   :  { %1433 = vrot.lane.b32.xlu0 %v5574_v44, %s4808_s4 }
0x1405   :  { %2048 = vrot.lane.b32.xlu0 %v5704_v56, %s4806_s27 }
0x146f   :  { %v1806_v2 = vpop.permute.xlu0 %1805 }
0x1470   :  { %v5708_v3 = vadd.f32 %v1806_v2, %v1798_v46 }
0x1472   :  { %4737 = vtanh.f32 %v5708_v3 }
0x1473   :  { %v1434_v47 = vpop.permute.xlu0 %1433 }
0x1474   :  { %v1436_v48 = vadd.f32 %v1434_v47, %v5514_v42 }
0x1476   :  { %v1437_v41 = vsel %vm61_vm2, %v5574_v44, %v1436_v48 }
0x1477   :  { %1438 = vst.msk [vmem:[#allocation5] sm:$0xff] %vm55_vm7, %v1437_v41 }
0x147c   :  { %v4738_v53 = vpop.eup %4737 }
0x147d   :  { %1811 = vrot.lane.b32.xlu1 %v4738_v53, %s4804_s16 }
0x147e   :  { %v5716_v58 = vld [vmem:[#allocation5] sm:$0xff] }
0x147f   :  { %3950 = vmatmul.mubr.msk.f32.vlgmr.msra.gmra.mrb[16].mxu1 %vm55_vm7, %v5716_v58 }
0x1480   :  { %4475 = vmatpush3.bf16.msra.mxu1 %v5019_v55  ;;  %3960 = vmatprep.mubr.msk.f32.mxu1 %vm4801_vm1, %v6211_v22 }
0x1481   :  { %4476 = vmatprep.subr.bf16.mxu1 %v6210_v43 }
0x1484   :  { %4478 = vmatpush3.bf16.msra.mxu1 %v5032_v60 }
0x1485   :  { %4503 = vmatprep.subr.bf16.mxu1 %v6210_v43 }
0x14ef   :  { %v1812_v42 = vpop.permute.xlu1 %1811 }
0x14f0   :  { %v5726_v44 = vmul.f32 %v1812_v42, %v1793_v1  ;;  %v2049_v1 = vpop.permute.xlu0 %2048 }
0x14f1   :  { %v2051_v50 = vsel %vm501_vm8, -1e+20, %v2049_v1 }
0x14f2   :  { %1899 = vrot.lane.b32.xlu1 %v5726_v44, %s4805_s17  ;;  %v2052_v54 = vmax.f32 %v5704_v56, %v2051_v50 }
0x14f4   :  { %v2053_v18 = vsub.f32 %v5704_v56, %v2052_v54  ;;  %v2056_v46 = vsub.f32 %v2051_v50, %v2052_v54 }
0x14f6   :  { %v2054_v2 = vmul.f32 1.442695, %v2053_v18  ;;  %v2057_v47 = vmul.f32 1.442695, %v2056_v46 }
0x1552   :  { %v1895_v38 = vpop.f32.mrb[16].mxu1 }
0x1553   :  { %v3951_v32 = vpop.f32.mrb[17].mxu1 }
0x1564   :  { %v1900_v10 = vpop.permute.xlu1 %1899 }
0x1565   :  { %3961 = vmatmul.mubr.msk.f32.vlgmr.msra.gmra.mrb[18].mxu1 %vm52_vm0, %v1900_v10 }
0x1566   :  { %4505 = vmatpush3.bf16.msra.mxu1 %v5194_v61  ;;  %4030 = vmatprep.mubr.msk.f32.mxu1 %vm4801_vm1, %v6211_v22 }
0x1567   :  { %4506 = vmatprep.subr.bf16.mxu1 %v6210_v43 }
0x156a   :  { %4508 = vmatpush3.bf16.msra.mxu1 %v5200_v62 }
0x156b   :  { %4509 = vmatprep.subr.bf16.mxu1 %v6210_v43 }
0x156e   :  { %4511 = vmatpush3.bf16.msra.mxu1 %v5210_v8 }
0x156f   :  { %4512 = vmatprep.subr.bf16.mxu1 %v6210_v43 }
0x1572   :  { %4514 = vmatpush3.bf16.msra.mxu1 %v6233_v0 }
0x1573   :  { %4515 = vmatprep.subr.bf16.mxu1 %v6210_v43 }
0x1576   :  { %4517 = vmatpush3.bf16.msra.mxu1 %v6234_v45 }
0x1577   :  { %4518 = vmatprep.subr.bf16.mxu1 %v6210_v43 }
0x157a   :  { %4520 = vmatpush3.bf16.msra.mxu1 %v6235_v57 }
0x157b   :  { %4521 = vmatprep.subr.bf16.mxu1 %v6210_v43 }
0x157e   :  { %4523 = vmatpush3.bf16.msra.mxu1 %v6236_v40 }
0x157f   :  { %4524 = vmatprep.subr.bf16.mxu1 %v6210_v43 }
0x1582   :  { %4526 = vmatpush3.bf16.msra.mxu1 %v6237_v49 }
0x1583   :  { %4068 = vmatprep.subr.mxu1 %v6211_v22 }
0x1638   :  { %v1969_v15 = vpop.f32.mrb[18].mxu1 }
0x1639   :  { %v1970_v36 = vadd.f32 %v1969_v15, %v1895_v38  ;;  %v3962_v63 = vpop.f32.mrb[19].mxu1 }
0x163b   :  { %v1973_v31 = vadd.f32 %v5752_v35, %v1970_v36 }
0x163d   :  { %4739 = vtanh.f32 %v1973_v31 }
0x163e   :  { %4741 = vpow2.f32 %v2054_v2 }
0x163f   :  { %4743 = vpow2.f32 %v2057_v47 }
0x1647   :  { %v4740_v19 = vpop.eup %4739 }
0x1648   :  { %3996 = vmatmul.mubr.f32.vlgmr.msra.gmra.mrb[10].mxu0 %v4740_v19  ;;  %v4742_v48 = vpop.eup %4741 }
0x1649   :  { %4529 = vmatpush3.bf16.msra.mxu0 %v6239_v27  ;;  %4065 = vmatprep.mubr.msk.f32.mxu0 %vm4801_vm1, %v6211_v22  ;;  %v4744_v41 = vpop.eup %4743 }
0x164a   :  { %4530 = vmatprep.subr.bf16.mxu0 %v6210_v43  ;;  %v2059_v53 = vadd.f32 %v4744_v41, %v4742_v48  ;;  %v6248_v48 = vld [vmem:[#allocation8_spill] sm:$0xff] }
0x164c   :  { %4745 = vlog2.f32 %v2059_v53  ;;  %v6249_v53 = vld [vmem:[#allocation9_spill] sm:$0xff] }
0x164d   :  { %4532 = vmatpush3.bf16.msra.mxu0 %v6240_v9 }
0x164e   :  { %4533 = vmatprep.subr.bf16.mxu0 %v6210_v43 }
0x1651   :  { %4535 = vmatpush3.bf16.msra.mxu0 %v6241_v4 }
0x1652   :  { %4536 = vmatprep.subr.bf16.mxu0 %v6210_v43 }
0x1655   :  { %4538 = vmatpush3.bf16.msra.mxu0 %v6242_v33 }
0x1656   :  { %4539 = vmatprep.subr.bf16.mxu0 %v6210_v43  ;;  %v4746_v42 = vpop.eup %4745 }
0x1657   :  { %v2061_v38 = vmul.f32 0.6931472, %v4746_v42 }
0x1659   :  { %4541 = vmatpush3.bf16.msra.mxu0 %v6243_v51  ;;  %v2062_v10 = vadd.f32 %v2061_v38, %v2052_v54  ;;  %v6250_v38 = vld [vmem:[#allocation11_spill] sm:$0xff] }
0x165a   :  { %4542 = vmatprep.subr.bf16.mxu0 %v6210_v43 }
0x165d   :  { %4544 = vmatpush3.bf16.msra.mxu0 %v6244_v29 }
0x165e   :  { %4545 = vmatprep.subr.bf16.mxu0 %v6210_v43 }
0x1661   :  { %4547 = vmatpush3.bf16.msra.mxu0 %v6245_v24 }
0x1662   :  { %4548 = vmatprep.subr.bf16.mxu0 %v6210_v43 }
0x1665   :  { %4550 = vmatpush3.bf16.msra.mxu0 %v6246_v28 }
0x1666   :  { %4584 = vmatprep.subr.bf16.mxu0 %v6210_v43 }
0x171b   :  { %v2041_v32 = vpop.f32.mrb[10].mxu0 }
0x171c   :  { %v2045_v36 = vsel %vm494_vm9, -1e+20, %v2041_v32  ;;  %v3997_v63 = vpop.f32.mrb[11].mxu0 }
0x171d   :  { %v2063_v31 = vadd.f32 %v2062_v10, %v2045_v36  ;;  %v6251_v10 = vld [vmem:[#allocation10_spill] sm:$0xff]  ;;  %v6252_v63 = vld [vmem:[#allocation13_spill] sm:$0xff] }
0x171f   :  { %2064 = vst.msk [vmem:[#allocation6] sm:$0xff] %vm61_vm2, %v2063_v31  ;;  %v2065_v56 = vsel %vm61_vm2, %v2063_v31, -inf }
0x1720   :  { %2066 = vmax.xlane.f32.xlu1 %v2065_v56  ;;  %v6253_v56 = vld [vmem:[#allocation12_spill] sm:$0xff] }
0x17ad   :  { %v2067_v19 = vpop.xlane.xlu1 %2066 }
0x17ae   :  { %v2068_v1 = vsub.f32 %v2063_v31, %v2067_v19 }
0x17b0   :  { %v2069_v50 = vmul.f32 1.442695, %v2068_v1  ;;  %v6254_v1 = vld [vmem:[#allocation15_spill] sm:$0xff] }
0x17b2   :  { %4747 = vpow2.f32 %v2069_v50 }
0x17bc   :  { %v4748_v18 = vpop.eup %4747 }
0x17bd   :  { %v2071_v46 = vsel %vm61_vm2, %v4748_v18, 0.0 }
0x17be   :  { %2072 = vadd.xlane.f32.xlu0 %v2071_v46 }
0x184b   :  { %v2073_v2 = vpop.xlane.xlu0 %2072 }
0x184c   :  { %4749 = vrcp.f32 %v2073_v2 }
0x1856   :  { %v4750_v54 = vpop.eup %4749 }
0x1857   :  { %v5781_v47 = vmul.f32 %v4750_v54, %v4748_v18  ;;  %v6255_v18 = vld [vmem:[#allocation14_spill] sm:$0xff] }
0x1859   :  { %v2086_v41 = vrot.slane %v5781_v47, %v6248_v48  ;;  %v2079_v42 = vrot.slane %v5781_v47, %v6249_v53  ;;  %v2093_v32 = vrot.slane %v5781_v47, %v6250_v38  ;;  %v2100_v36 = vrot.slane %v5781_v47, %v6251_v10 }
0x185a   :  { %v2107_v31 = vrot.slane %v5781_v47, %v6252_v63  ;;  %v2114_v19 = vrot.slane %v5781_v47, %v6253_v56  ;;  %v2121_v50 = vrot.slane %v5781_v47, %v6254_v1  ;;  %v2128_v46 = vrot.slane %v5781_v47, %v6255_v18  ;;  %v5820_v1 = vld [vmem:[%s6118_s1 + $0x10] sm:$0xff] }
0x185b   :  { %2088 = vbcast.lane.b32.xlu1 %v2086_v41, 256  ;;  %2081 = vbcast.lane.b32.xlu0 %v2079_v42, 256  ;;  %v5806_v41 = vld [vmem:[%s6118_s1 + $0x8] sm:$0xff]  ;;  %6258 = vst [vmem:[#allocation22_spill] sm:$0xff] %v5820_v1 }
0x185c   :  { %6256 = vst [vmem:[#allocation20_spill] sm:$0xff] %v5806_v41 }
0x185f   :  { %2095 = vbcast.lane.b32.xlu1 %v2093_v32, 256  ;;  %2102 = vbcast.lane.b32.xlu0 %v2100_v36, 256  ;;  %v5812_v32 = vld [vmem:[%s6118_s1] sm:$0xff] }
0x1860   :  { %6257 = vst [vmem:[#allocation21_spill] sm:$0xff] %v5812_v32 }
0x1863   :  { %2109 = vbcast.lane.b32.xlu1 %v2107_v31, 256  ;;  %2116 = vbcast.lane.b32.xlu0 %v2114_v19, 256 }
0x1867   :  { %2123 = vbcast.lane.b32.xlu1 %v2121_v50, 256  ;;  %2130 = vbcast.lane.b32.xlu0 %v2128_v46, 256 }
0x186b   :  { %1821 = vrot.lane.b32.xlu1 %v5726_v44, %s4807_s3 }
0x186f   :  { %1560 = vrot.lane.b32.xlu1 %v5649_v59, %s4807_s3 }
0x18cd   :  { %v2089_v2 = vpop.permute.xlu1 %2088  ;;  %v2082_v54 = vpop.permute.xlu0 %2081 }
0x18ce   :  { %v2133_v42 = vmul.f32 %v5806_v41, %v2089_v2  ;;  %v2132_v36 = vmul.f32 %v5812_v32, %v2082_v54  ;;  %v5826_v41 = vld [vmem:[%s6118_s1 + $0x18] sm:$0xff] }
0x18cf   :  { %6259 = vst [vmem:[#allocation23_spill] sm:$0xff] %v5826_v41 }
0x18d0   :  { %v2147_v44 = vsel %vm52_vm0, %v2133_v42, 0.0  ;;  %v2140_v59 = vsel %vm52_vm0, %v2132_v36, 0.0 }
0x18d1   :  { %v2148_v31 = vrot.slane %v2147_v44, 4  ;;  %v2141_v19 = vrot.slane %v2140_v59, 4  ;;  %v2096_v50 = vpop.permute.xlu1 %2095  ;;  %v2103_v46 = vpop.permute.xlu0 %2102 }
0x18d2   :  { %v2134_v2 = vmul.f32 %v5820_v1, %v2096_v50  ;;  %v2135_v54 = vmul.f32 %v5826_v41, %v2103_v46  ;;  %v5834_v50 = vld [vmem:[%s6118_s1 + $0x20] sm:$0xff] }
0x18d3   :  { %v2149_v42 = vadd.f32 %v2148_v31, %v2147_v44  ;;  %v2142_v36 = vadd.f32 %v2141_v19, %v2140_v59  ;;  %6260 = vst [vmem:[#allocation24_spill] sm:$0xff] %v5834_v50  ;;  %v5840_v44 = vld [vmem:[%s6118_s1 + $0x28] sm:$0xff] }
0x18d4   :  { %v2154_v32 = vsel %vm52_vm0, %v2134_v2, 0.0  ;;  %v2161_v18 = vsel %vm52_vm0, %v2135_v54, 0.0  ;;  %6261 = vst [vmem:[#allocation16_spill] sm:$0xff] %v5840_v44 }
0x18d5   :  { %v2150_v63 = vrot.slane %v2149_v42, 2  ;;  %v2143_v56 = vrot.slane %v2142_v36, 2  ;;  %v2155_v38 = vrot.slane %v2154_v32, 4  ;;  %v2162_v10 = vrot.slane %v2161_v18, 4  ;;  %v2110_v53 = vpop.permute.xlu1 %2109  ;;  %v2117_v48 = vpop.permute.xlu0 %2116 }
0x18d6   :  { %v2136_v1 = vmul.f32 %v5834_v50, %v2110_v53  ;;  %v2137_v59 = vmul.f32 %v5840_v44, %v2117_v48  ;;  %v5848_v48 = vld [vmem:[%s6118_s1 + $0x30] sm:$0xff] }
0x18d7   :  { %v2151_v31 = vadd.f32 %v2150_v63, %v2149_v42  ;;  %v2144_v19 = vadd.f32 %v2143_v56, %v2142_v36  ;;  %v2156_v46 = vadd.f32 %v2155_v38, %v2154_v32  ;;  %v2163_v2 = vadd.f32 %v2162_v10, %v2161_v18  ;;  %6262 = vst [vmem:[#allocation17_spill] sm:$0xff] %v5848_v48  ;;  %v5854_v10 = vld [vmem:[%s6118_s1 + $0x38] sm:$0xff] }
0x18d8   :  { %v2168_v54 = vsel %vm52_vm0, %v2136_v1, 0.0  ;;  %v2175_v41 = vsel %vm52_vm0, %v2137_v59, 0.0 }
0x18d9   :  { %v2152_v15 = vrot.slane %v2151_v31, 1  ;;  %v2145_v28 = vrot.slane %v2144_v19, 1  ;;  %v2157_v24 = vrot.slane %v2156_v46, 2  ;;  %v2164_v29 = vrot.slane %v2163_v2, 2  ;;  %v2124_v53 = vpop.permute.xlu1 %2123  ;;  %v2131_v50 = vpop.permute.xlu0 %2130 }
0x18da   :  { %v2169_v51 = vrot.slane %v2168_v54, 4  ;;  %v2176_v33 = vrot.slane %v2175_v41, 4  ;;  %v2138_v38 = vmul.f32 %v5848_v48, %v2124_v53  ;;  %v2139_v63 = vmul.f32 %v5854_v10, %v2131_v50 }
0x18db   :  { %v2153_v56 = vadd.f32 %v2152_v15, %v2151_v31  ;;  %v2158_v1 = vadd.f32 %v2157_v24, %v2156_v46  ;;  %v2165_v18 = vadd.f32 %v2164_v29, %v2163_v2  ;;  %v2146_v44 = vadd.f32 %v2145_v28, %v2144_v19 }
0x18dc   :  { %v2170_v32 = vadd.f32 %v2169_v51, %v2168_v54  ;;  %v2177_v42 = vadd.f32 %v2176_v33, %v2175_v41  ;;  %v2182_v36 = vsel %vm52_vm0, %v2138_v38, 0.0  ;;  %v2189_v59 = vsel %vm52_vm0, %v2139_v63, 0.0 }
0x18dd   :  { %v2159_v4 = vrot.slane %v2158_v1, 1  ;;  %v2166_v9 = vrot.slane %v2165_v18, 1  ;;  %v2183_v53 = vrot.slane %v2182_v36, 4  ;;  %v1822_v48 = vpop.permute.xlu1 %1821  ;;  %v2190_v49 = vrot.slane %v2189_v59, 4 }
0x18de   :  { %v2171_v27 = vrot.slane %v2170_v32, 2  ;;  %v2178_v35 = vrot.slane %v2177_v42, 2  ;;  %1824 = vst.msk [vmem:[#allocation2] sm:$0xff] %vm271_vm11, %v1822_v48  ;;  %v2211_v33 = vsel %vm663_vm10, %v2153_v56, %v2146_v44 }
0x18df   :  { %v2160_v50 = vadd.f32 %v2159_v4, %v2158_v1  ;;  %v2184_v15 = vadd.f32 %v2183_v53, %v2182_v36  ;;  %v2191_v51 = vadd.f32 %v2190_v49, %v2189_v59  ;;  %v2167_v41 = vadd.f32 %v2166_v9, %v2165_v18  ;;  %v5874_v53 = vld [vmem:[%s6121_s13] sm:$0xff] }
0x18e0   :  { %v2172_v24 = vadd.f32 %v2171_v27, %v2170_v32  ;;  %v2179_v29 = vadd.f32 %v2178_v35, %v2177_v42 }
0x18e1   :  { %v2185_v31 = vrot.slane %v2184_v15, 2  ;;  %v1561_v46 = vpop.permute.xlu1 %1560  ;;  %v2212_v28 = vsel %vm6263_vm12, %v2160_v50, %v2211_v33  ;;  %v2192_v54 = vrot.slane %v2191_v51, 2  ;;  %vm6264_vm12 = vcmask 523520  }
0x18e2   :  { %v2173_v19 = vrot.slane %v2172_v24, 1  ;;  %v2180_v2 = vrot.slane %v2179_v29, 1  ;;  %1563 = vst.msk [vmem:[#allocation4] sm:$0xff] %vm52_vm0, %v1561_v46  ;;  %v2213_v35 = vsel %vm667_vm13, %v2167_v41, %v2212_v28 }
0x18e3   :  { %v2186_v38 = vadd.f32 %v2185_v31, %v2184_v15  ;;  %v2193_v4 = vadd.f32 %v2192_v54, %v2191_v51 }
0x18e4   :  { %v2174_v63 = vadd.f32 %v2173_v19, %v2172_v24  ;;  %v2181_v48 = vadd.f32 %v2180_v2, %v2179_v29 }
0x18e5   :  { %v2187_v1 = vrot.slane %v2186_v38, 1  ;;  %v2194_v49 = vrot.slane %v2193_v4, 1 }
0x18e6   :  { %v2214_v27 = vsel %vm669_vm14, %v2174_v63, %v2213_v35 }
0x18e7   :  { %v2188_v9 = vadd.f32 %v2187_v1, %v2186_v38  ;;  %v2195_v44 = vadd.f32 %v2194_v49, %v2193_v4  ;;  %v2215_v56 = vsel %vm671_vm15, %v2181_v48, %v2214_v27 }
0x18e9   :  { %v2223_v18 = vld [vmem:[#allocation4] sm:$0xff]  ;;  %v2216_v32 = vsel %vm673_vm3, %v2188_v9, %v2215_v56 }
0x18ea   :  { %2303 = vrot.lane.b32.xlu1 %v2223_v18, %s4805_s17  ;;  %v2217_v42 = vsel %vm675_vm4, %v2195_v44, %v2216_v32 }
0x18eb   :  { %2218 = vrot.lane.b32.xlu0 %v2217_v42, %s4805_s17 }
0x195c   :  { %v2304_v41 = vpop.permute.xlu1 %2303 }
0x195d   :  { %v2219_v36 = vpop.permute.xlu0 %2218 }
0x195e   :  { %2221 = vst.msk [vmem:[#allocation2] sm:$0xff] %vm6264_vm12, %v2219_v36 }
0x1965   :  { %v2222_v59 = vld [vmem:[#allocation2] sm:$0xff] }
0x1966   :  { %4031 = vmatmul.mubr.f32.vlgmr.msra.gmra.mrb[20].mxu1 %v2222_v59 }
0x1967   :  { %4069 = vmatpush3.msra.mxu1 %v5874_v53  ;;  %4070 = vmatprep.mubr.msk.f32.mxu1 %vm4801_vm1, %v6211_v22 }
0x1968   :  { %4551 = vmatprep.subr.bf16.mxu1 %v6210_v43 }
0x196a   :  { %4071 = vmatmul.mubr.msk.f32.vlgmr.msra.gmra.mrb[22].mxu1 %vm61_vm2, %v5781_v47 }
0x196b   :  { %4553 = vmatpush3.bf16.msra.mxu1 %v4901_v5  ;;  %4105 = vmatprep.mubr.msk.f32.mxu1 %vm4801_vm1, %v6211_v22 }
0x196c   :  { %4554 = vmatprep.subr.bf16.mxu1 %v6210_v43 }
0x196f   :  { %4556 = vmatpush3.bf16.msra.mxu1 %v4910_v7  ;;  %v5903_v7 = vld [vmem:[%s6119_s7] ss:$0 sm:$0xff] }
0x1970   :  { %4557 = vmatprep.subr.bf16.mxu1 %v6210_v43 }
0x1973   :  { %4559 = vmatpush3.bf16.msra.mxu1 %v4924_v11 }
0x1974   :  { %4560 = vmatprep.subr.bf16.mxu1 %v6210_v43 }
0x1977   :  { %4562 = vmatpush3.bf16.msra.mxu1 %v4934_v14 }
0x1978   :  { %4563 = vmatprep.subr.bf16.mxu1 %v6210_v43 }
0x197b   :  { %4565 = vmatpush3.bf16.msra.mxu1 %v4944_v17 }
0x197c   :  { %4566 = vmatprep.subr.bf16.mxu1 %v6210_v43 }
0x197f   :  { %4568 = vmatpush3.bf16.msra.mxu1 %v4954_v20 }
0x1980   :  { %4569 = vmatprep.subr.bf16.mxu1 %v6210_v43 }
0x1983   :  { %4571 = vmatpush3.bf16.msra.mxu1 %v4964_v23 }
0x1984   :  { %4572 = vmatprep.subr.bf16.mxu1 %v6210_v43 }
0x1987   :  { %4574 = vmatpush3.bf16.msra.mxu1 %v4974_v26 }
0x1988   :  { %4575 = vmatprep.subr.bf16.mxu1 %v6210_v43 }
0x1a39   :  { %v2290_v5 = vpop.f32.mrb[20].mxu1 }
0x1a3a   :  { %v2291_v11 = vadd.f32 %v5903_v7, %v2290_v5  ;;  %v4032_v14 = vpop.f32.mrb[21].mxu1 }
0x1a3c   :  { %v3262_v17 = vmul.f32 -1.442695, %v2291_v11 }
0x1a3d   :  { %v2468_v20 = vpop.f32.mrb[22].mxu1 }
0x1a3e   :  { %4751 = vpow2.f32 %v3262_v17  ;;  %v4072_v50 = vpop.f32.mrb[23].mxu1 }
0x1a3f   :  { %4753 = vtanh.f32 %v2291_v11 }
0x1a48   :  { %v4752_v23 = vpop.eup %4751 }
0x1a49   :  { %v2298_v15 = vadd.f32 1.0, %v4752_v23  ;;  %v4754_v26 = vpop.eup %4753 }
0x1a4b   :  { %4755 = vrcp.f32 %v2298_v15  ;;  %v6267_v15 = vld [vmem:[#allocation27_spill] sm:$0xff] }
0x1a55   :  { %v4756_v24 = vpop.eup %4755 }
0x1a56   :  { %v2301_v29 = vsel %vm4989_vm6, %v4754_v26, %v4756_v24  ;;  %v6270_v26 = vld [vmem:[#allocation30_spill] sm:$0xff]  ;;  %v6271_v24 = vld [vmem:[#allocation31_spill] sm:$0xff] }
0x1a57   :  { %2308 = vrot.lane.b32.xlu0 %v2301_v29, %s4804_s16  ;;  %v2306_v31 = vmul.f32 %v2304_v41, %v2301_v29 }
0x1ac9   :  { %v2309_v51 = vpop.permute.xlu0 %2308 }
0x1aca   :  { %v2311_v33 = vmul.f32 %v2309_v51, %v2301_v29  ;;  %v6273_v51 = vld [vmem:[#allocation33_spill] sm:$0xff] }
0x1acc   :  { %2313 = vrot.lane.b32.xlu0 %v2311_v33, %s4805_s17  ;;  %v6274_v33 = vld [vmem:[#allocation34_spill] sm:$0xff] }
0x1ad0   :  { %1816 = vrot.lane.b32.xlu0 %v5708_v3, %s4807_s3  ;;  %v3265_v3 = vld [vmem:[%s6110_s0 + $0x18] sm:$0xff] }
0x1b3e   :  { %v2314_v46 = vpop.permute.xlu0 %2313 }
0x1b3f   :  { %v5912_v28 = vadd.f32 %v2314_v46, %v2306_v31 }
0x1b41   :  { %4757 = vtanh.f32 %v5912_v28 }
0x1b42   :  { %v1817_v19 = vpop.permute.xlu0 %1816 }
0x1b43   :  { %1819 = vst.msk [vmem:[#allocation3] sm:$0xff] %vm52_vm0, %v1817_v19 }
0x1b4a   :  { %v2479_v2 = vld [vmem:[#allocation3] sm:$0xff] }
0x1b4b   :  { %v4758_v54 = vpop.eup %4757  ;;  %2559 = vrot.lane.b32.xlu0 %v2479_v2, %s4805_s17 }
0x1b4c   :  { %2319 = vrot.lane.b32.xlu1 %v4758_v54, %s4804_s16 }
0x1bbd   :  { %v2560_v18 = vpop.permute.xlu0 %2559 }
0x1bbe   :  { %v2320_v38 = vpop.permute.xlu1 %2319 }
0x1bbf   :  { %v2322_v63 = vmul.f32 %v2320_v38, %v2301_v29  ;;  %v6272_v29 = vld [vmem:[#allocation32_spill] sm:$0xff] }
0x1bc1   :  { %2328 = vst.msk [vmem:[#allocation2] sm:$0xff] %vm794_vm5, %v2322_v63 }
0x1bc8   :  { %v2329_v48 = vld [vmem:[#allocation2] sm:$0xff] }
0x1bc9   :  { %4066 = vmatmul.mubr.f32.vlgmr.msra.gmra.mrb[12].mxu0 %v2329_v48  ;;  %2477 = vst.msk [vmem:[#allocation2] sm:$0xff] %vm52_vm0, %v3265_v3 }
0x1bca   :  { %4586 = vmatpush3.bf16.msra.mxu0 %v5050_v6  ;;  %4158 = vmatprep.mubr.msk.f32.mxu0 %vm4801_vm1, %v6211_v22  ;;  %v5948_v6 = vld [vmem:[%s6122_s12] ss:$0 sm:$0xff] }
0x1bcb   :  { %4587 = vmatprep.subr.bf16.mxu0 %v6210_v43 }
0x1bce   :  { %4589 = vmatpush3.bf16.msra.mxu0 %v5060_v12 }
0x1bcf   :  { %4590 = vmatprep.subr.bf16.mxu0 %v6210_v43 }
0x1bd0   :  { %v2478_v4 = vld [vmem:[#allocation2] sm:$0xff] }
0x1bd1   :  { %4106 = vmatmul.mubr.f32.vlgmr.msra.gmra.mrb[24].mxu1 %v2478_v4 }
0x1bd2   :  { %4577 = vmatpush3.bf16.msra.mxu1 %v5009_v52  ;;  %4112 = vmatprep.mubr.msk.f32.mxu1 %vm4801_vm1, %v6211_v22 }
0x1bd3   :  { %4578 = vmatprep.subr.bf16.mxu1 %v6210_v43  ;;  %4592 = vmatpush3.bf16.msra.mxu0 %v5072_v16 }
0x1bd4   :  { %4593 = vmatprep.subr.bf16.mxu0 %v6210_v43 }
0x1bd7   :  { %4595 = vmatpush3.bf16.msra.mxu0 %v5082_v21 }
0x1bd8   :  { %4596 = vmatprep.subr.bf16.mxu0 %v6210_v43 }
0x1bdb   :  { %4598 = vmatpush3.bf16.msra.mxu0 %v5093_v25 }
0x1bdc   :  { %4599 = vmatprep.subr.bf16.mxu0 %v6210_v43 }
0x1bdf   :  { %4601 = vmatpush3.bf16.msra.mxu0 %v5103_v30 }
0x1be0   :  { %4602 = vmatprep.subr.bf16.mxu0 %v6210_v43 }
0x1be3   :  { %4604 = vmatpush3.bf16.msra.mxu0 %v5113_v34 }
0x1be4   :  { %4605 = vmatprep.subr.bf16.mxu0 %v6210_v43 }
0x1be7   :  { %4607 = vmatpush3.bf16.msra.mxu0 %v5122_v37 }
0x1be8   :  { %4632 = vmatprep.subr.bf16.mxu0 %v6210_v43 }
0x1c9c   :  { %v2396_v52 = vpop.f32.mrb[12].mxu0 }
0x1c9d   :  { %v2397_v12 = vadd.f32 %v5948_v6, %v2396_v52  ;;  %v4067_v16 = vpop.f32.mrb[13].mxu0 }
0x1c9f   :  { %v2472_v21 = vadd.f32 %v2468_v20, %v2397_v12 }
0x1ca1   :  { %3264 = vst [vmem:[%s6123_s14 + $0x10] sm:$0xff] %v2472_v21 }
0x1ca4   :  { %v2546_v25 = vpop.f32.mrb[24].mxu1 }
0x1ca5   :  { %v2547_v30 = vadd.f32 %v5692_v13, %v2546_v25  ;;  %v4107_v34 = vpop.f32.mrb[25].mxu1  ;;  %v5961_v13 = vld [vmem:[#allocation6] sm:$0xff] }
0x1ca7   :  { %v3266_v37 = vmul.f32 -1.442695, %v2547_v30 }
0x1ca9   :  { %4759 = vpow2.f32 %v3266_v37 }
0x1caa   :  { %4761 = vtanh.f32 %v2547_v30 }
0x1cb3   :  { %v4760_v1 = vpop.eup %4759 }
0x1cb4   :  { %v2554_v35 = vadd.f32 1.0, %v4760_v1  ;;  %v4762_v49 = vpop.eup %4761 }
0x1cb6   :  { %4763 = vrcp.f32 %v2554_v35 }
0x1cc0   :  { %v4764_v27 = vpop.eup %4763 }
0x1cc1   :  { %v2557_v9 = vsel %vm4989_vm6, %v4762_v49, %v4764_v27 }
0x1cc2   :  { %2564 = vrot.lane.b32.xlu1 %v2557_v9, %s4804_s16  ;;  %v2562_v32 = vmul.f32 %v2560_v18, %v2557_v9 }
0x1d34   :  { %v2565_v44 = vpop.permute.xlu1 %2564 }
0x1d35   :  { %v2567_v56 = vmul.f32 %v2565_v44, %v2557_v9 }
0x1d37   :  { %2569 = vrot.lane.b32.xlu1 %v2567_v56, %s4805_s17 }
0x1d3b   :  { %2197 = vrot.lane.b32.xlu1 %v5781_v47, %s4808_s4 }
0x1d3f   :  { %2812 = vrot.lane.b32.xlu1 %v5961_v13, %s4806_s27 }
0x1da9   :  { %v2570_v42 = vpop.permute.xlu1 %2569 }
0x1daa   :  { %v5965_v36 = vadd.f32 %v2570_v42, %v2562_v32  ;;  %v6277_v32 = vld [vmem:[#allocation9_spill] sm:$0xff] }
0x1dac   :  { %4765 = vtanh.f32 %v5965_v36 }
0x1dad   :  { %v2198_v59 = vpop.permute.xlu1 %2197 }
0x1dae   :  { %v2200_v5 = vadd.f32 %v2198_v59, %v5716_v58  ;;  %v6278_v59 = vld [vmem:[#allocation10_spill] sm:$0xff] }
0x1db0   :  { %v2201_v11 = vsel %vm61_vm2, %v5781_v47, %v2200_v5 }
0x1db1   :  { %2202 = vst.msk [vmem:[#allocation5] sm:$0xff] %vm55_vm7, %v2201_v11  ;;  %v2813_v41 = vpop.permute.xlu1 %2812  ;;  %v6279_v11 = vld [vmem:[#allocation11_spill] sm:$0xff] }
0x1db2   :  { %v2815_v31 = vsel %vm501_vm8, -1e+20, %v2813_v41  ;;  %vm6291_vm8 = vcmask 1042434  }
0x1db3   :  { %v2816_v46 = vmax.f32 %v5961_v13, %v2815_v31 }
0x1db5   :  { %v2817_v19 = vsub.f32 %v5961_v13, %v2816_v46  ;;  %v2820_v2 = vsub.f32 %v2815_v31, %v2816_v46  ;;  %v6276_v13 = vld [vmem:[#allocation8_spill] sm:$0xff]  ;;  %v6286_v31 = vld [vmem:[#allocation23_spill] sm:$0xff] }
0x1db6   :  { %v4766_v14 = vpop.eup %4765 }
0x1db7   :  { %2575 = vrot.lane.b32.xlu0 %v4766_v14, %s4804_s16  ;;  %v2818_v54 = vmul.f32 1.442695, %v2817_v19  ;;  %v2821_v38 = vmul.f32 1.442695, %v2820_v2 }
0x1db8   :  { %v5973_v17 = vld [vmem:[#allocation5] sm:$0xff] }
0x1db9   :  { %4113 = vmatmul.mubr.msk.f32.vlgmr.msra.gmra.mrb[26].mxu1 %vm55_vm7, %v5973_v17 }
0x1dba   :  { %4580 = vmatpush3.bf16.msra.mxu1 %v5019_v55  ;;  %4123 = vmatprep.mubr.msk.f32.mxu1 %vm4801_vm1, %v6211_v22  ;;  %v6265_v55 = vld [vmem:[#allocation26_spill] sm:$0xff] }
0x1dbb   :  { %4581 = vmatprep.subr.bf16.mxu1 %v6210_v43 }
0x1dbe   :  { %4583 = vmatpush3.bf16.msra.mxu1 %v5032_v60 }
0x1dbf   :  { %4608 = vmatprep.subr.bf16.mxu1 %v6210_v43 }
0x1e29   :  { %v2576_v58 = vpop.permute.xlu0 %2575 }
0x1e2a   :  { %v5983_v47 = vmul.f32 %v2576_v58, %v2557_v9  ;;  %v6280_v58 = vld [vmem:[#allocation12_spill] sm:$0xff] }
0x1e2c   :  { %2663 = vrot.lane.b32.xlu0 %v5983_v47, %s4805_s17 }
0x1e8c   :  { %v2659_v20 = vpop.f32.mrb[26].mxu1 }
0x1e8d   :  { %v4114_v50 = vpop.f32.mrb[27].mxu1 }
0x1e8e   :  { %v6281_v50 = vld [vmem:[#allocation13_spill] sm:$0xff] }
0x1e9e   :  { %v2664_v23 = vpop.permute.xlu0 %2663 }
0x1e9f   :  { %4124 = vmatmul.mubr.msk.f32.vlgmr.msra.gmra.mrb[28].mxu1 %vm52_vm0, %v2664_v23 }
0x1ea0   :  { %4610 = vmatpush3.bf16.msra.mxu1 %v5194_v61  ;;  %4193 = vmatprep.mubr.msk.f32.mxu1 %vm4801_vm1, %v6211_v22 }
0x1ea1   :  { %4611 = vmatprep.subr.bf16.mxu1 %v6210_v43 }
0x1ea4   :  { %4613 = vmatpush3.bf16.msra.mxu1 %v5200_v62 }
0x1ea5   :  { %4614 = vmatprep.subr.bf16.mxu1 %v6210_v43 }
0x1ea8   :  { %4616 = vmatpush3.bf16.msra.mxu1 %v5210_v8  ;;  %v6266_v8 = vld [vmem:[#allocation19_spill] sm:$0xff] }
0x1ea9   :  { %4617 = vmatprep.subr.bf16.mxu1 %v6210_v43 }
0x1eac   :  { %4619 = vmatpush3.bf16.msra.mxu1 %v6233_v0 }
0x1ead   :  { %4620 = vmatprep.subr.bf16.mxu1 %v6210_v43 }
0x1eb0   :  { %4622 = vmatpush3.bf16.msra.mxu1 %v6234_v45 }
0x1eb1   :  { %4623 = vmatprep.subr.bf16.mxu1 %v6210_v43 }
0x1eb4   :  { %4625 = vmatpush3.bf16.msra.mxu1 %v6235_v57  ;;  %v6268_v57 = vld [vmem:[#allocation28_spill] sm:$0xff] }
0x1eb5   :  { %4626 = vmatprep.subr.bf16.mxu1 %v6210_v43 }
0x1eb8   :  { %4628 = vmatpush3.bf16.msra.mxu1 %v6236_v40  ;;  %v6269_v40 = vld [vmem:[#allocation29_spill] sm:$0xff] }
0x1eb9   :  { %4629 = vmatprep.subr.bf16.mxu1 %v6210_v43 }
0x1ebc   :  { %4631 = vmatpush3.bf16.msra.mxu1 %v6265_v55  ;;  %v6282_v55 = vld [vmem:[#allocation14_spill] sm:$0xff] }
0x1ebd   :  { %4231 = vmatprep.subr.mxu1 %v6211_v22 }
0x1f72   :  { %v2733_v60 = vpop.f32.mrb[28].mxu1 }
0x1f73   :  { %v2734_v61 = vadd.f32 %v2733_v60, %v2659_v20  ;;  %v4125_v62 = vpop.f32.mrb[29].mxu1 }
0x1f75   :  { %v2737_v0 = vadd.f32 %v6266_v8, %v2734_v61  ;;  %v6283_v61 = vld [vmem:[#allocation15_spill] sm:$0xff] }
0x1f77   :  { %4767 = vtanh.f32 %v2737_v0 }
0x1f78   :  { %4769 = vpow2.f32 %v2818_v54 }
0x1f79   :  { %4771 = vpow2.f32 %v2821_v38 }
0x1f81   :  { %v4768_v45 = vpop.eup %4767 }
0x1f82   :  { %4159 = vmatmul.mubr.f32.vlgmr.msra.gmra.mrb[14].mxu0 %v4768_v45  ;;  %v4770_v63 = vpop.eup %4769  ;;  %v6284_v45 = vld [vmem:[#allocation20_spill] sm:$0xff] }
0x1f83   :  { %4634 = vmatpush3.bf16.msra.mxu0 %v6267_v15  ;;  %4228 = vmatprep.mubr.msk.f32.mxu0 %vm4801_vm1, %v6211_v22  ;;  %v4772_v3 = vpop.eup %4771 }
0x1f84   :  { %4635 = vmatprep.subr.bf16.mxu0 %v6210_v43  ;;  %v2823_v48 = vadd.f32 %v4772_v3, %v4770_v63 }
0x1f86   :  { %4773 = vlog2.f32 %v2823_v48 }
0x1f87   :  { %4637 = vmatpush3.bf16.msra.mxu0 %v6268_v57  ;;  %v6285_v57 = vld [vmem:[#allocation21_spill] sm:$0xff] }
0x1f88   :  { %4638 = vmatprep.subr.bf16.mxu0 %v6210_v43 }
0x1f8b   :  { %4640 = vmatpush3.bf16.msra.mxu0 %v6269_v40 }
0x1f8c   :  { %4641 = vmatprep.subr.bf16.mxu0 %v6210_v43 }
0x1f8f   :  { %4643 = vmatpush3.bf16.msra.mxu0 %v6270_v26 }
0x1f90   :  { %4644 = vmatprep.subr.bf16.mxu0 %v6210_v43  ;;  %v4774_v4 = vpop.eup %4773 }
0x1f93   :  { %4646 = vmatpush3.bf16.msra.mxu0 %v6271_v24 }
0x1f94   :  { %4647 = vmatprep.subr.bf16.mxu0 %v6210_v43 }
0x1f97   :  { %4649 = vmatpush3.bf16.msra.mxu0 %v6272_v29 }
0x1f98   :  { %4650 = vmatprep.subr.bf16.mxu0 %v6210_v43 }
0x1f9b   :  { %4652 = vmatpush3.bf16.msra.mxu0 %v6273_v51 }
0x1f9c   :  { %4653 = vmatprep.subr.bf16.mxu0 %v6210_v43  ;;  %v2825_v43 = vmul.f32 0.6931472, %v4774_v4 }
0x1f9e   :  { %v2826_v12 = vadd.f32 %v2825_v43, %v2816_v46 }
0x1f9f   :  { %4655 = vmatpush3.bf16.msra.mxu0 %v6274_v33 }
0x2055   :  { %v2805_v52 = vpop.f32.mrb[14].mxu0 }
0x2056   :  { %v2809_v21 = vsel %vm494_vm9, -1e+20, %v2805_v52  ;;  %v4160_v25 = vpop.f32.mrb[15].mxu0  ;;  %vm6292_vm9 = vmmov %vm6264_vm12 }
0x2057   :  { %v2827_v30 = vadd.f32 %v2826_v12, %v2809_v21  ;;  %v6288_v12 = vld [vmem:[#allocation16_spill] sm:$0xff] }
0x2058   :  { %v6289_v21 = vld [vmem:[#allocation24_spill] sm:$0xff] }
0x2059   :  { %2828 = vst.msk [vmem:[#allocation6] sm:$0xff] %vm61_vm2, %v2827_v30  ;;  %v2829_v34 = vsel %vm61_vm2, %v2827_v30, -inf }
0x205a   :  { %2830 = vmax.xlane.f32.xlu0 %v2829_v34 }
0x20e7   :  { %v2831_v37 = vpop.xlane.xlu0 %2830 }
0x20e8   :  { %v2832_v1 = vsub.f32 %v2827_v30, %v2831_v37 }
0x20ea   :  { %v2833_v35 = vmul.f32 1.442695, %v2832_v1 }
0x20ec   :  { %4775 = vpow2.f32 %v2833_v35 }
0x20f6   :  { %v4776_v49 = vpop.eup %4775 }
0x20f7   :  { %v2835_v27 = vsel %vm61_vm2, %v4776_v49, 0.0 }
0x20f8   :  { %2836 = vadd.xlane.f32.xlu1 %v2835_v27 }
0x2185   :  { %v2837_v9 = vpop.xlane.xlu1 %2836 }
0x2186   :  { %4777 = vrcp.f32 %v2837_v9 }
0x2190   :  { %v4778_v44 = vpop.eup %4777 }
0x2191   :  { %v6032_v56 = vmul.f32 %v4778_v44, %v4776_v49 }
0x2193   :  { %v2850_v18 = vrot.slane %v6032_v56, %v6276_v13  ;;  %v2843_v42 = vrot.slane %v6032_v56, %v6277_v32  ;;  %v2864_v5 = vrot.slane %v6032_v56, %v6278_v59  ;;  %v2857_v14 = vrot.slane %v6032_v56, %v6279_v11  ;;  %v6290_v11 = vld [vmem:[#allocation17_spill] sm:$0xff] }
0x2194   :  { %v2878_v20 = vrot.slane %v6032_v56, %v6280_v58  ;;  %v2871_v23 = vrot.slane %v6032_v56, %v6281_v50  ;;  %v2892_v60 = vrot.slane %v6032_v56, %v6282_v55  ;;  %v2885_v62 = vrot.slane %v6032_v56, %v6283_v61 }
0x2195   :  { %2852 = vbcast.lane.b32.xlu1 %v2850_v18, 256  ;;  %2845 = vbcast.lane.b32.xlu0 %v2843_v42, 256 }
0x2199   :  { %2866 = vbcast.lane.b32.xlu1 %v2864_v5, 256  ;;  %2859 = vbcast.lane.b32.xlu0 %v2857_v14, 256 }
0x219d   :  { %2880 = vbcast.lane.b32.xlu1 %v2878_v20, 256  ;;  %2873 = vbcast.lane.b32.xlu0 %v2871_v23, 256 }
0x21a1   :  { %2894 = vbcast.lane.b32.xlu1 %v2892_v60, 256  ;;  %2887 = vbcast.lane.b32.xlu0 %v2885_v62, 256 }
0x21a5   :  { %2585 = vrot.lane.b32.xlu0 %v5983_v47, %s4807_s3  ;;  %v6287_v47 = vld [vmem:[#allocation22_spill] sm:$0xff] }
0x21a9   :  { %2324 = vrot.lane.b32.xlu0 %v5912_v28, %s4807_s3 }
0x2207   :  { %v2853_v8 = vpop.permute.xlu1 %2852  ;;  %v2846_v0 = vpop.permute.xlu0 %2845 }
0x2208   :  { %v2897_v15 = vmul.f32 %v6284_v45, %v2853_v8  ;;  %v2896_v40 = vmul.f32 %v6285_v57, %v2846_v0 }
0x220a   :  { %v2911_v26 = vsel %vm52_vm0, %v2897_v15, 0.0  ;;  %v2904_v24 = vsel %vm52_vm0, %v2896_v40, 0.0 }
0x220b   :  { %v2912_v29 = vrot.slane %v2911_v26, 4  ;;  %v2905_v51 = vrot.slane %v2904_v24, 4  ;;  %v2867_v33 = vpop.permute.xlu1 %2866  ;;  %v2860_v41 = vpop.permute.xlu0 %2859 }
0x220c   :  { %v2899_v46 = vmul.f32 %v6286_v31, %v2867_v33  ;;  %v2898_v19 = vmul.f32 %v6287_v47, %v2860_v41 }
0x220d   :  { %v2913_v2 = vadd.f32 %v2912_v29, %v2911_v26  ;;  %v2906_v28 = vadd.f32 %v2905_v51, %v2904_v24 }
0x220e   :  { %v2925_v54 = vsel %vm52_vm0, %v2899_v46, 0.0  ;;  %v2918_v38 = vsel %vm52_vm0, %v2898_v19, 0.0 }
0x220f   :  { %v2914_v63 = vrot.slane %v2913_v2, 2  ;;  %v2907_v3 = vrot.slane %v2906_v28, 2  ;;  %v2926_v48 = vrot.slane %v2925_v54, 4  ;;  %v2919_v4 = vrot.slane %v2918_v38, 4  ;;  %v2881_v43 = vpop.permute.xlu1 %2880  ;;  %v2874_v52 = vpop.permute.xlu0 %2873 }
0x2210   :  { %v2901_v16 = vmul.f32 %v6288_v12, %v2881_v43  ;;  %v2900_v25 = vmul.f32 %v6289_v21, %v2874_v52 }
0x2211   :  { %v2915_v30 = vadd.f32 %v2914_v63, %v2913_v2  ;;  %v2908_v34 = vadd.f32 %v2907_v3, %v2906_v28  ;;  %v2927_v37 = vadd.f32 %v2926_v48, %v2925_v54  ;;  %v2920_v1 = vadd.f32 %v2919_v4, %v2918_v38 }
0x2212   :  { %v2939_v35 = vsel %vm52_vm0, %v2901_v16, 0.0  ;;  %v2932_v49 = vsel %vm52_vm0, %v2900_v25, 0.0 }
0x2213   :  { %v2916_v27 = vrot.slane %v2915_v30, 1  ;;  %v2909_v9 = vrot.slane %v2908_v34, 1  ;;  %v2928_v44 = vrot.slane %v2927_v37, 2  ;;  %v2921_v13 = vrot.slane %v2920_v1, 2  ;;  %v2895_v18 = vpop.permute.xlu1 %2894  ;;  %v2888_v32 = vpop.permute.xlu0 %2887 }
0x2214   :  { %v2940_v42 = vrot.slane %v2939_v35, 4  ;;  %v2933_v59 = vrot.slane %v2932_v49, 4  ;;  %v2903_v5 = vmul.f32 %v5854_v10, %v2895_v18  ;;  %v2902_v14 = vmul.f32 %v6290_v11, %v2888_v32 }
0x2215   :  { %v2917_v58 = vadd.f32 %v2916_v27, %v2915_v30  ;;  %v2929_v20 = vadd.f32 %v2928_v44, %v2927_v37  ;;  %v2922_v50 = vadd.f32 %v2921_v13, %v2920_v1  ;;  %v2910_v62 = vadd.f32 %v2909_v9, %v2908_v34 }
0x2216   :  { %v2941_v23 = vadd.f32 %v2940_v42, %v2939_v35  ;;  %v2934_v55 = vadd.f32 %v2933_v59, %v2932_v49  ;;  %v2953_v60 = vsel %vm52_vm0, %v2903_v5, 0.0  ;;  %v2946_v61 = vsel %vm52_vm0, %v2902_v14, 0.0 }
0x2217   :  { %v2930_v8 = vrot.slane %v2929_v20, 1  ;;  %v2923_v0 = vrot.slane %v2922_v50, 1  ;;  %v2954_v45 = vrot.slane %v2953_v60, 4  ;;  %v2586_v15 = vpop.permute.xlu0 %2585  ;;  %v2947_v26 = vrot.slane %v2946_v61, 4 }
0x2218   :  { %v2942_v57 = vrot.slane %v2941_v23, 2  ;;  %v2935_v40 = vrot.slane %v2934_v55, 2  ;;  %2588 = vst.msk [vmem:[#allocation2] sm:$0xff] %vm271_vm11, %v2586_v15  ;;  %v2975_v41 = vsel %vm663_vm10, %v2917_v58, %v2910_v62 }
0x2219   :  { %v2924_v10 = vadd.f32 %v2923_v0, %v2922_v50  ;;  %v2955_v24 = vadd.f32 %v2954_v45, %v2953_v60  ;;  %v2948_v33 = vadd.f32 %v2947_v26, %v2946_v61  ;;  %v2931_v31 = vadd.f32 %v2930_v8, %v2929_v20 }
0x221a   :  { %v2943_v29 = vadd.f32 %v2942_v57, %v2941_v23  ;;  %v2936_v51 = vadd.f32 %v2935_v40, %v2934_v55 }
0x221b   :  { %v2956_v46 = vrot.slane %v2955_v24, 2  ;;  %v2325_v47 = vpop.permute.xlu0 %2324  ;;  %v2976_v19 = vsel %vm6291_vm8, %v2924_v10, %v2975_v41  ;;  %v2949_v54 = vrot.slane %v2948_v33, 2 }
0x221c   :  { %v2944_v2 = vrot.slane %v2943_v29, 1  ;;  %v2937_v28 = vrot.slane %v2936_v51, 1  ;;  %2327 = vst.msk [vmem:[#allocation4] sm:$0xff] %vm52_vm0, %v2325_v47  ;;  %v2977_v43 = vsel %vm667_vm13, %v2931_v31, %v2976_v19 }
0x221d   :  { %v2957_v38 = vadd.f32 %v2956_v46, %v2955_v24  ;;  %v2950_v3 = vadd.f32 %v2949_v54, %v2948_v33 }
0x221e   :  { %v2938_v63 = vadd.f32 %v2937_v28, %v2936_v51  ;;  %v2945_v48 = vadd.f32 %v2944_v2, %v2943_v29 }
0x221f   :  { %v2958_v4 = vrot.slane %v2957_v38, 1  ;;  %v2951_v52 = vrot.slane %v2950_v3, 1 }
0x2220   :  { %v2978_v12 = vsel %vm669_vm14, %v2938_v63, %v2977_v43 }
0x2221   :  { %v2959_v16 = vadd.f32 %v2958_v4, %v2957_v38  ;;  %v2952_v21 = vadd.f32 %v2951_v52, %v2950_v3  ;;  %v2979_v30 = vsel %vm671_vm15, %v2945_v48, %v2978_v12 }
0x2223   :  { %v2987_v25 = vld [vmem:[#allocation4] sm:$0xff]  ;;  %v2980_v34 = vsel %vm673_vm3, %v2952_v21, %v2979_v30 }
0x2224   :  { %3067 = vrot.lane.b32.xlu0 %v2987_v25, %s4805_s17  ;;  %v2981_v37 = vsel %vm675_vm4, %v2959_v16, %v2980_v34 }
0x2225   :  { %2982 = vrot.lane.b32.xlu1 %v2981_v37, %s4805_s17 }
0x2297   :  { %v2983_v1 = vpop.permute.xlu1 %2982 }
0x2298   :  { %2985 = vst.msk [vmem:[#allocation2] sm:$0xff] %vm6292_vm9, %v2983_v1 }
0x229f   :  { %v2986_v35 = vld [vmem:[#allocation2] sm:$0xff] }
0x22a0   :  { %4194 = vmatmul.mubr.f32.vlgmr.msra.gmra.mrb[30].mxu1 %v2986_v35 }
0x22a1   :  { %4232 = vmatpush3.msra.mxu1 %v5874_v53  ;;  %4233 = vmatprep.mubr.msk.f32.mxu1 %vm4801_vm1, %v6211_v22 }
0x22a4   :  { %4234 = vmatmul.mubr.msk.f32.vlgmr.msra.gmra.mrb[32].mxu1 %vm61_vm2, %v6032_v56 }
0x2373   :  { %v3054_v49 = vpop.f32.mrb[30].mxu1 }
0x2374   :  { %v3055_v27 = vadd.f32 %v5903_v7, %v3054_v49  ;;  %v4195_v9 = vpop.f32.mrb[31].mxu1  ;;  %v3068_v7 = vpop.permute.xlu0 %3067 }
0x2376   :  { %v3269_v44 = vmul.f32 -1.442695, %v3055_v27 }
0x2377   :  { %v3232_v13 = vpop.f32.mrb[32].mxu1 }
0x2378   :  { %4779 = vpow2.f32 %v3269_v44  ;;  %v4235_v18 = vpop.f32.mrb[33].mxu1 }
0x2379   :  { %4781 = vtanh.f32 %v3055_v27 }
0x2382   :  { %v4780_v32 = vpop.eup %4779 }
0x2383   :  { %v3062_v42 = vadd.f32 1.0, %v4780_v32  ;;  %v4782_v59 = vpop.eup %4781 }
0x2385   :  { %4783 = vrcp.f32 %v3062_v42 }
0x238f   :  { %v4784_v53 = vpop.eup %4783 }
0x2390   :  { %v3065_v22 = vsel %vm4989_vm6, %v4782_v59, %v4784_v53 }
0x2391   :  { %3072 = vrot.lane.b32.xlu1 %v3065_v22, %s4804_s16  ;;  %v3070_v14 = vmul.f32 %v3068_v7, %v3065_v22 }
0x2403   :  { %v3073_v5 = vpop.permute.xlu1 %3072 }
0x2404   :  { %v3075_v11 = vmul.f32 %v3073_v5, %v3065_v22 }
0x2406   :  { %3077 = vrot.lane.b32.xlu1 %v3075_v11, %s4805_s17 }
0x240a   :  { %2961 = vrot.lane.b32.xlu1 %v6032_v56, %s4808_s4 }
0x2478   :  { %v3078_v58 = vpop.permute.xlu1 %3077 }
0x2479   :  { %v3080_v20 = vadd.f32 %v3078_v58, %v3070_v14 }
0x247b   :  { %4785 = vtanh.f32 %v3080_v20  ;;  %3088 = vrot.lane.b32.xlu1 %v3080_v20, %s4807_s3 }
0x247c   :  { %v2962_v50 = vpop.permute.xlu1 %2961 }
0x247d   :  { %v2964_v39 = vadd.f32 %v2962_v50, %v5973_v17 }
0x247f   :  { %v2965_v23 = vsel %vm61_vm2, %v6032_v56, %v2964_v39 }
0x2480   :  { %2966 = vst.msk [vmem:[#allocation5] sm:$0xff] %vm55_vm7, %v2965_v23 }
0x2485   :  { %v4786_v55 = vpop.eup %4785 }
0x2486   :  { %3083 = vrot.lane.b32.xlu0 %v4786_v55, %s4804_s16 }
0x248a   :  { %2580 = vrot.lane.b32.xlu0 %v5965_v36, %s4807_s3 }
0x24ed   :  { %v3089_v60 = vpop.permute.xlu1 %3088 }
0x24ee   :  { %3091 = vst.msk [vmem:[#allocation4] sm:$0xff] %vm52_vm0, %v3089_v60 }
0x24f8   :  { %v3084_v61 = vpop.permute.xlu0 %3083 }
0x24f9   :  { %v3086_v62 = vmul.f32 %v3084_v61, %v3065_v22 }
0x24fb   :  { %3092 = vst.msk [vmem:[#allocation2] sm:$0xff] %vm794_vm5, %v3086_v62 }
0x24fc   :  { %v2581_v8 = vpop.permute.xlu0 %2580 }
0x24fd   :  { %2583 = vst.msk [vmem:[#allocation3] sm:$0xff] %vm52_vm0, %v2581_v8 }
0x2502   :  { %v3093_v17 = vld [vmem:[#allocation2] sm:$0xff] }
0x2503   :  { %4229 = vmatmul.mubr.f32.vlgmr.msra.gmra.mrb[16].mxu0 %v3093_v17 }
0x25d6   :  { %v3160_v56 = vpop.f32.mrb[16].mxu0 }
0x25d7   :  { %v3161_v0 = vadd.f32 %v5948_v6, %v3160_v56  ;;  %v4230_v45 = vpop.f32.mrb[17].mxu0 }
0x25d9   :  { %v3236_v15 = vadd.f32 %v3232_v13, %v3161_v0 }
0x25db   :  { %3271 = vst [vmem:[%s6123_s14 + $0x18] sm:$0xff] %v3236_v15 }

</bundles_post_ra>
